<compile_context>
chip_gen: v7x
topology: tpu7x:2x2x1
jax: 0.10.0
libtpu: 0.0.40
codegen_flags: <defaults>
</compile_context>

<pallas_src>
import functools

import jax
import jax.numpy as jnp
from jax.experimental import pallas as pl
from jax.experimental.pallas import tpu as pltpu


def _vmem_spec():
    return pl.BlockSpec(memory_space=pltpu.MemorySpace.VMEM)


# ---------------------------------------------------------------------------
# Fused Conv(3x3, pad=1, lowered to patches @ W) + bias + BatchNorm + ReLU.
# Single grid point; two passes over a VMEM-resident f32 activation scratch:
#   pass 1: chunked bf16 matmul -> f32, accumulate sum / sum-of-squares
#   pass 2: apply gamma/sqrt(var+eps) scale + shift (+ ReLU), store bf16.
# ---------------------------------------------------------------------------
def _conv_bn_relu_kernel(p_ref, w_ref, b_ref, g_ref, bt_ref, o_ref, y_scr,
                         *, chunk, relu):
    M = p_ref.shape[0]
    C = o_ref.shape[1]
    n_chunks = M // chunk
    inv_m = 1.0 / M

    def pass1(i, carry):
        s, ss = carry
        r0 = pl.multiple_of(i * chunk, chunk)
        y = jnp.dot(p_ref[pl.ds(r0, chunk), :], w_ref[...],
                    preferred_element_type=jnp.float32) + b_ref[...]
        y_scr[pl.ds(r0, chunk), :] = y
        return (s + jnp.sum(y, axis=0, keepdims=True),
                ss + jnp.sum(y * y, axis=0, keepdims=True))

    zero = jnp.zeros((1, C), jnp.float32)
    s, ss = jax.lax.fori_loop(0, n_chunks, pass1, (zero, zero))

    mean = s * inv_m
    var = ss * inv_m - mean * mean                     # biased batch variance
    scale = g_ref[...] * jax.lax.rsqrt(var + 1e-5)     # gamma / sqrt(var+eps)
    shift = bt_ref[...] - mean * scale                 # beta - mean*scale

    def pass2(i, _):
        r0 = pl.multiple_of(i * chunk, chunk)
        y = y_scr[pl.ds(r0, chunk), :] * scale + shift
        if relu:
            y = jnp.maximum(y, 0.0)
        o_ref[pl.ds(r0, chunk), :] = y.astype(o_ref.dtype)
        return 0

    jax.lax.fori_loop(0, n_chunks, pass2, 0)


# ---------------------------------------------------------------------------
# Fused: final ConvBlock (conv + bias + BN, no ReLU) + global average pool
# (via pooling matrix) + ProtoNet head (centroid matmul, -||q-c||^2, log_softmax).
# ---------------------------------------------------------------------------
def _final_block_head_kernel(p_ref, w_ref, b_ref, g_ref, bt_ref,
                             pool_ref, avg_ref, o_ref, *, n_support):
    y = jnp.dot(p_ref[...], w_ref[...],
                preferred_element_type=jnp.float32) + b_ref[...]      # (M4, C)
    mean = jnp.mean(y, axis=0, keepdims=True)
    var = jnp.mean((y - mean) ** 2, axis=0, keepdims=True)
    scale = g_ref[...] * jax.lax.rsqrt(var + 1e-5)
    y = (y - mean) * scale + bt_ref[...]               # last ConvBlock: no ReLU

    # global average pool over spatial positions, as a matmul: (B, M4) @ (M4, C)
    fv = jnp.dot(pool_ref[...], y, preferred_element_type=jnp.float32)  # (B, dim)
    support = fv[:n_support, :]
    query = fv[n_support:, :]                                           # (Q, dim)
    dim = query.shape[1]

    # class centroids via averaging matrix: (way, n_support) @ (n_support, dim)
    cents = jnp.dot(avg_ref[...], support, preferred_element_type=jnp.float32)

    # -||q - c||^2 = 2 q.c - ||q||^2 - ||c||^2 (all matmul / row reductions)
    qn = jnp.sum(query * query, axis=1, keepdims=True)                  # (Q, 1)
    qc = jax.lax.dot_general(query, cents, (((1,), (1,)), ((), ())),
                             preferred_element_type=jnp.float32)        # (Q, way)
    cn = jax.lax.dot_general(jnp.ones((1, dim), jnp.float32), cents * cents,
                             (((1,), (1,)), ((), ())),
                             preferred_element_type=jnp.float32)        # (1, way)
    neg = 2.0 * qc - qn - cn

    # log_softmax over classes
    m = jnp.max(neg, axis=1, keepdims=True)
    z = neg - m
    lse = jnp.log(jnp.sum(jnp.exp(z), axis=1, keepdims=True))
    o_ref[...] = z - lse


# ------------------------------------------------------------------ host glue
def im2col_3x3(x_nhwc):
    """3x3/pad=1 patch matrix: (N, H, W, C) -> (N*H*W, 9*C), tap order (dy, dx, cin)."""
    N, H, W, C = x_nhwc.shape
    xp = jnp.pad(x_nhwc, ((0, 0), (1, 1), (1, 1), (0, 0)))
    cols = [xp[:, dy:dy + H, dx:dx + W, :] for dy in range(3) for dx in range(3)]
    return jnp.concatenate(cols, axis=-1).reshape(N * H * W, 9 * C)


def _prep_weight(w):
    """PyTorch (Cout, Cin, 3, 3) -> (9*Cin, Cout) bf16, tap order (dy, dx, cin)."""
    cout, cin = w.shape[0], w.shape[1]
    return jnp.transpose(w, (2, 3, 1, 0)).reshape(9 * cin, cout).astype(jnp.bfloat16)


def conv_block_fused(x_nhwc, w, b, gamma, beta):
    """ConvBlock + ReLU (blocks 1-3): one fused Pallas kernel, bf16 output."""
    N, H, W, Cin = x_nhwc.shape
    Cout = w.shape[0]
    patches = im2col_3x3(x_nhwc)                    # (M, 9*Cin) bf16
    M, K = patches.shape
    chunk = min(M, 256 if K <= 128 else 128)        # keep per-iteration vreg use modest
    y2d = pl.pallas_call(
        functools.partial(_conv_bn_relu_kernel, chunk=chunk, relu=True),
        out_shape=jax.ShapeDtypeStruct((M, Cout), jnp.bfloat16),
        in_specs=[_vmem_spec()] * 5,
        out_specs=_vmem_spec(),
        scratch_shapes=[pltpu.VMEM((M, Cout), jnp.float32)],
    )(patches, _prep_weight(w),
      b.reshape(1, Cout).astype(jnp.float32),
      gamma.reshape(1, Cout).astype(jnp.float32),
      beta.reshape(1, Cout).astype(jnp.float32))
    return y2d.reshape(N, H, W, Cout)


def maxpool2(x_nhwc):
    N, H, W, C = x_nhwc.shape
    return jnp.max(x_nhwc.reshape(N, H // 2, 2, W // 2, 2, C), axis=(2, 4))


def final_block_and_head(x_nhwc, w, b, gamma, beta, way, train_shot, test_shot):
    N, H, W, Cin = x_nhwc.shape
    Cout = w.shape[0]
    patches = im2col_3x3(x_nhwc)                    # (N*H*W, 9*Cin) bf16
    # pooling matrix: fv = pool @ y2d   (rows of y2d ordered (n, h, w))
    pool = jnp.kron(jnp.eye(N, dtype=jnp.float32),
                    jnp.full((1, H * W), 1.0 / (H * W), jnp.float32))      # (N, N*H*W)
    # class-averaging matrix: centroids = avg @ support
    avg = jnp.kron(jnp.eye(way, dtype=jnp.float32),
                   jnp.full((1, train_shot), 1.0 / train_shot, jnp.float32))
    Q = way * test_shot
    return pl.pallas_call(
        functools.partial(_final_block_head_kernel, n_support=way * train_shot),
        out_shape=jax.ShapeDtypeStruct((Q, way), jnp.float32),
        in_specs=[_vmem_spec()] * 7,
        out_specs=_vmem_spec(),
    )(patches, _prep_weight(w),
      b.reshape(1, Cout).astype(jnp.float32),
      gamma.reshape(1, Cout).astype(jnp.float32),
      beta.reshape(1, Cout).astype(jnp.float32),
      pool, avg)


# --------------------------------------------------------------- full forward
def proto_model_forward(x_nchw, params, way, train_shot, test_shot):
    x = jnp.transpose(x_nchw, (0, 2, 3, 1)).astype(jnp.bfloat16)   # NCHW -> NHWC, bf16
    for idx in range(3):
        w, b, g, bt = params[idx]
        x = conv_block_fused(x, w, b, g, bt)     # fused conv+bias+BN+ReLU (Pallas)
        x = maxpool2(x)                          # tiny XLA op between kernels
    w, b, g, bt = params[3]
    # TODO(synk): get_feature_vector is `pass` in the source module; we use the
    # conventional ProtoNet global average pool so that dim == num_channel == self.dim.
    return final_block_and_head(x, w, b, g, bt, way, train_shot, test_shot)


# ------------------------------------------------------------------- params
def init_params(key, num_channel=64):
    params = []
    cins = [3, num_channel, num_channel, num_channel]
    for cin in cins:
        key, k1, k2 = jax.random.split(key, 3)
        w = jax.random.normal(k1, (num_channel, cin, 3, 3), jnp.float32) * 0.1
        b = jax.random.normal(k2, (num_channel,), jnp.float32) * 0.01
        gamma = jnp.ones((num_channel,), jnp.float32)   # PyTorch BN defaults
        beta = jnp.zeros((num_channel,), jnp.float32)
        params.append((w, b, gamma, beta))
    return params, key


if __name__ == "__main__":
    way, train_shot, test_shot = 2, 4, 4
    num_channel = 64
    B = way * (train_shot + test_shot)               # support first, then queries

    key = jax.random.PRNGKey(0)
    key, kx = jax.random.split(key)
    x_nchw = jax.random.normal(kx, (B, 3, 16, 16), jnp.float32)  # PyTorch NCHW input
    params, key = init_params(key, num_channel)

    fwd = jax.jit(proto_model_forward, static_argnums=(2, 3, 4))
    log_pred = fwd(x_nchw, params, way, train_shot, test_shot)
    log_pred = jax.block_until_ready(log_pred)

    assert log_pred.shape == (way * test_shot, way)
    # log_softmax rows must sum (in prob space) to 1
    assert jnp.allclose(jnp.sum(jnp.exp(log_pred), axis=1), 1.0, atol=1e-3)
    print("KERNEL_OK")
</pallas_src>

<mosaic_0001>
module attributes {stable_mosaic.version = 11 : i64} {
  func.func @_conv_bn_relu_kernel(%arg0: memref<4096x27xbf16, #tpu.memory_space<vmem>>, %arg1: memref<27x64xbf16, #tpu.memory_space<vmem>>, %arg2: memref<1x64xf32, #tpu.memory_space<vmem>>, %arg3: memref<1x64xf32, #tpu.memory_space<vmem>>, %arg4: memref<1x64xf32, #tpu.memory_space<vmem>>, %arg5: memref<4096x64xbf16, #tpu.memory_space<vmem>>, %arg6: memref<4096x64xf32, #tpu.memory_space<vmem>>) attributes {dimension_semantics = [], scalar_prefetch = 0 : i64, scratch_operands = 1 : i64, tpu.core_type = #tpu.core_type<tc>} {
    %cst = arith.constant 0.000000e+00 : f32
    %0 = vector.broadcast %cst : f32 to vector<1x64xf32>
    %c0_i32 = arith.constant 0 : i32
    %c16_i32 = arith.constant 16 : i32
    %1 = arith.addi %c0_i32, %c16_i32 : i32
    %c1_i32 = arith.constant 1 : i32
    %2:2 = scf.for %arg7 = %c0_i32 to %1 step %c1_i32 iter_args(%arg8 = %0, %arg9 = %0) -> (vector<1x64xf32>, vector<1x64xf32>)  : i32 {
      %c256_i32 = arith.constant 256 : i32
      %18 = arith.muli %arg7, %c256_i32 : i32
      %19 = tpu.assume_multiple %18, 256 : i32
      %20 = arith.index_cast %19 : i32 to index
      %c0_11 = arith.constant 0 : index
      %21 = vector.load %arg0[%20, %c0_11] : memref<4096x27xbf16, #tpu.memory_space<vmem>>, vector<256x27xbf16>
      %c0_12 = arith.constant 0 : index
      %c0_13 = arith.constant 0 : index
      %22 = vector.load %arg1[%c0_12, %c0_13] : memref<27x64xbf16, #tpu.memory_space<vmem>>, vector<27x64xbf16>
      %cst_14 = arith.constant dense<0.000000e+00> : vector<256x64xf32>
      %23 = tpu.matmul %21, %22, %cst_14 {dimension_numbers = #tpu.dot_dimension_numbers<[1], [0], [0], [1], [0, 0, 1, 1], [], []>} : vector<256x27xbf16>, vector<27x64xbf16>, vector<256x64xf32> -> vector<256x64xf32>
      %c0_15 = arith.constant 0 : index
      %c0_16 = arith.constant 0 : index
      %24 = vector.load %arg2[%c0_15, %c0_16] : memref<1x64xf32, #tpu.memory_space<vmem>>, vector<1x64xf32>
      %25 = vector.broadcast %24 : vector<1x64xf32> to vector<256x64xf32>
      %26 = arith.addf %23, %25 : vector<256x64xf32>
      %27 = arith.index_cast %19 : i32 to index
      %c0_17 = arith.constant 0 : index
      %28 = vector.load %arg6[%27, %c0_17] : memref<4096x64xf32, #tpu.memory_space<vmem>>, vector<256x64xf32>
      tpu.vector_store %arg6[%27, %c0_17], %26 {strides = array<i32>} : memref<4096x64xf32, #tpu.memory_space<vmem>>, vector<256x64xf32>,
      %cst_18 = arith.constant dense<0.000000e+00> : vector<64xf32>
      %29 = vector.multi_reduction <add>, %26, %cst_18 [0] : vector<256x64xf32> to vector<64xf32>
      %30 = vector.shape_cast %29 : vector<64xf32> to vector<1x64xf32>
      %31 = arith.addf %arg8, %30 : vector<1x64xf32>
      %32 = arith.mulf %26, %26 : vector<256x64xf32>
      %cst_19 = arith.constant dense<0.000000e+00> : vector<64xf32>
      %33 = vector.multi_reduction <add>, %32, %cst_19 [0] : vector<256x64xf32> to vector<64xf32>
      %34 = vector.shape_cast %33 : vector<64xf32> to vector<1x64xf32>
      %35 = arith.addf %arg9, %34 : vector<1x64xf32>
      scf.yield %31, %35 : vector<1x64xf32>, vector<1x64xf32>
    }
    %c16_i32_0 = arith.constant 16 : i32
    %cst_1 = arith.constant 2.44140625E-4 : f32
    %3 = vector.broadcast %cst_1 : f32 to vector<1x64xf32>
    %4 = arith.mulf %2#0, %3 : vector<1x64xf32>
    %cst_2 = arith.constant 2.44140625E-4 : f32
    %5 = vector.broadcast %cst_2 : f32 to vector<1x64xf32>
    %6 = arith.mulf %2#1, %5 : vector<1x64xf32>
    %7 = arith.mulf %4, %4 : vector<1x64xf32>
    %8 = arith.subf %6, %7 : vector<1x64xf32>
    %c0 = arith.constant 0 : index
    %c0_3 = arith.constant 0 : index
    %9 = vector.load %arg3[%c0, %c0_3] : memref<1x64xf32, #tpu.memory_space<vmem>>, vector<1x64xf32>
    %cst_4 = arith.constant 9.99999974E-6 : f32
    %10 = vector.broadcast %cst_4 : f32 to vector<1x64xf32>
    %11 = arith.addf %8, %10 : vector<1x64xf32>
    %12 = math.rsqrt %11 : vector<1x64xf32>
    %13 = arith.mulf %9, %12 : vector<1x64xf32>
    %c0_5 = arith.constant 0 : index
    %c0_6 = arith.constant 0 : index
    %14 = vector.load %arg4[%c0_5, %c0_6] : memref<1x64xf32, #tpu.memory_space<vmem>>, vector<1x64xf32>
    %15 = arith.mulf %4, %13 : vector<1x64xf32>
    %16 = arith.subf %14, %15 : vector<1x64xf32>
    %c0_i32_7 = arith.constant 0 : i32
    %c16_i32_8 = arith.constant 16 : i32
    %17 = arith.addi %c0_i32_7, %c16_i32_8 : i32
    %c1_i32_9 = arith.constant 1 : i32
    scf.for %arg7 = %c0_i32_7 to %17 step %c1_i32_9  : i32 {
      %c256_i32 = arith.constant 256 : i32
      %18 = arith.muli %arg7, %c256_i32 : i32
      %19 = tpu.assume_multiple %18, 256 : i32
      %20 = arith.index_cast %19 : i32 to index
      %c0_11 = arith.constant 0 : index
      %21 = vector.load %arg6[%20, %c0_11] : memref<4096x64xf32, #tpu.memory_space<vmem>>, vector<256x64xf32>
      %22 = vector.broadcast %13 : vector<1x64xf32> to vector<256x64xf32>
      %23 = arith.mulf %21, %22 : vector<256x64xf32>
      %24 = vector.broadcast %16 : vector<1x64xf32> to vector<256x64xf32>
      %25 = arith.addf %23, %24 : vector<256x64xf32>
      %cst_12 = arith.constant 0.000000e+00 : f32
      %26 = vector.broadcast %cst_12 : f32 to vector<256x64xf32>
      %27 = arith.maximumf %25, %26 : vector<256x64xf32>
      %28 = arith.truncf %27 : vector<256x64xf32> to vector<256x64xbf16>
      %29 = arith.index_cast %19 : i32 to index
      %c0_13 = arith.constant 0 : index
      %30 = vector.load %arg5[%29, %c0_13] : memref<4096x64xbf16, #tpu.memory_space<vmem>>, vector<256x64xbf16>
      tpu.vector_store %arg5[%29, %c0_13], %28 {strides = array<i32>} : memref<4096x64xbf16, #tpu.memory_space<vmem>>, vector<256x64xbf16>,
    }
    %c16_i32_10 = arith.constant 16 : i32
    return
  }
}

module attributes {stable_mosaic.version = 11 : i64} {
  func.func @_conv_bn_relu_kernel(%arg0: memref<1024x576xbf16, #tpu.memory_space<vmem>>, %arg1: memref<576x64xbf16, #tpu.memory_space<vmem>>, %arg2: memref<1x64xf32, #tpu.memory_space<vmem>>, %arg3: memref<1x64xf32, #tpu.memory_space<vmem>>, %arg4: memref<1x64xf32, #tpu.memory_space<vmem>>, %arg5: memref<1024x64xbf16, #tpu.memory_space<vmem>>, %arg6: memref<1024x64xf32, #tpu.memory_space<vmem>>) attributes {dimension_semantics = [], scalar_prefetch = 0 : i64, scratch_operands = 1 : i64, tpu.core_type = #tpu.core_type<tc>} {
    %cst = arith.constant 0.000000e+00 : f32
    %0 = vector.broadcast %cst : f32 to vector<1x64xf32>
    %c0_i32 = arith.constant 0 : i32
    %c8_i32 = arith.constant 8 : i32
    %1 = arith.addi %c0_i32, %c8_i32 : i32
    %c1_i32 = arith.constant 1 : i32
    %2:2 = scf.for %arg7 = %c0_i32 to %1 step %c1_i32 iter_args(%arg8 = %0, %arg9 = %0) -> (vector<1x64xf32>, vector<1x64xf32>)  : i32 {
      %c128_i32 = arith.constant 128 : i32
      %18 = arith.muli %arg7, %c128_i32 : i32
      %19 = tpu.assume_multiple %18, 128 : i32
      %20 = arith.index_cast %19 : i32 to index
      %c0_11 = arith.constant 0 : index
      %21 = vector.load %arg0[%20, %c0_11] : memref<1024x576xbf16, #tpu.memory_space<vmem>>, vector<128x576xbf16>
      %c0_12 = arith.constant 0 : index
      %c0_13 = arith.constant 0 : index
      %22 = vector.load %arg1[%c0_12, %c0_13] : memref<576x64xbf16, #tpu.memory_space<vmem>>, vector<576x64xbf16>
      %cst_14 = arith.constant dense<0.000000e+00> : vector<128x64xf32>
      %23 = tpu.matmul %21, %22, %cst_14 {dimension_numbers = #tpu.dot_dimension_numbers<[1], [0], [0], [1], [0, 0, 1, 1], [], []>} : vector<128x576xbf16>, vector<576x64xbf16>, vector<128x64xf32> -> vector<128x64xf32>
      %c0_15 = arith.constant 0 : index
      %c0_16 = arith.constant 0 : index
      %24 = vector.load %arg2[%c0_15, %c0_16] : memref<1x64xf32, #tpu.memory_space<vmem>>, vector<1x64xf32>
      %25 = vector.broadcast %24 : vector<1x64xf32> to vector<128x64xf32>
      %26 = arith.addf %23, %25 : vector<128x64xf32>
      %27 = arith.index_cast %19 : i32 to index
      %c0_17 = arith.constant 0 : index
      %28 = vector.load %arg6[%27, %c0_17] : memref<1024x64xf32, #tpu.memory_space<vmem>>, vector<128x64xf32>
      tpu.vector_store %arg6[%27, %c0_17], %26 {strides = array<i32>} : memref<1024x64xf32, #tpu.memory_space<vmem>>, vector<128x64xf32>,
      %cst_18 = arith.constant dense<0.000000e+00> : vector<64xf32>
      %29 = vector.multi_reduction <add>, %26, %cst_18 [0] : vector<128x64xf32> to vector<64xf32>
      %30 = vector.shape_cast %29 : vector<64xf32> to vector<1x64xf32>
      %31 = arith.addf %arg8, %30 : vector<1x64xf32>
      %32 = arith.mulf %26, %26 : vector<128x64xf32>
      %cst_19 = arith.constant dense<0.000000e+00> : vector<64xf32>
      %33 = vector.multi_reduction <add>, %32, %cst_19 [0] : vector<128x64xf32> to vector<64xf32>
      %34 = vector.shape_cast %33 : vector<64xf32> to vector<1x64xf32>
      %35 = arith.addf %arg9, %34 : vector<1x64xf32>
      scf.yield %31, %35 : vector<1x64xf32>, vector<1x64xf32>
    }
    %c8_i32_0 = arith.constant 8 : i32
    %cst_1 = arith.constant 9.765625E-4 : f32
    %3 = vector.broadcast %cst_1 : f32 to vector<1x64xf32>
    %4 = arith.mulf %2#0, %3 : vector<1x64xf32>
    %cst_2 = arith.constant 9.765625E-4 : f32
    %5 = vector.broadcast %cst_2 : f32 to vector<1x64xf32>
    %6 = arith.mulf %2#1, %5 : vector<1x64xf32>
    %7 = arith.mulf %4, %4 : vector<1x64xf32>
    %8 = arith.subf %6, %7 : vector<1x64xf32>
    %c0 = arith.constant 0 : index
    %c0_3 = arith.constant 0 : index
    %9 = vector.load %arg3[%c0, %c0_3] : memref<1x64xf32, #tpu.memory_space<vmem>>, vector<1x64xf32>
    %cst_4 = arith.constant 9.99999974E-6 : f32
    %10 = vector.broadcast %cst_4 : f32 to vector<1x64xf32>
    %11 = arith.addf %8, %10 : vector<1x64xf32>
    %12 = math.rsqrt %11 : vector<1x64xf32>
    %13 = arith.mulf %9, %12 : vector<1x64xf32>
    %c0_5 = arith.constant 0 : index
    %c0_6 = arith.constant 0 : index
    %14 = vector.load %arg4[%c0_5, %c0_6] : memref<1x64xf32, #tpu.memory_space<vmem>>, vector<1x64xf32>
    %15 = arith.mulf %4, %13 : vector<1x64xf32>
    %16 = arith.subf %14, %15 : vector<1x64xf32>
    %c0_i32_7 = arith.constant 0 : i32
    %c8_i32_8 = arith.constant 8 : i32
    %17 = arith.addi %c0_i32_7, %c8_i32_8 : i32
    %c1_i32_9 = arith.constant 1 : i32
    scf.for %arg7 = %c0_i32_7 to %17 step %c1_i32_9  : i32 {
      %c128_i32 = arith.constant 128 : i32
      %18 = arith.muli %arg7, %c128_i32 : i32
      %19 = tpu.assume_multiple %18, 128 : i32
      %20 = arith.index_cast %19 : i32 to index
      %c0_11 = arith.constant 0 : index
      %21 = vector.load %arg6[%20, %c0_11] : memref<1024x64xf32, #tpu.memory_space<vmem>>, vector<128x64xf32>
      %22 = vector.broadcast %13 : vector<1x64xf32> to vector<128x64xf32>
      %23 = arith.mulf %21, %22 : vector<128x64xf32>
      %24 = vector.broadcast %16 : vector<1x64xf32> to vector<128x64xf32>
      %25 = arith.addf %23, %24 : vector<128x64xf32>
      %cst_12 = arith.constant 0.000000e+00 : f32
      %26 = vector.broadcast %cst_12 : f32 to vector<128x64xf32>
      %27 = arith.maximumf %25, %26 : vector<128x64xf32>
      %28 = arith.truncf %27 : vector<128x64xf32> to vector<128x64xbf16>
      %29 = arith.index_cast %19 : i32 to index
      %c0_13 = arith.constant 0 : index
      %30 = vector.load %arg5[%29, %c0_13] : memref<1024x64xbf16, #tpu.memory_space<vmem>>, vector<128x64xbf16>
      tpu.vector_store %arg5[%29, %c0_13], %28 {strides = array<i32>} : memref<1024x64xbf16, #tpu.memory_space<vmem>>, vector<128x64xbf16>,
    }
    %c8_i32_10 = arith.constant 8 : i32
    return
  }
}

module attributes {stable_mosaic.version = 11 : i64} {
  func.func @_conv_bn_relu_kernel(%arg0: memref<256x576xbf16, #tpu.memory_space<vmem>>, %arg1: memref<576x64xbf16, #tpu.memory_space<vmem>>, %arg2: memref<1x64xf32, #tpu.memory_space<vmem>>, %arg3: memref<1x64xf32, #tpu.memory_space<vmem>>, %arg4: memref<1x64xf32, #tpu.memory_space<vmem>>, %arg5: memref<256x64xbf16, #tpu.memory_space<vmem>>, %arg6: memref<256x64xf32, #tpu.memory_space<vmem>>) attributes {dimension_semantics = [], scalar_prefetch = 0 : i64, scratch_operands = 1 : i64, tpu.core_type = #tpu.core_type<tc>} {
    %cst = arith.constant 0.000000e+00 : f32
    %0 = vector.broadcast %cst : f32 to vector<1x64xf32>
    %c0_i32 = arith.constant 0 : i32
    %c2_i32 = arith.constant 2 : i32
    %1 = arith.addi %c0_i32, %c2_i32 : i32
    %c1_i32 = arith.constant 1 : i32
    %2:2 = scf.for %arg7 = %c0_i32 to %1 step %c1_i32 iter_args(%arg8 = %0, %arg9 = %0) -> (vector<1x64xf32>, vector<1x64xf32>)  : i32 {
      %c128_i32 = arith.constant 128 : i32
      %18 = arith.muli %arg7, %c128_i32 : i32
      %19 = tpu.assume_multiple %18, 128 : i32
      %20 = arith.index_cast %19 : i32 to index
      %c0_11 = arith.constant 0 : index
      %21 = vector.load %arg0[%20, %c0_11] : memref<256x576xbf16, #tpu.memory_space<vmem>>, vector<128x576xbf16>
      %c0_12 = arith.constant 0 : index
      %c0_13 = arith.constant 0 : index
      %22 = vector.load %arg1[%c0_12, %c0_13] : memref<576x64xbf16, #tpu.memory_space<vmem>>, vector<576x64xbf16>
      %cst_14 = arith.constant dense<0.000000e+00> : vector<128x64xf32>
      %23 = tpu.matmul %21, %22, %cst_14 {dimension_numbers = #tpu.dot_dimension_numbers<[1], [0], [0], [1], [0, 0, 1, 1], [], []>} : vector<128x576xbf16>, vector<576x64xbf16>, vector<128x64xf32> -> vector<128x64xf32>
      %c0_15 = arith.constant 0 : index
      %c0_16 = arith.constant 0 : index
      %24 = vector.load %arg2[%c0_15, %c0_16] : memref<1x64xf32, #tpu.memory_space<vmem>>, vector<1x64xf32>
      %25 = vector.broadcast %24 : vector<1x64xf32> to vector<128x64xf32>
      %26 = arith.addf %23, %25 : vector<128x64xf32>
      %27 = arith.index_cast %19 : i32 to index
      %c0_17 = arith.constant 0 : index
      %28 = vector.load %arg6[%27, %c0_17] : memref<256x64xf32, #tpu.memory_space<vmem>>, vector<128x64xf32>
      tpu.vector_store %arg6[%27, %c0_17], %26 {strides = array<i32>} : memref<256x64xf32, #tpu.memory_space<vmem>>, vector<128x64xf32>,
      %cst_18 = arith.constant dense<0.000000e+00> : vector<64xf32>
      %29 = vector.multi_reduction <add>, %26, %cst_18 [0] : vector<128x64xf32> to vector<64xf32>
      %30 = vector.shape_cast %29 : vector<64xf32> to vector<1x64xf32>
      %31 = arith.addf %arg8, %30 : vector<1x64xf32>
      %32 = arith.mulf %26, %26 : vector<128x64xf32>
      %cst_19 = arith.constant dense<0.000000e+00> : vector<64xf32>
      %33 = vector.multi_reduction <add>, %32, %cst_19 [0] : vector<128x64xf32> to vector<64xf32>
      %34 = vector.shape_cast %33 : vector<64xf32> to vector<1x64xf32>
      %35 = arith.addf %arg9, %34 : vector<1x64xf32>
      scf.yield %31, %35 : vector<1x64xf32>, vector<1x64xf32>
    }
    %c2_i32_0 = arith.constant 2 : i32
    %cst_1 = arith.constant 3.906250e-03 : f32
    %3 = vector.broadcast %cst_1 : f32 to vector<1x64xf32>
    %4 = arith.mulf %2#0, %3 : vector<1x64xf32>
    %cst_2 = arith.constant 3.906250e-03 : f32
    %5 = vector.broadcast %cst_2 : f32 to vector<1x64xf32>
    %6 = arith.mulf %2#1, %5 : vector<1x64xf32>
    %7 = arith.mulf %4, %4 : vector<1x64xf32>
    %8 = arith.subf %6, %7 : vector<1x64xf32>
    %c0 = arith.constant 0 : index
    %c0_3 = arith.constant 0 : index
    %9 = vector.load %arg3[%c0, %c0_3] : memref<1x64xf32, #tpu.memory_space<vmem>>, vector<1x64xf32>
    %cst_4 = arith.constant 9.99999974E-6 : f32
    %10 = vector.broadcast %cst_4 : f32 to vector<1x64xf32>
    %11 = arith.addf %8, %10 : vector<1x64xf32>
    %12 = math.rsqrt %11 : vector<1x64xf32>
    %13 = arith.mulf %9, %12 : vector<1x64xf32>
    %c0_5 = arith.constant 0 : index
    %c0_6 = arith.constant 0 : index
    %14 = vector.load %arg4[%c0_5, %c0_6] : memref<1x64xf32, #tpu.memory_space<vmem>>, vector<1x64xf32>
    %15 = arith.mulf %4, %13 : vector<1x64xf32>
    %16 = arith.subf %14, %15 : vector<1x64xf32>
    %c0_i32_7 = arith.constant 0 : i32
    %c2_i32_8 = arith.constant 2 : i32
    %17 = arith.addi %c0_i32_7, %c2_i32_8 : i32
    %c1_i32_9 = arith.constant 1 : i32
    scf.for %arg7 = %c0_i32_7 to %17 step %c1_i32_9  : i32 {
      %c128_i32 = arith.constant 128 : i32
      %18 = arith.muli %arg7, %c128_i32 : i32
      %19 = tpu.assume_multiple %18, 128 : i32
      %20 = arith.index_cast %19 : i32 to index
      %c0_11 = arith.constant 0 : index
      %21 = vector.load %arg6[%20, %c0_11] : memref<256x64xf32, #tpu.memory_space<vmem>>, vector<128x64xf32>
      %22 = vector.broadcast %13 : vector<1x64xf32> to vector<128x64xf32>
      %23 = arith.mulf %21, %22 : vector<128x64xf32>
      %24 = vector.broadcast %16 : vector<1x64xf32> to vector<128x64xf32>
      %25 = arith.addf %23, %24 : vector<128x64xf32>
      %cst_12 = arith.constant 0.000000e+00 : f32
      %26 = vector.broadcast %cst_12 : f32 to vector<128x64xf32>
      %27 = arith.maximumf %25, %26 : vector<128x64xf32>
      %28 = arith.truncf %27 : vector<128x64xf32> to vector<128x64xbf16>
      %29 = arith.index_cast %19 : i32 to index
      %c0_13 = arith.constant 0 : index
      %30 = vector.load %arg5[%29, %c0_13] : memref<256x64xbf16, #tpu.memory_space<vmem>>, vector<128x64xbf16>
      tpu.vector_store %arg5[%29, %c0_13], %28 {strides = array<i32>} : memref<256x64xbf16, #tpu.memory_space<vmem>>, vector<128x64xbf16>,
    }
    %c2_i32_10 = arith.constant 2 : i32
    return
  }
}

module attributes {stable_mosaic.version = 11 : i64} {
  func.func @_final_block_head_kernel(%arg0: memref<64x576xbf16, #tpu.memory_space<vmem>>, %arg1: memref<576x64xbf16, #tpu.memory_space<vmem>>, %arg2: memref<1x64xf32, #tpu.memory_space<vmem>>, %arg3: memref<1x64xf32, #tpu.memory_space<vmem>>, %arg4: memref<1x64xf32, #tpu.memory_space<vmem>>, %arg5: memref<16x64xf32, #tpu.memory_space<vmem>>, %arg6: memref<2x8xf32, #tpu.memory_space<vmem>>, %arg7: memref<8x2xf32, #tpu.memory_space<vmem>>) attributes {dimension_semantics = [], scalar_prefetch = 0 : i64, scratch_operands = 0 : i64, tpu.core_type = #tpu.core_type<tc>} {
    %c0 = arith.constant 0 : index
    %c0_0 = arith.constant 0 : index
    %0 = vector.load %arg0[%c0, %c0_0] : memref<64x576xbf16, #tpu.memory_space<vmem>>, vector<64x576xbf16>
    %c0_1 = arith.constant 0 : index
    %c0_2 = arith.constant 0 : index
    %1 = vector.load %arg1[%c0_1, %c0_2] : memref<576x64xbf16, #tpu.memory_space<vmem>>, vector<576x64xbf16>
    %cst = arith.constant dense<0.000000e+00> : vector<64x64xf32>
    %2 = tpu.matmul %0, %1, %cst {dimension_numbers = #tpu.dot_dimension_numbers<[1], [0], [0], [1], [0, 0, 1, 1], [], []>} : vector<64x576xbf16>, vector<576x64xbf16>, vector<64x64xf32> -> vector<64x64xf32>
    %c0_3 = arith.constant 0 : index
    %c0_4 = arith.constant 0 : index
    %3 = vector.load %arg2[%c0_3, %c0_4] : memref<1x64xf32, #tpu.memory_space<vmem>>, vector<1x64xf32>
    %4 = vector.broadcast %3 : vector<1x64xf32> to vector<64x64xf32>
    %5 = arith.addf %2, %4 : vector<64x64xf32>
    %cst_5 = arith.constant dense<0.000000e+00> : vector<64xf32>
    %6 = vector.multi_reduction <add>, %5, %cst_5 [0] : vector<64x64xf32> to vector<64xf32>
    %7 = vector.shape_cast %6 : vector<64xf32> to vector<1x64xf32>
    %cst_6 = arith.constant 6.400000e+01 : f32
    %8 = vector.broadcast %cst_6 : f32 to vector<1x64xf32>
    %9 = arith.divf %7, %8 : vector<1x64xf32>
    %10 = vector.broadcast %9 : vector<1x64xf32> to vector<64x64xf32>
    %11 = arith.subf %5, %10 : vector<64x64xf32>
    %12 = arith.mulf %11, %11 : vector<64x64xf32>
    %cst_7 = arith.constant dense<0.000000e+00> : vector<64xf32>
    %13 = vector.multi_reduction <add>, %12, %cst_7 [0] : vector<64x64xf32> to vector<64xf32>
    %14 = vector.shape_cast %13 : vector<64xf32> to vector<1x64xf32>
    %cst_8 = arith.constant 6.400000e+01 : f32
    %15 = vector.broadcast %cst_8 : f32 to vector<1x64xf32>
    %16 = arith.divf %14, %15 : vector<1x64xf32>
    %c0_9 = arith.constant 0 : index
    %c0_10 = arith.constant 0 : index
    %17 = vector.load %arg3[%c0_9, %c0_10] : memref<1x64xf32, #tpu.memory_space<vmem>>, vector<1x64xf32>
    %cst_11 = arith.constant 9.99999974E-6 : f32
    %18 = vector.broadcast %cst_11 : f32 to vector<1x64xf32>
    %19 = arith.addf %16, %18 : vector<1x64xf32>
    %20 = math.rsqrt %19 : vector<1x64xf32>
    %21 = arith.mulf %17, %20 : vector<1x64xf32>
    %22 = vector.broadcast %9 : vector<1x64xf32> to vector<64x64xf32>
    %23 = arith.subf %5, %22 : vector<64x64xf32>
    %24 = vector.broadcast %21 : vector<1x64xf32> to vector<64x64xf32>
    %25 = arith.mulf %23, %24 : vector<64x64xf32>
    %c0_12 = arith.constant 0 : index
    %c0_13 = arith.constant 0 : index
    %26 = vector.load %arg4[%c0_12, %c0_13] : memref<1x64xf32, #tpu.memory_space<vmem>>, vector<1x64xf32>
    %27 = vector.broadcast %26 : vector<1x64xf32> to vector<64x64xf32>
    %28 = arith.addf %25, %27 : vector<64x64xf32>
    %c0_14 = arith.constant 0 : index
    %c0_15 = arith.constant 0 : index
    %29 = vector.load %arg5[%c0_14, %c0_15] : memref<16x64xf32, #tpu.memory_space<vmem>>, vector<16x64xf32>
    %cst_16 = arith.constant dense<0.000000e+00> : vector<16x64xf32>
    %30 = tpu.matmul %29, %28, %cst_16 {dimension_numbers = #tpu.dot_dimension_numbers<[1], [0], [0], [1], [0, 0, 1, 1], [], []>} : vector<16x64xf32>, vector<64x64xf32>, vector<16x64xf32> -> vector<16x64xf32>
    %31 = vector.extract_strided_slice %30 {offsets = [0, 0], sizes = [8, 64], strides = [1, 1]} : vector<16x64xf32> to vector<8x64xf32>
    %32 = vector.extract_strided_slice %30 {offsets = [8, 0], sizes = [8, 64], strides = [1, 1]} : vector<16x64xf32> to vector<8x64xf32>
    %c0_17 = arith.constant 0 : index
    %c0_18 = arith.constant 0 : index
    %33 = vector.load %arg6[%c0_17, %c0_18] : memref<2x8xf32, #tpu.memory_space<vmem>>, vector<2x8xf32>
    %cst_19 = arith.constant dense<0.000000e+00> : vector<2x64xf32>
    %34 = tpu.matmul %33, %31, %cst_19 {dimension_numbers = #tpu.dot_dimension_numbers<[1], [0], [0], [1], [0, 0, 1, 1], [], []>} : vector<2x8xf32>, vector<8x64xf32>, vector<2x64xf32> -> vector<2x64xf32>
    %35 = arith.mulf %32, %32 : vector<8x64xf32>
    %cst_20 = arith.constant dense<0.000000e+00> : vector<8xf32>
    %36 = vector.multi_reduction <add>, %35, %cst_20 [1] : vector<8x64xf32> to vector<8xf32>
    %37 = vector.shape_cast %36 : vector<8xf32> to vector<8x1xf32>
    %cst_21 = arith.constant dense<0.000000e+00> : vector<8x2xf32>
    %38 = tpu.matmul %32, %34, %cst_21 {dimension_numbers = #tpu.dot_dimension_numbers<[1], [1], [0], [0], [0, 0, 1, 0], [], []>} : vector<8x64xf32>, vector<2x64xf32>, vector<8x2xf32> -> vector<8x2xf32>
    %cst_22 = arith.constant 1.000000e+00 : f32
    %39 = vector.broadcast %cst_22 : f32 to vector<1x64xf32>
    %40 = arith.mulf %34, %34 : vector<2x64xf32>
    %cst_23 = arith.constant dense<0.000000e+00> : vector<1x2xf32>
    %41 = tpu.matmul %39, %40, %cst_23 {dimension_numbers = #tpu.dot_dimension_numbers<[1], [1], [0], [0], [0, 0, 1, 0], [], []>} : vector<1x64xf32>, vector<2x64xf32>, vector<1x2xf32> -> vector<1x2xf32>
    %cst_24 = arith.constant 2.000000e+00 : f32
    %42 = vector.broadcast %cst_24 : f32 to vector<8x2xf32>
    %43 = arith.mulf %42, %38 : vector<8x2xf32>
    %44 = vector.broadcast %37 : vector<8x1xf32> to vector<8x2xf32>
    %45 = arith.subf %43, %44 : vector<8x2xf32>
    %46 = vector.broadcast %41 : vector<1x2xf32> to vector<8x2xf32>
    %47 = arith.subf %45, %46 : vector<8x2xf32>
    %cst_25 = arith.constant dense<0xFF800000> : vector<8xf32>
    %48 = vector.multi_reduction <maximumf>, %47, %cst_25 [1] : vector<8x2xf32> to vector<8xf32>
    %49 = vector.shape_cast %48 : vector<8xf32> to vector<8x1xf32>
    %50 = vector.broadcast %49 : vector<8x1xf32> to vector<8x2xf32>
    %51 = arith.subf %47, %50 : vector<8x2xf32>
    %52 = math.exp %51 : vector<8x2xf32>
    %cst_26 = arith.constant dense<0.000000e+00> : vector<8xf32>
    %53 = vector.multi_reduction <add>, %52, %cst_26 [1] : vector<8x2xf32> to vector<8xf32>
    %54 = vector.shape_cast %53 : vector<8xf32> to vector<8x1xf32>
    %55 = math.log %54 : vector<8x1xf32>
    %56 = vector.broadcast %55 : vector<8x1xf32> to vector<8x2xf32>
    %57 = arith.subf %51, %56 : vector<8x2xf32>
    %c0_27 = arith.constant 0 : index
    %c0_28 = arith.constant 0 : index
    %58 = vector.load %arg7[%c0_27, %c0_28] : memref<8x2xf32, #tpu.memory_space<vmem>>, vector<8x2xf32>
    tpu.vector_store %arg7[%c0_27, %c0_28], %57 {strides = array<i32>} : memref<8x2xf32, #tpu.memory_space<vmem>>, vector<8x2xf32>,
    return
  }
}

</mosaic_0001>

<bundles_post_ra>
// kernel: proto_model_forward.4
= control target key start
LH: loop header
LB: loop body
LE: loop exit
PB: predicated region body
PF: predicated region fallthrough
CT: control target
= control target key end

     0   :  { %v1220_v0 = vmov 0.0   ;;  %v1222_v1 = vmov 0.0   ;;  %s1224_s18 = smov 0   ;;  %s1727_s0 = inlined_call_operand.vmem [shape: bf16[4096,27], index: 0, kind: input, shape index: {}]   ;;  %s1728_s1 = inlined_call_operand.vmem [shape: bf16[27,64], index: 1, kind: input, shape index: {}]   ;;  %s1729_s2 = inlined_call_operand.vmem [shape: f32[1,64], index: 2, kind: input, shape index: {}]   ;;  %s1730_s3 = inlined_call_operand.vmem [shape: f32[1,64], index: 3, kind: input, shape index: {}]   ;;  %s1731_s4 = inlined_call_operand.vmem [shape: f32[1,64], index: 4, kind: input, shape index: {}]   ;;  %s1732_s5 = inlined_call_operand.vmem [shape: bf16[4096,64], index: 5, kind: output, shape index: {}]  }
   0x1 LB: > { %v1137_v2 = vld [vmem:[%s1728_s1] sm:$0xff]   ;;  %vm217_vm0 = vcmask 1044480   ;;  %v1138_v3 = vld [vmem:[%s1728_s1 + $0x8] sm:$0x3f]   ;;  %vm218_vm1 = vcmask 1045504   ;;  %s943_s23 = sshll.u32 %s1183_s18, 8  ;;  %s1183_s18 = sphi %s1224_s18, %s26_s18   ;;  %v1179_v1 = vphi %v1222_v1, %v1734_v1   ;;  %v1175_v0 = vphi %v1220_v0, %v1733_v0  }
   0x2   : > { %1064 = vmatprep.subr.bf16.mxu0 %v1137_v2  ;;  %1100 = vmatprep.subr.bf16.mxu1 %v1137_v2  ;;  %v1189_v4 = vmov 65535   ;;  %s30_s24 = sshra.s32 %s943_s23, 3  ;;  %vm168_vm2 = vcmask 220160   ;;  %v1284_v24 = vld [vmem:[%s1729_s2] ss:$0 sm:$0xff]  ;;  %vm386_vm3 = vcmask 523264  }
   0x3   : > { %1065 = vmatpush3.bf16.msra.mxu0 %v1137_v2  ;;  %v219_v5 = vsel %vm217_vm0, 4294967295, %v1189_v4  ;;  %1102 = vmatpush3.bf16.msra.mxu1 %v1137_v2  ;;  %s944_s25 = sshll.u32 %s30_s24, 2  ;;  %s1290_s6 = scalar_lea.vmem [#allocation2], %s943_s23 }
   0x4   : > { %v220_v6 = vsel %vm218_vm1, %v219_v5, 0  ;;  %s1247_s28 = scalar_lea.vmem %s1727_s0, %s944_s25  ;;  %s26_s18 = sadd.s32 1, %s1183_s18  }
   0x5   : > { %v222_v7 = vand.u32 %v1138_v3, %v220_v6  ;;  %v1139_v8 = vld [vmem:[%s1247_s28] sm:$0xff]   ;;  %v1140_v9 = vld [vmem:[%s1247_s28 + $0x8] sm:$0xff]   ;;  %v1141_v10 = vld [vmem:[%s1247_s28 + $0x10] sm:$0xff]   ;;  %p23_p0 = scmp.ge.s32.totalorder %s26_s18, 16  }
   0x6   : > { %1068 = vmatprep.mubr.msk.bf16.mxu0 %vm168_vm2, %v1139_v8  ;;  %v1142_v11 = vld [vmem:[%s1247_s28 + $0x18] sm:$0xff]   ;;  %v1143_v12 = vld [vmem:[%s1247_s28 + $0x20] sm:$0xff]   ;;  %v1148_v14 = vld [vmem:[%s1247_s28 + $0x48] sm:$0xff]   ;;  %s1543_s0 = smov (%p23_p0), 0  }
   0x7   : > { %1066 = vmatprep.subr.bf16.mxu0 %v222_v7  ;;  %1101 = vmatprep.subr.bf16.mxu1 %v222_v7  ;;  %v1147_v13 = vld [vmem:[%s1247_s28 + $0x40] sm:$0xff]   ;;  %v1149_v15 = vld [vmem:[%s1247_s28 + $0x50] sm:$0xff]   ;;  %v1150_v16 = vld [vmem:[%s1247_s28 + $0x58] sm:$0xff]  }
   0x8   : > { %1067 = vmatpush3.bf16.msra.mxu0 %v222_v7  ;;  %1103 = vmatpush3.bf16.msra.mxu1 %v222_v7  ;;  %v1151_v17 = vld [vmem:[%s1247_s28 + $0x60] sm:$0xff]   ;;  %v1144_v18 = vld [vmem:[%s1247_s28 + $0x28] sm:$0xff]   ;;  %v1145_v19 = vld [vmem:[%s1247_s28 + $0x30] sm:$0xff]  }
   0x9   : > { %1084 = vmatprep.mubr.msk.bf16.mxu1 %vm168_vm2, %v1147_v13  ;;  %v1152_v20 = vld [vmem:[%s1247_s28 + $0x68] sm:$0xff]   ;;  %v1153_v21 = vld [vmem:[%s1247_s28 + $0x70] sm:$0xff]   ;;  %v1146_v22 = vld [vmem:[%s1247_s28 + $0x38] sm:$0xff]  }
   0xa   : > { %v1154_v23 = vld [vmem:[%s1247_s28 + $0x78] sm:$0xff]  }
   0xb   : > { %1069 = vmatmul.mubr.msk.bf16.vlgmr.msra.gmra.mrb[0].mxu0 %vm168_vm2, %v1140_v9  ;;  %1085 = vmatmul.mubr.msk.bf16.vlgmr.msra.gmra.mrb[0].mxu1 %vm168_vm2, %v1148_v14 }
   0xc   : > { %1072 = vmatprep.mubr.msk.bf16.mxu0 %vm168_vm2, %v1141_v10  ;;  %1088 = vmatprep.mubr.msk.bf16.mxu1 %vm168_vm2, %v1149_v15 }
  0x13   : > { %1073 = vmatmul.mubr.msk.bf16.gmra.mrb[4].mxu0 %vm168_vm2, %v1142_v11  ;;  %1089 = vmatmul.mubr.msk.bf16.gmra.mrb[4].mxu1 %vm168_vm2, %v1150_v16 }
  0x14   : > { %1076 = vmatprep.mubr.msk.bf16.mxu0 %vm168_vm2, %v1143_v12  ;;  %1092 = vmatprep.mubr.msk.bf16.mxu1 %vm168_vm2, %v1151_v17 }
  0x1b   : > { %1077 = vmatmul.mubr.msk.bf16.gmra.mrb[8].mxu0 %vm168_vm2, %v1144_v18  ;;  %1093 = vmatmul.mubr.msk.bf16.gmra.mrb[8].mxu1 %vm168_vm2, %v1152_v20 }
  0x1c   : > { %1080 = vmatprep.mubr.msk.bf16.mxu0 %vm168_vm2, %v1145_v19  ;;  %1096 = vmatprep.mubr.msk.bf16.mxu1 %vm168_vm2, %v1153_v21 }
  0x23   : > { %1081 = vmatmul.mubr.msk.bf16.gmra.mrb[12].mxu0 %vm168_vm2, %v1146_v22  ;;  %1097 = vmatmul.mubr.msk.bf16.gmra.mrb[12].mxu1 %vm168_vm2, %v1154_v23 }
  0xde   : > { %v1070_v25 = vpop.f32.mrb[0].mxu0  ;;  %v1086_v38 = vpop.f32.mrb[0].mxu1 }
  0xdf   : > { %v267_v26 = vadd.f32 %v1070_v25, %v1284_v24  ;;  %v258_v27 = vpop.f32.mrb[1].mxu0  ;;  %v1305_v41 = vadd.f32 %v1086_v38, %v1284_v24  ;;  %v322_v42 = vpop.f32.mrb[1].mxu1 }
  0xe0   : > { %v259_v28 = vadd.f32 %v1284_v24, %v258_v27  ;;  %v1071_v29 = vpop.f32.mrb[2].mxu0  ;;  %v1311_v47 = vadd.f32 %v1284_v24, %v322_v42  ;;  %v1087_v48 = vpop.f32.mrb[2].mxu1 }
  0xe1   : > { %389 = vst.msk [vmem:[%s1290_s6 + $0x10] sm:$0xff] %vm386_vm3, %v267_v26  ;;  %v270_v30 = vadd.f32 %v1071_v29, %v1284_v24  ;;  %v261_v31 = vpop.f32.mrb[3].mxu0  ;;  %v491_v34 = vmul.f32 %v267_v26, %v267_v26  ;;  %v422_v43 = vsel %vm386_vm3, %v267_v26, 0.0  ;;  %405 = vst.msk [vmem:[%s1290_s6 + $0x90] sm:$0xff] %vm386_vm3, %v1305_v41  ;;  %v325_v53 = vpop.f32.mrb[3].mxu1  ;;  %v1339_v17 = vadd.f32 %v1087_v48, %v1284_v24 }
  0xe2   : > { %387 = vst.msk [vmem:[%s1290_s6] sm:$0xff] %vm386_vm3, %v259_v28  ;;  %v489_v32 = vmul.f32 %v259_v28, %v259_v28  ;;  %v262_v33 = vadd.f32 %v1284_v24, %v261_v31  ;;  %v419_v35 = vsel %vm386_vm3, %v259_v28, 0.0  ;;  %403 = vst.msk [vmem:[%s1290_s6 + $0x80] sm:$0xff] %vm386_vm3, %v1311_v47  ;;  %v1342_v18 = vadd.f32 %v1284_v24, %v325_v53 }
  0xe3   : > { %390 = vst.msk [vmem:[%s1290_s6 + $0x18] sm:$0xff] %vm386_vm3, %v270_v30  ;;  %v492_v39 = vmul.f32 %v270_v30, %v270_v30  ;;  %v524_v54 = vsel %vm386_vm3, %v491_v34, 0.0  ;;  %v424_v55 = vsel %vm386_vm3, %v270_v30, 0.0  ;;  %406 = vst.msk [vmem:[%s1290_s6 + $0x98] sm:$0xff] %vm386_vm3, %v1339_v17 }
  0xe4   : > { %388 = vst.msk [vmem:[%s1290_s6 + $0x8] sm:$0xff] %vm386_vm3, %v262_v33  ;;  %v420_v36 = vsel %vm386_vm3, %v262_v33, 0.0  ;;  %v490_v37 = vmul.f32 %v262_v33, %v262_v33  ;;  %v521_v44 = vsel %vm386_vm3, %v489_v32, 0.0  ;;  %404 = vst.msk [vmem:[%s1290_s6 + $0x88] sm:$0xff] %vm386_vm3, %v1342_v18 }
  0xe5   : > { %v421_v40 = vadd.f32 %v420_v36, %v419_v35  ;;  %v526_v58 = vsel %vm386_vm3, %v492_v39, 0.0 }
  0xe6   : > { %v522_v45 = vsel %vm386_vm3, %v490_v37, 0.0  ;;  %v1074_v46 = vpop.f32.mrb[4].mxu0  ;;  %v1090_v9 = vpop.f32.mrb[4].mxu1 }
  0xe7   : > { %v423_v49 = vadd.f32 %v422_v43, %v421_v40  ;;  %v523_v50 = vadd.f32 %v522_v45, %v521_v44  ;;  %v283_v51 = vadd.f32 %v1074_v46, %v1284_v24  ;;  %v274_v52 = vpop.f32.mrb[5].mxu0  ;;  %v338_v14 = vpop.f32.mrb[5].mxu1  ;;  %v1345_v19 = vadd.f32 %v1090_v9, %v1284_v24 }
  0xe8   : > { %v275_v56 = vadd.f32 %v1284_v24, %v274_v52  ;;  %v1075_v57 = vpop.f32.mrb[6].mxu0  ;;  %v1347_v20 = vpop.f32.mrb[6].mxu1  ;;  %v1352_v26 = vadd.f32 %v1284_v24, %v338_v14  ;;  %v505_v14 = vmul.f32 %v1311_v47, %v1311_v47 }
  0xe9   : > { %v525_v59 = vadd.f32 %v524_v54, %v523_v50  ;;  %393 = vst.msk [vmem:[%s1290_s6 + $0x30] sm:$0xff] %vm386_vm3, %v283_v51  ;;  %v425_v60 = vadd.f32 %v424_v55, %v423_v49  ;;  %v277_v61 = vpop.f32.mrb[7].mxu0  ;;  %v286_v2 = vadd.f32 %v1075_v57, %v1284_v24  ;;  %v430_v6 = vsel %vm386_vm3, %v283_v51, 0.0  ;;  %v1354_v27 = vpop.f32.mrb[7].mxu1  ;;  %409 = vst.msk [vmem:[%s1290_s6 + $0xb0] sm:$0xff] %vm386_vm3, %v1345_v19 }
  0xea   : > { %391 = vst.msk [vmem:[%s1290_s6 + $0x20] sm:$0xff] %vm386_vm3, %v275_v56  ;;  %v426_v62 = vsel %vm386_vm3, %v275_v56, 0.0  ;;  %v493_v63 = vmul.f32 %v275_v56, %v275_v56  ;;  %v278_v3 = vadd.f32 %v1284_v24, %v277_v61  ;;  %v495_v10 = vmul.f32 %v283_v51, %v283_v51  ;;  %407 = vst.msk [vmem:[%s1290_s6 + $0xa0] sm:$0xff] %vm386_vm3, %v1352_v26 }
  0xeb   : > { %v427_v4 = vadd.f32 %v426_v62, %v425_v60  ;;  %v527_v5 = vadd.f32 %v526_v58, %v525_v59  ;;  %394 = vst.msk [vmem:[%s1290_s6 + $0x38] sm:$0xff] %vm386_vm3, %v286_v2  ;;  %v496_v15 = vmul.f32 %v286_v2, %v286_v2  ;;  %v432_v28 = vsel %vm386_vm3, %v286_v2, 0.0 }
  0xec   : > { %v528_v7 = vsel %vm386_vm3, %v493_v63, 0.0  ;;  %392 = vst.msk [vmem:[%s1290_s6 + $0x28] sm:$0xff] %vm386_vm3, %v278_v3  ;;  %v428_v8 = vsel %vm386_vm3, %v278_v3, 0.0  ;;  %v494_v13 = vmul.f32 %v278_v3, %v278_v3  ;;  %v532_v32 = vsel %vm386_vm3, %v495_v10, 0.0 }
  0xed   : > { %v529_v11 = vadd.f32 %v528_v7, %v527_v5  ;;  %v429_v12 = vadd.f32 %v428_v8, %v427_v4  ;;  %v534_v40 = vsel %vm386_vm3, %v496_v15, 0.0 }
  0xee   : > { %v1078_v16 = vpop.f32.mrb[8].mxu0  ;;  %v530_v22 = vsel %vm386_vm3, %v494_v13, 0.0  ;;  %v1094_v48 = vpop.f32.mrb[8].mxu1 }
  0xef   : > { %v431_v21 = vadd.f32 %v430_v6, %v429_v12  ;;  %v299_v23 = vadd.f32 %v1078_v16, %v1284_v24  ;;  %v290_v25 = vpop.f32.mrb[9].mxu0  ;;  %v531_v29 = vadd.f32 %v530_v22, %v529_v11  ;;  %v354_v51 = vpop.f32.mrb[9].mxu1 }
  0xf0   : > { %v291_v30 = vadd.f32 %v1284_v24, %v290_v25  ;;  %v1079_v31 = vpop.f32.mrb[10].mxu0  ;;  %v1095_v56 = vpop.f32.mrb[10].mxu1 }
  0xf1   : > { %397 = vst.msk [vmem:[%s1290_s6 + $0x50] sm:$0xff] %vm386_vm3, %v299_v23  ;;  %v433_v33 = vadd.f32 %v432_v28, %v431_v21  ;;  %v302_v34 = vadd.f32 %v1079_v31, %v1284_v24  ;;  %v293_v35 = vpop.f32.mrb[11].mxu0  ;;  %v533_v36 = vadd.f32 %v532_v32, %v531_v29  ;;  %v499_v49 = vmul.f32 %v299_v23, %v299_v23  ;;  %v357_v61 = vpop.f32.mrb[11].mxu1 }
  0xf2   : > { %395 = vst.msk [vmem:[%s1290_s6 + $0x40] sm:$0xff] %vm386_vm3, %v291_v30  ;;  %v434_v37 = vsel %vm386_vm3, %v291_v30, 0.0  ;;  %v497_v38 = vmul.f32 %v291_v30, %v291_v30  ;;  %v294_v39 = vadd.f32 %v1284_v24, %v293_v35  ;;  %v438_v52 = vsel %vm386_vm3, %v299_v23, 0.0 }
  0xf3   : > { %v435_v42 = vadd.f32 %v434_v37, %v433_v33  ;;  %398 = vst.msk [vmem:[%s1290_s6 + $0x58] sm:$0xff] %vm386_vm3, %v302_v34  ;;  %v535_v43 = vadd.f32 %v534_v40, %v533_v36  ;;  %v500_v57 = vmul.f32 %v302_v34, %v302_v34  ;;  %v440_v62 = vsel %vm386_vm3, %v302_v34, 0.0 }
  0xf4   : > { %v536_v44 = vsel %vm386_vm3, %v497_v38, 0.0  ;;  %396 = vst.msk [vmem:[%s1290_s6 + $0x48] sm:$0xff] %vm386_vm3, %v294_v39  ;;  %v436_v45 = vsel %vm386_vm3, %v294_v39, 0.0  ;;  %v498_v46 = vmul.f32 %v294_v39, %v294_v39  ;;  %v540_v4 = vsel %vm386_vm3, %v499_v49, 0.0 }
  0xf5   : > { %v437_v50 = vadd.f32 %v436_v45, %v435_v42  ;;  %v537_v53 = vadd.f32 %v536_v44, %v535_v43  ;;  %v542_v12 = vsel %vm386_vm3, %v500_v57, 0.0  ;;  %v1411_v34 = vadd.f32 %v1347_v20, %v1284_v24 }
  0xf6   : > { %v538_v54 = vsel %vm386_vm3, %v498_v46, 0.0  ;;  %v1082_v55 = vpop.f32.mrb[12].mxu0  ;;  %v1098_v23 = vpop.f32.mrb[12].mxu1  ;;  %v342_v35 = vadd.f32 %v1284_v24, %v1354_v27  ;;  %v1416_v38 = vadd.f32 %v1094_v48, %v1284_v24  ;;  %v1419_v39 = vadd.f32 %v1284_v24, %v354_v51 }
  0xf7   : > { %v439_v58 = vadd.f32 %v438_v52, %v437_v50  ;;  %v315_v59 = vadd.f32 %v1082_v55, %v1284_v24  ;;  %v306_v60 = vpop.f32.mrb[13].mxu0  ;;  %v539_v63 = vadd.f32 %v538_v54, %v537_v53  ;;  %v370_v31 = vpop.f32.mrb[13].mxu1  ;;  %v1422_v40 = vadd.f32 %v1095_v56, %v1284_v24  ;;  %410 = vst.msk [vmem:[%s1290_s6 + $0xb8] sm:$0xff] %vm386_vm3, %v1411_v34 }
  0xf8   : > { %v307_v2 = vadd.f32 %v1284_v24, %v306_v60  ;;  %v1083_v3 = vpop.f32.mrb[14].mxu0  ;;  %v1099_v36 = vpop.f32.mrb[14].mxu1  ;;  %v450_v44 = vsel %vm386_vm3, %v1311_v47, 0.0  ;;  %408 = vst.msk [vmem:[%s1290_s6 + $0xa8] sm:$0xff] %vm386_vm3, %v342_v35  ;;  %413 = vst.msk [vmem:[%s1290_s6 + $0xd0] sm:$0xff] %vm386_vm3, %v1416_v38  ;;  %v507_v47 = vmul.f32 %v1305_v41, %v1305_v41  ;;  %v506_v48 = vmul.f32 %v1342_v18, %v1342_v18 }
  0xf9   : > { %401 = vst.msk [vmem:[%s1290_s6 + $0x70] sm:$0xff] %vm386_vm3, %v315_v59  ;;  %v441_v5 = vadd.f32 %v440_v62, %v439_v58  ;;  %v318_v6 = vadd.f32 %v1083_v3, %v1284_v24  ;;  %v309_v7 = vpop.f32.mrb[15].mxu0  ;;  %v541_v8 = vadd.f32 %v540_v4, %v539_v63  ;;  %v446_v25 = vsel %vm386_vm3, %v315_v59, 0.0  ;;  %v373_v42 = vpop.f32.mrb[15].mxu1  ;;  %411 = vst.msk [vmem:[%s1290_s6 + $0xc0] sm:$0xff] %vm386_vm3, %v1419_v39 }
  0xfa   : > { %399 = vst.msk [vmem:[%s1290_s6 + $0x60] sm:$0xff] %vm386_vm3, %v307_v2  ;;  %v442_v9 = vsel %vm386_vm3, %v307_v2, 0.0  ;;  %v501_v10 = vmul.f32 %v307_v2, %v307_v2  ;;  %v310_v11 = vadd.f32 %v1284_v24, %v309_v7  ;;  %v503_v28 = vmul.f32 %v315_v59, %v315_v59  ;;  %414 = vst.msk [vmem:[%s1290_s6 + $0xd8] sm:$0xff] %vm386_vm3, %v1422_v40 }
  0xfb   : > { %v443_v13 = vadd.f32 %v442_v9, %v441_v5  ;;  %402 = vst.msk [vmem:[%s1290_s6 + $0x78] sm:$0xff] %vm386_vm3, %v318_v6  ;;  %v543_v15 = vadd.f32 %v542_v12, %v541_v8  ;;  %v504_v29 = vmul.f32 %v318_v6, %v318_v6  ;;  %v448_v20 = vsel %vm386_vm3, %v318_v6, 0.0 }
  0xfc   : > { %v544_v16 = vsel %vm386_vm3, %v501_v10, 0.0  ;;  %400 = vst.msk [vmem:[%s1290_s6 + $0x68] sm:$0xff] %vm386_vm3, %v310_v11  ;;  %v444_v21 = vsel %vm386_vm3, %v310_v11, 0.0  ;;  %v502_v22 = vmul.f32 %v310_v11, %v310_v11  ;;  %v548_v27 = vsel %vm386_vm3, %v503_v28, 0.0 }
  0xfd   : > { %v445_v30 = vadd.f32 %v444_v21, %v443_v13  ;;  %v545_v32 = vadd.f32 %v544_v16, %v543_v15  ;;  %v550_v49 = vsel %vm386_vm3, %v504_v29, 0.0  ;;  %v552_v51 = vsel %vm386_vm3, %v505_v14, 0.0 }
  0xfe   : > { %v546_v33 = vsel %vm386_vm3, %v502_v22, 0.0  ;;  %v454_v52 = vsel %vm386_vm3, %v1305_v41, 0.0  ;;  %v452_v54 = vsel %vm386_vm3, %v1342_v18, 0.0  ;;  %v358_v55 = vadd.f32 %v1284_v24, %v357_v61 }
  0xff   : > { %v447_v37 = vadd.f32 %v446_v25, %v445_v30  ;;  %v547_v43 = vadd.f32 %v546_v33, %v545_v32  ;;  %v379_v57 = vadd.f32 %v1098_v23, %v1284_v24  ;;  %v371_v58 = vadd.f32 %v1284_v24, %v370_v31 }
 0x100   : > { %v382_v59 = vadd.f32 %v1099_v36, %v1284_v24  ;;  %v556_v60 = vsel %vm386_vm3, %v507_v47, 0.0  ;;  %v508_v41 = vmul.f32 %v1339_v17, %v1339_v17  ;;  %v554_v63 = vsel %vm386_vm3, %v506_v48, 0.0  ;;  %412 = vst.msk [vmem:[%s1290_s6 + $0xc8] sm:$0xff] %vm386_vm3, %v358_v55 }
 0x101   : > { %v449_v45 = vadd.f32 %v448_v20, %v447_v37  ;;  %v549_v46 = vadd.f32 %v548_v27, %v547_v43  ;;  %v509_v61 = vmul.f32 %v1352_v26, %v1352_v26  ;;  %417 = vst.msk [vmem:[%s1290_s6 + $0xf0] sm:$0xff] %vm386_vm3, %v379_v57  ;;  %v1467_v2 = vsel %vm386_vm3, %v379_v57, 0.0  ;;  %415 = vst.msk [vmem:[%s1290_s6 + $0xe0] sm:$0xff] %vm386_vm3, %v371_v58 }
 0x102   : > { %v519_v3 = vmul.f32 %v379_v57, %v379_v57  ;;  %418 = vst.msk [vmem:[%s1290_s6 + $0xf8] sm:$0xff] %vm386_vm3, %v382_v59  ;;  %v456_v4 = vsel %vm386_vm3, %v1339_v17, 0.0  ;;  %v458_v6 = vsel %vm386_vm3, %v1352_v26, 0.0  ;;  %v480_v7 = vsel %vm386_vm3, %v382_v59, 0.0 }
 0x103   : > { %v451_v50 = vadd.f32 %v450_v44, %v449_v45  ;;  %v551_v53 = vadd.f32 %v550_v49, %v549_v46  ;;  %v520_v10 = vmul.f32 %v382_v59, %v382_v59  ;;  %v374_v11 = vadd.f32 %v1284_v24, %v373_v42 }
 0x104   : > { %v580_v9 = vsel %vm386_vm3, %v519_v3, 0.0  ;;  %v558_v12 = vsel %vm386_vm3, %v508_v41, 0.0  ;;  %v560_v15 = vsel %vm386_vm3, %v509_v61, 0.0  ;;  %v510_v16 = vmul.f32 %v342_v35, %v342_v35 }
 0x105   : > { %v453_v56 = vadd.f32 %v452_v54, %v451_v50  ;;  %v553_v62 = vadd.f32 %v552_v51, %v551_v53  ;;  %v582_v17 = vsel %vm386_vm3, %v520_v10, 0.0  ;;  %416 = vst.msk [vmem:[%s1290_s6 + $0xe8] sm:$0xff] %vm386_vm3, %v374_v11  ;;  %v460_v21 = vsel %vm386_vm3, %v342_v35, 0.0 }
 0x106   : > { %v511_v22 = vmul.f32 %v1345_v19, %v1345_v19  ;;  %v462_v24 = vsel %vm386_vm3, %v1345_v19, 0.0  ;;  %v512_v28 = vmul.f32 %v1411_v34, %v1411_v34  ;;  %v562_v30 = vsel %vm386_vm3, %v510_v16, 0.0 }
 0x107   : > { %v455_v18 = vadd.f32 %v454_v52, %v453_v56  ;;  %v555_v5 = vadd.f32 %v554_v63, %v553_v62  ;;  %v513_v31 = vmul.f32 %v1419_v39, %v1419_v39  ;;  %v464_v32 = vsel %vm386_vm3, %v1411_v34, 0.0 }
 0x108   : > { %v466_v35 = vsel %vm386_vm3, %v1419_v39, 0.0  ;;  %v564_v36 = vsel %vm386_vm3, %v511_v22, 0.0  ;;  %v566_v42 = vsel %vm386_vm3, %v512_v28, 0.0  ;;  %v514_v44 = vmul.f32 %v358_v55, %v358_v55 }
 0x109   : > { %v457_v8 = vadd.f32 %v456_v4, %v455_v18  ;;  %v557_v13 = vadd.f32 %v556_v60, %v555_v5  ;;  %v568_v43 = vsel %vm386_vm3, %v513_v31, 0.0  ;;  %v468_v45 = vsel %vm386_vm3, %v358_v55, 0.0  ;;  %v1536_v31 = vld [vmem:[%s1731_s4] sm:$0x1] (%p23_p0) }
 0x10a   : > { %v515_v34 = vmul.f32 %v1416_v38, %v1416_v38  ;;  %v470_v39 = vsel %vm386_vm3, %v1416_v38, 0.0  ;;  %v516_v48 = vmul.f32 %v1422_v40, %v1422_v40  ;;  %v570_v50 = vsel %vm386_vm3, %v514_v44, 0.0 }
 0x10b   : > { %v459_v14 = vadd.f32 %v458_v6, %v457_v8  ;;  %v559_v26 = vadd.f32 %v558_v12, %v557_v13  ;;  %v517_v51 = vmul.f32 %v371_v58, %v371_v58  ;;  %v472_v52 = vsel %vm386_vm3, %v1422_v40, 0.0 }
 0x10c   : > { %v474_v54 = vsel %vm386_vm3, %v371_v58, 0.0  ;;  %v572_v55 = vsel %vm386_vm3, %v515_v34, 0.0  ;;  %v574_v38 = vsel %vm386_vm3, %v516_v48, 0.0  ;;  %v518_v62 = vmul.f32 %v374_v11, %v374_v11 }
 0x10d   : > { %v461_v23 = vadd.f32 %v460_v21, %v459_v14  ;;  %v561_v25 = vadd.f32 %v560_v15, %v559_v26  ;;  %v576_v60 = vsel %vm386_vm3, %v517_v51, 0.0  ;;  %v476_v63 = vsel %vm386_vm3, %v374_v11, 0.0 }
 0x10e   : > { %v578_v3 = vsel %vm386_vm3, %v518_v62, 0.0 }
 0x10f   : > { %v463_v29 = vadd.f32 %v462_v24, %v461_v23  ;;  %v563_v33 = vadd.f32 %v562_v30, %v561_v25 }
 0x111   : > { %v465_v19 = vadd.f32 %v464_v32, %v463_v29  ;;  %v565_v37 = vadd.f32 %v564_v36, %v563_v33 }
 0x113   : > { %v467_v20 = vadd.f32 %v466_v35, %v465_v19  ;;  %v567_v27 = vadd.f32 %v566_v42, %v565_v37 }
 0x115   : > { %v469_v46 = vadd.f32 %v468_v45, %v467_v20  ;;  %v569_v47 = vadd.f32 %v568_v43, %v567_v27 }
 0x117   : > { %v471_v49 = vadd.f32 %v470_v39, %v469_v46  ;;  %v571_v53 = vadd.f32 %v570_v50, %v569_v47 }
 0x119   : > { %v473_v56 = vadd.f32 %v472_v52, %v471_v49  ;;  %v573_v57 = vadd.f32 %v572_v55, %v571_v53 }
 0x11b   : > { %v475_v59 = vadd.f32 %v474_v54, %v473_v56  ;;  %v575_v41 = vadd.f32 %v574_v38, %v573_v57 }
 0x11d   : > { %v477_v18 = vadd.f32 %v476_v63, %v475_v59  ;;  %v577_v61 = vadd.f32 %v576_v60, %v575_v41 }
 0x11f   : > { %v479_v40 = vadd.f32 %v1467_v2, %v477_v18  ;;  %v579_v58 = vadd.f32 %v578_v3, %v577_v61 }
 0x121   : > { %v481_v4 = vadd.f32 %v480_v7, %v479_v40  ;;  %v581_v5 = vadd.f32 %v580_v9, %v579_v58 }
 0x123   : > { %v482_v6 = vrot.slane %v481_v4, 4  ;;  %v583_v8 = vadd.f32 %v582_v17, %v581_v5 }
 0x125   : > { %v483_v10 = vadd.f32 %v482_v6, %v481_v4  ;;  %v584_v12 = vrot.slane %v583_v8, 4 }
 0x127   : > { %v484_v13 = vrot.slane %v483_v10, 2  ;;  %v585_v14 = vadd.f32 %v584_v12, %v583_v8 }
 0x129   : > { %v485_v15 = vadd.f32 %v484_v13, %v483_v10  ;;  %v586_v16 = vrot.slane %v585_v14, 2 }
 0x12b   : > { %v486_v26 = vrot.slane %v485_v15, 1  ;;  %v587_v21 = vadd.f32 %v586_v16, %v585_v14 }
 0x12d   : > { %v487_v11 = vadd.f32 %v486_v26, %v485_v15  ;;  %v588_v22 = vrot.slane %v587_v21, 1  ;;  %25 = sbr.rel (!%p23_p0) target bundleno = 1 (0x1), region = 58 }
 0x12f   : > { %v488_v23 = vadd.f32 %v1179_v1, %v487_v11   ;;  %v589_v2 = vadd.f32 %v588_v22, %v587_v21 }
 0x131   : > { %v590_v24 = vadd.f32 %v1175_v0, %v589_v2   ;;  %v1734_v1 = vmov %v488_v23  ;;  %v591_v7 = vmul.f32 (%p23_p0), 0.00024414063, %v488_v23 }
 0x132   :  { %v595_v1 = vld [vmem:[%s1730_s3] sm:$0x1] (%p23_p0) }
 0x133   : > { %v1733_v0 = vmov %v590_v24  ;;  %v592_v9 = vmul.f32 (%p23_p0), 0.00024414063, %v590_v24  ;;  %v593_v17 = vmul.f32 (%p23_p0), %v591_v7, %v591_v7 }
 0x135   :  { %v594_v25 = vsub.f32 %v592_v9, %v593_v17 }
 0x137   :  { %v596_v28 = vadd.f32 1e-05, %v594_v25 }
 0x139   :  { %1155 = vrsqrt.f32 %v596_v28 }
 0x143   :  { %v1156_v29 = vpop.eup %1155 }
 0x144   :  { %v1531_v30 = vmul.f32 %v1156_v29, %v595_v1 }
 0x146   :  { %v1539_v32 = vmul.f32 %v1531_v30, %v591_v7 }
 0x148   :  { %v601_v0 = vsub.f32 %v1536_v31, %v1539_v32 }
 0x149 LB: > { %v643_v33 = vlaneseq  ;;  %s980_s1 = sshll.u32 %s1187_s0, 8  ;;  %vm882_vm4 = vcmask 519168   ;;  %s607_s0 = sadd.s32 1, %s1187_s0   ;;  %s1187_s0 = sphi %s1543_s0, %s607_s0  }
 0x14a   : > { %s1549_s2 = scalar_lea.vmem [#allocation2], %s980_s1  ;;  %s878_s3 = sshra.s32 %s980_s1, 3 }
 0x14b   : > { %v644_v35 = vshrl.u32 %v643_v33, 7  ;;  %v610_v36 = vld [vmem:[%s1549_s2] sm:$0xff]  ;;  %v611_v37 = vld [vmem:[%s1549_s2 + $0x8] sm:$0xff]  ;;  %v612_v42 = vld [vmem:[%s1549_s2 + $0x10] sm:$0xff]  ;;  %s1013_s4 = sshll.u32 %s878_s3, 2  ;;  %p604_p1 = scmp.ge.s32.totalorder %s607_s0, 16  }
 0x14c   : > { %v613_v20 = vld [vmem:[%s1549_s2 + $0x18] sm:$0xff]  ;;  %v614_v43 = vld [vmem:[%s1549_s2 + $0x20] sm:$0xff]  ;;  %v615_v45 = vld [vmem:[%s1549_s2 + $0x28] sm:$0xff]  ;;  %s1589_s13 = scalar_lea.vmem %s1732_s5, %s1013_s4 }
 0x14d   : > { %v645_v19 = vsub.s32 0, %v644_v35  ;;  %v616_v34 = vld [vmem:[%s1549_s2 + $0x30] sm:$0xff]  ;;  %v617_v46 = vld [vmem:[%s1549_s2 + $0x38] sm:$0xff]  ;;  %v618_v41 = vld [vmem:[%s1549_s2 + $0x40] sm:$0xff] }
 0x14e   : > { %v619_v3 = vld [vmem:[%s1549_s2 + $0x48] sm:$0xff]  ;;  %v620_v58 = vld [vmem:[%s1549_s2 + $0x50] sm:$0xff]  ;;  %v621_v10 = vld [vmem:[%s1549_s2 + $0x58] sm:$0xff] }
 0x14f   : > { %v1557_v44 = vrot.slane %v1531_v30, %v645_v19  ;;  %v1562_v27 = vrot.slane %v601_v0, %v645_v19  ;;  %v622_v12 = vld [vmem:[%s1549_s2 + $0x60] sm:$0xff]  ;;  %v623_v26 = vld [vmem:[%s1549_s2 + $0x68] sm:$0xff]  ;;  %v624_v21 = vld [vmem:[%s1549_s2 + $0x70] sm:$0xff] }
 0x150   : > { %v625_v11 = vld [vmem:[%s1549_s2 + $0x78] sm:$0xff] }
 0x151   : > { %v648_v39 = vmul.f32 %v1557_v44, %v610_v36  ;;  %v649_v47 = vmul.f32 %v1557_v44, %v611_v37  ;;  %v650_v48 = vmul.f32 %v1557_v44, %v612_v42  ;;  %v651_v49 = vmul.f32 %v1557_v44, %v613_v20 }
 0x152   : > { %v652_v50 = vmul.f32 %v1557_v44, %v614_v43  ;;  %v653_v51 = vmul.f32 %v1557_v44, %v615_v45  ;;  %v654_v52 = vmul.f32 %v1557_v44, %v616_v34  ;;  %v655_v53 = vmul.f32 %v1557_v44, %v617_v46  ;;  %v626_v34 = vld [vmem:[%s1549_s2 + $0x80] sm:$0xff] }
 0x153   : > { %v686_v54 = vadd.f32 %v1562_v27, %v648_v39  ;;  %v687_v55 = vadd.f32 %v1562_v27, %v649_v47  ;;  %v688_v56 = vadd.f32 %v1562_v27, %v650_v48  ;;  %v689_v57 = vadd.f32 %v1562_v27, %v651_v49  ;;  %v627_v49 = vld [vmem:[%s1549_s2 + $0x88] sm:$0xff] }
 0x154   : > { %v690_v38 = vadd.f32 %v1562_v27, %v652_v50  ;;  %v691_v59 = vadd.f32 %v1562_v27, %v653_v51  ;;  %v692_v60 = vadd.f32 %v1562_v27, %v654_v52  ;;  %v693_v62 = vadd.f32 %v1562_v27, %v655_v53  ;;  %v628_v50 = vld [vmem:[%s1549_s2 + $0x90] sm:$0xff] }
 0x155   : > { %v718_v63 = vmax.f32 %v686_v54, 0.0  ;;  %v719_v18 = vmax.f32 %v687_v55, 0.0  ;;  %v720_v61 = vmax.f32 %v688_v56, 0.0  ;;  %v721_v40 = vmax.f32 %v689_v57, 0.0  ;;  %v629_v55 = vld [vmem:[%s1549_s2 + $0x98] sm:$0xff]  ;;  %v630_v56 = vld [vmem:[%s1549_s2 + $0xa0] sm:$0xff] }
 0x156   : > { %v722_v4 = vmax.f32 %v690_v38, 0.0  ;;  %v723_v5 = vmax.f32 %v691_v59, 0.0  ;;  %v724_v6 = vmax.f32 %v692_v60, 0.0  ;;  %v725_v8 = vmax.f32 %v693_v62, 0.0  ;;  %v631_v62 = vld [vmem:[%s1549_s2 + $0xa8] sm:$0xff] }
 0x157   : > { %v1014_v13 = vpack.c.bf16 %v718_v63, %v718_v63  ;;  %v1015_v14 = vpack.c.bf16 %v719_v18, %v719_v18  ;;  %v1016_v15 = vpack.c.bf16 %v720_v61, %v720_v61  ;;  %v1017_v16 = vpack.c.bf16 %v721_v40, %v721_v40  ;;  %v633_v63 = vld [vmem:[%s1549_s2 + $0xb8] sm:$0xff] }
 0x158   : > { %v1018_v22 = vpack.c.bf16 %v722_v4, %v722_v4  ;;  %v1019_v23 = vpack.c.bf16 %v723_v5, %v723_v5  ;;  %v1020_v2 = vpack.c.bf16 %v724_v6, %v724_v6  ;;  %v1021_v24 = vpack.c.bf16 %v725_v8, %v725_v8 }
 0x159   : > { %883 = vst.msk [vmem:[%s1589_s13] sm:$0xf] %vm882_vm4, %v1014_v13  ;;  %884 = vst.msk [vmem:[%s1589_s13 + $0x4] sm:$0xf] %vm882_vm4, %v1015_v14  ;;  %v656_v7 = vmul.f32 %v1557_v44, %v618_v41  ;;  %v657_v9 = vmul.f32 %v1557_v44, %v619_v3  ;;  %v658_v17 = vmul.f32 %v1557_v44, %v620_v58  ;;  %v632_v41 = vld [vmem:[%s1549_s2 + $0xb0] sm:$0xff] }
 0x15a   : > { %885 = vst.msk [vmem:[%s1589_s13 + $0x8] sm:$0xf] %vm882_vm4, %v1016_v15  ;;  %886 = vst.msk [vmem:[%s1589_s13 + $0xc] sm:$0xf] %vm882_vm4, %v1017_v16  ;;  %v659_v25 = vmul.f32 %v1557_v44, %v621_v10  ;;  %v660_v28 = vmul.f32 %v1557_v44, %v622_v12  ;;  %v661_v1 = vmul.f32 %v1557_v44, %v623_v26 }
 0x15b   : > { %887 = vst.msk [vmem:[%s1589_s13 + $0x10] sm:$0xf] %vm882_vm4, %v1018_v22  ;;  %888 = vst.msk [vmem:[%s1589_s13 + $0x14] sm:$0xf] %vm882_vm4, %v1019_v23  ;;  %v662_v29 = vmul.f32 %v1557_v44, %v624_v21  ;;  %v663_v33 = vmul.f32 %v1557_v44, %v625_v11  ;;  %v694_v35 = vadd.f32 %v1562_v27, %v656_v7 }
 0x15c   : > { %889 = vst.msk [vmem:[%s1589_s13 + $0x18] sm:$0xf] %vm882_vm4, %v1020_v2  ;;  %890 = vst.msk [vmem:[%s1589_s13 + $0x1c] sm:$0xf] %vm882_vm4, %v1021_v24  ;;  %v695_v36 = vadd.f32 %v1562_v27, %v657_v9  ;;  %v696_v19 = vadd.f32 %v1562_v27, %v658_v17  ;;  %v697_v37 = vadd.f32 %v1562_v27, %v659_v25  ;;  %v634_v2 = vld [vmem:[%s1549_s2 + $0xc0] sm:$0xff]  ;;  %v635_v25 = vld [vmem:[%s1549_s2 + $0xc8] sm:$0xff] }
 0x15d   : > { %v698_v42 = vadd.f32 %v1562_v27, %v660_v28  ;;  %v699_v20 = vadd.f32 %v1562_v27, %v661_v1  ;;  %v700_v43 = vadd.f32 %v1562_v27, %v662_v29  ;;  %v701_v45 = vadd.f32 %v1562_v27, %v663_v33  ;;  %v636_v28 = vld [vmem:[%s1549_s2 + $0xd0] sm:$0xff] }
 0x15e   : > { %v726_v46 = vmax.f32 %v694_v35, 0.0  ;;  %v727_v39 = vmax.f32 %v695_v36, 0.0  ;;  %v728_v47 = vmax.f32 %v696_v19, 0.0  ;;  %v729_v48 = vmax.f32 %v697_v37, 0.0  ;;  %v637_v36 = vld [vmem:[%s1549_s2 + $0xd8] sm:$0xff]  ;;  %v638_v19 = vld [vmem:[%s1549_s2 + $0xe0] sm:$0xff] }
 0x15f   : > { %v730_v51 = vmax.f32 %v698_v42, 0.0  ;;  %v731_v52 = vmax.f32 %v699_v20, 0.0  ;;  %v732_v53 = vmax.f32 %v700_v43, 0.0  ;;  %v733_v54 = vmax.f32 %v701_v45, 0.0  ;;  %v639_v45 = vld [vmem:[%s1549_s2 + $0xe8] sm:$0xff] }
 0x160   : > { %v1022_v57 = vpack.c.bf16 %v726_v46, %v726_v46  ;;  %v1023_v38 = vpack.c.bf16 %v727_v39, %v727_v39  ;;  %v1024_v59 = vpack.c.bf16 %v728_v47, %v728_v47  ;;  %v1025_v60 = vpack.c.bf16 %v729_v48, %v729_v48  ;;  %v641_v46 = vld [vmem:[%s1549_s2 + $0xf8] sm:$0xff] }
 0x161   : > { %v1026_v18 = vpack.c.bf16 %v730_v51, %v730_v51  ;;  %v1027_v61 = vpack.c.bf16 %v731_v52, %v731_v52  ;;  %v1028_v40 = vpack.c.bf16 %v732_v53, %v732_v53  ;;  %v1029_v3 = vpack.c.bf16 %v733_v54, %v733_v54 }
 0x162   : > { %891 = vst.msk [vmem:[%s1589_s13 + $0x20] sm:$0xf] %vm882_vm4, %v1022_v57  ;;  %892 = vst.msk [vmem:[%s1589_s13 + $0x24] sm:$0xf] %vm882_vm4, %v1023_v38  ;;  %v664_v58 = vmul.f32 %v1557_v44, %v626_v34  ;;  %v665_v4 = vmul.f32 %v1557_v44, %v627_v49  ;;  %v666_v5 = vmul.f32 %v1557_v44, %v628_v50  ;;  %v640_v34 = vld [vmem:[%s1549_s2 + $0xf0] sm:$0xff] }
 0x163   : > { %893 = vst.msk [vmem:[%s1589_s13 + $0x28] sm:$0xf] %vm882_vm4, %v1024_v59  ;;  %894 = vst.msk [vmem:[%s1589_s13 + $0x2c] sm:$0xf] %vm882_vm4, %v1025_v60  ;;  %v667_v6 = vmul.f32 %v1557_v44, %v629_v55  ;;  %v668_v8 = vmul.f32 %v1557_v44, %v630_v56  ;;  %v669_v10 = vmul.f32 %v1557_v44, %v631_v62 }
 0x164   : > { %895 = vst.msk [vmem:[%s1589_s13 + $0x30] sm:$0xf] %vm882_vm4, %v1026_v18  ;;  %896 = vst.msk [vmem:[%s1589_s13 + $0x34] sm:$0xf] %vm882_vm4, %v1027_v61  ;;  %v670_v12 = vmul.f32 %v1557_v44, %v632_v41  ;;  %v671_v13 = vmul.f32 %v1557_v44, %v633_v63  ;;  %v702_v14 = vadd.f32 %v1562_v27, %v664_v58 }
 0x165   : > { %897 = vst.msk [vmem:[%s1589_s13 + $0x38] sm:$0xf] %vm882_vm4, %v1028_v40  ;;  %898 = vst.msk [vmem:[%s1589_s13 + $0x3c] sm:$0xf] %vm882_vm4, %v1029_v3  ;;  %v703_v15 = vadd.f32 %v1562_v27, %v665_v4  ;;  %v704_v16 = vadd.f32 %v1562_v27, %v666_v5  ;;  %v705_v26 = vadd.f32 %v1562_v27, %v667_v6 }
 0x166   : > { %v706_v21 = vadd.f32 %v1562_v27, %v668_v8  ;;  %v707_v11 = vadd.f32 %v1562_v27, %v669_v10  ;;  %v708_v22 = vadd.f32 %v1562_v27, %v670_v12  ;;  %v709_v23 = vadd.f32 %v1562_v27, %v671_v13 }
 0x167   : > { %v734_v24 = vmax.f32 %v702_v14, 0.0  ;;  %v735_v7 = vmax.f32 %v703_v15, 0.0  ;;  %v736_v9 = vmax.f32 %v704_v16, 0.0  ;;  %v737_v17 = vmax.f32 %v705_v26, 0.0 }
 0x168   : > { %v738_v1 = vmax.f32 %v706_v21, 0.0  ;;  %v739_v29 = vmax.f32 %v707_v11, 0.0  ;;  %v740_v33 = vmax.f32 %v708_v22, 0.0  ;;  %v741_v35 = vmax.f32 %v709_v23, 0.0 }
 0x169   : > { %v1030_v37 = vpack.c.bf16 %v734_v24, %v734_v24  ;;  %v1031_v42 = vpack.c.bf16 %v735_v7, %v735_v7  ;;  %v1032_v20 = vpack.c.bf16 %v736_v9, %v736_v9  ;;  %v1033_v43 = vpack.c.bf16 %v737_v17, %v737_v17 }
 0x16a   : > { %v1034_v39 = vpack.c.bf16 %v738_v1, %v738_v1  ;;  %v1035_v47 = vpack.c.bf16 %v739_v29, %v739_v29  ;;  %v1036_v48 = vpack.c.bf16 %v740_v33, %v740_v33  ;;  %v1037_v49 = vpack.c.bf16 %v741_v35, %v741_v35 }
 0x16b   : > { %899 = vst.msk [vmem:[%s1589_s13 + $0x40] sm:$0xf] %vm882_vm4, %v1030_v37  ;;  %900 = vst.msk [vmem:[%s1589_s13 + $0x44] sm:$0xf] %vm882_vm4, %v1031_v42  ;;  %v672_v50 = vmul.f32 %v1557_v44, %v634_v2  ;;  %v673_v51 = vmul.f32 %v1557_v44, %v635_v25  ;;  %v674_v52 = vmul.f32 %v1557_v44, %v636_v28 }
 0x16c   : > { %901 = vst.msk [vmem:[%s1589_s13 + $0x48] sm:$0xf] %vm882_vm4, %v1032_v20  ;;  %902 = vst.msk [vmem:[%s1589_s13 + $0x4c] sm:$0xf] %vm882_vm4, %v1033_v43  ;;  %v675_v53 = vmul.f32 %v1557_v44, %v637_v36  ;;  %v676_v54 = vmul.f32 %v1557_v44, %v638_v19  ;;  %v677_v55 = vmul.f32 %v1557_v44, %v639_v45 }
 0x16d   : > { %903 = vst.msk [vmem:[%s1589_s13 + $0x50] sm:$0xf] %vm882_vm4, %v1034_v39  ;;  %904 = vst.msk [vmem:[%s1589_s13 + $0x54] sm:$0xf] %vm882_vm4, %v1035_v47  ;;  %v678_v56 = vmul.f32 %v1557_v44, %v640_v34  ;;  %v679_v57 = vmul.f32 %v1557_v44, %v641_v46  ;;  %v710_v38 = vadd.f32 %v1562_v27, %v672_v50 }
 0x16e   : > { %905 = vst.msk [vmem:[%s1589_s13 + $0x58] sm:$0xf] %vm882_vm4, %v1036_v48  ;;  %906 = vst.msk [vmem:[%s1589_s13 + $0x5c] sm:$0xf] %vm882_vm4, %v1037_v49  ;;  %v711_v59 = vadd.f32 %v1562_v27, %v673_v51  ;;  %v712_v60 = vadd.f32 %v1562_v27, %v674_v52  ;;  %v713_v62 = vadd.f32 %v1562_v27, %v675_v53 }
 0x16f   : > { %v714_v41 = vadd.f32 %v1562_v27, %v676_v54  ;;  %v715_v63 = vadd.f32 %v1562_v27, %v677_v55  ;;  %v716_v18 = vadd.f32 %v1562_v27, %v678_v56  ;;  %v717_v61 = vadd.f32 %v1562_v27, %v679_v57 }
 0x170   : > { %v742_v40 = vmax.f32 %v710_v38, 0.0  ;;  %v743_v3 = vmax.f32 %v711_v59, 0.0  ;;  %v744_v44 = vmax.f32 %v712_v60, 0.0  ;;  %v745_v58 = vmax.f32 %v713_v62, 0.0 }
 0x171   : > { %v746_v4 = vmax.f32 %v714_v41, 0.0  ;;  %v747_v5 = vmax.f32 %v715_v63, 0.0  ;;  %v748_v6 = vmax.f32 %v716_v18, 0.0  ;;  %v749_v8 = vmax.f32 %v717_v61, 0.0  ;;  %606 = sbr.rel (!%p604_p1) target bundleno = 329 (0x149), region = 69 }
 0x172   : > { %v1038_v10 = vpack.c.bf16 %v742_v40, %v742_v40  ;;  %v1039_v12 = vpack.c.bf16 %v743_v3, %v743_v3  ;;  %v1040_v13 = vpack.c.bf16 %v744_v44, %v744_v44  ;;  %v1041_v27 = vpack.c.bf16 %v745_v58, %v745_v58 }
 0x173   : > { %v1042_v14 = vpack.c.bf16 %v746_v4, %v746_v4  ;;  %v1043_v15 = vpack.c.bf16 %v747_v5, %v747_v5  ;;  %v1044_v16 = vpack.c.bf16 %v748_v6, %v748_v6  ;;  %v1045_v26 = vpack.c.bf16 %v749_v8, %v749_v8 }
 0x174   : > { %907 = vst.msk [vmem:[%s1589_s13 + $0x60] sm:$0xf] %vm882_vm4, %v1038_v10  ;;  %908 = vst.msk [vmem:[%s1589_s13 + $0x64] sm:$0xf] %vm882_vm4, %v1039_v12 }
 0x175   : > { %909 = vst.msk [vmem:[%s1589_s13 + $0x68] sm:$0xf] %vm882_vm4, %v1040_v13  ;;  %910 = vst.msk [vmem:[%s1589_s13 + $0x6c] sm:$0xf] %vm882_vm4, %v1041_v27 }
 0x176   : > { %911 = vst.msk [vmem:[%s1589_s13 + $0x70] sm:$0xf] %vm882_vm4, %v1042_v14  ;;  %912 = vst.msk [vmem:[%s1589_s13 + $0x74] sm:$0xf] %vm882_vm4, %v1043_v15 }
 0x177   : > { %913 = vst.msk [vmem:[%s1589_s13 + $0x78] sm:$0xf] %vm882_vm4, %v1044_v16  ;;  %914 = vst.msk [vmem:[%s1589_s13 + $0x7c] sm:$0xf] %vm882_vm4, %v1045_v26 }

// kernel: proto_model_forward.5
= control target key start
LH: loop header
LB: loop body
LE: loop exit
PB: predicated region body
PF: predicated region fallthrough
CT: control target
= control target key end

     0   :  { %v1693_v0 = vmov 0.0   ;;  %v1695_v1 = vmov 0.0   ;;  %s1697_s18 = smov 0   ;;  %s2152_s0 = inlined_call_operand.vmem [shape: bf16[1024,576], index: 0, kind: input, shape index: {}]   ;;  %s2153_s1 = inlined_call_operand.vmem [shape: bf16[576,64], index: 1, kind: input, shape index: {}]   ;;  %s2154_s2 = inlined_call_operand.vmem [shape: f32[1,64], index: 2, kind: input, shape index: {}]   ;;  %s2155_s3 = inlined_call_operand.vmem [shape: f32[1,64], index: 3, kind: input, shape index: {}]   ;;  %s2156_s4 = inlined_call_operand.vmem [shape: f32[1,64], index: 4, kind: input, shape index: {}]   ;;  %s2157_s5 = inlined_call_operand.vmem [shape: bf16[1024,64], index: 5, kind: output, shape index: {}]  }
   0x1 LB: > { %v1537_v2 = vld [vmem:[%s2153_s1 + $0x40] sm:$0xff]   ;;  %v1541_v6 = vld [vmem:[%s2153_s1 + $0x48] sm:$0xff]   ;;  %v1545_v10 = vld [vmem:[%s2153_s1 + $0x50] sm:$0xff]   ;;  %s1211_s10 = sshll.u32 %s1657_s18, 7  ;;  %vm578_vm0 = vcmask 523264   ;;  %s26_s18 = sadd.s32 1, %s1657_s18   ;;  %s1657_s18 = sphi %s1697_s18, %s26_s18   ;;  %v1653_v1 = vphi %v1695_v1, %v2159_v1   ;;  %v1649_v0 = vphi %v1693_v0, %v2158_v0  }
   0x2   : > { %v1538_v3 = vld [vmem:[%s2153_s1 + $0xc0] sm:$0xff]   ;;  %1333 = vmatprep.subr.bf16.mxu0 %v1537_v2  ;;  %v1542_v7 = vld [vmem:[%s2153_s1 + $0xc8] sm:$0xff]   ;;  %v1546_v11 = vld [vmem:[%s2153_s1 + $0xd0] sm:$0xff]   ;;  %s30_s17 = sshra.s32 %s1211_s10, 3  ;;  %s1921_s28 = scalar_lea.vmem [#allocation2], %s1211_s10 }
   0x3   : > { %v1539_v4 = vld [vmem:[%s2153_s1] sm:$0xff]   ;;  %1397 = vmatprep.subr.bf16.mxu1 %v1538_v3  ;;  %v1543_v8 = vld [vmem:[%s2153_s1 + $0x8] sm:$0xff]   ;;  %v1547_v12 = vld [vmem:[%s2153_s1 + $0x10] sm:$0xff]   ;;  %s1316_s25 = smul.u32 20, %s30_s17  ;;  %p23_p0 = scmp.ge.s32.totalorder %s26_s18, 8  }
   0x4   : > { %v1540_v5 = vld [vmem:[%s2153_s1 + $0x80] sm:$0xff]   ;;  %1334 = vmatpush3.bf16.msra.mxu0 %v1539_v4  ;;  %v1544_v9 = vld [vmem:[%s2153_s1 + $0x88] sm:$0xff]   ;;  %v1548_v13 = vld [vmem:[%s2153_s1 + $0x90] sm:$0xff]  }
   0x5   : > { %1398 = vmatpush3.bf16.msra.mxu1 %v1540_v5  ;;  %1335 = vmatprep.subr.bf16.mxu0 %v1541_v6  ;;  %v1549_v14 = vld [vmem:[%s2153_s1 + $0x58] sm:$0xff]   ;;  %v1553_v18 = vld [vmem:[%s2153_s1 + $0x60] sm:$0xff]   ;;  %v1557_v22 = vld [vmem:[%s2153_s1 + $0x68] sm:$0xff]   ;;  %s1804_s12 = scalar_lea.vmem %s2152_s0, %s1316_s25  ;;  %s2048_s0 = smov (%p23_p0), 0  }
   0x6   : > { %1399 = vmatprep.subr.bf16.mxu1 %v1542_v7  ;;  %v1550_v15 = vld [vmem:[%s2153_s1 + $0xd8] sm:$0xff]   ;;  %v1554_v19 = vld [vmem:[%s2153_s1 + $0xe0] sm:$0xff]   ;;  %v1558_v23 = vld [vmem:[%s2153_s1 + $0xe8] sm:$0xff]  }
   0x7   : > { %v1551_v16 = vld [vmem:[%s2153_s1 + $0x18] sm:$0xff]   ;;  %v1555_v20 = vld [vmem:[%s2153_s1 + $0x20] sm:$0xff]   ;;  %v1559_v24 = vld [vmem:[%s2153_s1 + $0x28] sm:$0xff]  }
   0x8   : > { %1336 = vmatpush3.bf16.msra.mxu0 %v1543_v8  ;;  %v1552_v17 = vld [vmem:[%s2153_s1 + $0x98] sm:$0xff]   ;;  %v1556_v21 = vld [vmem:[%s2153_s1 + $0xa0] sm:$0xff]   ;;  %v1560_v25 = vld [vmem:[%s2153_s1 + $0xa8] sm:$0xff]  }
   0x9   : > { %1400 = vmatpush3.bf16.msra.mxu1 %v1544_v9  ;;  %1337 = vmatprep.subr.bf16.mxu0 %v1545_v10  ;;  %v1561_v26 = vld [vmem:[%s2153_s1 + $0x70] sm:$0xff]   ;;  %v1565_v30 = vld [vmem:[%s2153_s1 + $0x78] sm:$0xff]   ;;  %v1574_v37 = vld [vmem:[%s1804_s12 + $0xc] ss:$20 sps:$4 sm:$0xff]  }
   0xa   : > { %1401 = vmatprep.subr.bf16.mxu1 %v1546_v11  ;;  %v1562_v27 = vld [vmem:[%s2153_s1 + $0xf0] sm:$0xff]   ;;  %v1566_v31 = vld [vmem:[%s2153_s1 + $0xf8] sm:$0xff]   ;;  %v1575_v38 = vld [vmem:[%s2153_s1 + $0x100] sm:$0xff]   ;;  %732 = vmatprep.mubr.bf16.mxu1 %v1574_v37 }
   0xb   : > { %v1563_v28 = vld [vmem:[%s2153_s1 + $0x30] sm:$0xff]   ;;  %v1567_v32 = vld [vmem:[%s2153_s1 + $0x38] sm:$0xff]   ;;  %v1576_v39 = vld [vmem:[%s1804_s12 + $0x2c] ss:$20 sps:$4 sm:$0xff]  }
   0xc   : > { %1338 = vmatpush3.bf16.msra.mxu0 %v1547_v12  ;;  %v1564_v29 = vld [vmem:[%s2153_s1 + $0xb0] sm:$0xff]   ;;  %v1568_v33 = vld [vmem:[%s2153_s1 + $0xb8] sm:$0xff]   ;;  %v1588_v44 = vld [vmem:[%s2153_s1 + $0x108] sm:$0xff]  }
   0xd   : > { %1402 = vmatpush3.bf16.msra.mxu1 %v1548_v13  ;;  %1339 = vmatprep.subr.bf16.mxu0 %v1549_v14  ;;  %v1569_v34 = vld [vmem:[%s1804_s12] ss:$20 sps:$4 sm:$0xff]   ;;  %v1571_v35 = vld [vmem:[%s1804_s12 + $0x4] ss:$20 sps:$4 sm:$0xff]   ;;  %v1572_v36 = vld [vmem:[%s1804_s12 + $0x8] ss:$20 sps:$4 sm:$0xff]  }
   0xe   : > { %1403 = vmatprep.subr.bf16.mxu1 %v1550_v15  ;;  %635 = vmatprep.mubr.bf16.mxu0 %v1571_v35  ;;  %v1578_v40 = vld [vmem:[%s1804_s12 + $0x34] ss:$20 sps:$4 sm:$0xff]   ;;  %v1581_v42 = vld [vmem:[%s1804_s12 + $0x30] ss:$20 sps:$4 sm:$0xff]   ;;  %v1587_v47 = vld [vmem:[%s1804_s12 + $0x58] ss:$20 sps:$4 sm:$0xff]  }
   0xf   : > { %v1580_v41 = vld [vmem:[%s1804_s12 + $0x28] ss:$20 sps:$4 sm:$0xff]   ;;  %v1586_v46 = vld [vmem:[%s1804_s12 + $0x50] ss:$20 sps:$4 sm:$0xff]   ;;  %v1593_v52 = vld [vmem:[%s1804_s12 + $0x78] ss:$20 sps:$4 sm:$0xff]  }
  0x10   : > { %1340 = vmatpush3.bf16.msra.mxu0 %v1551_v16  ;;  %v1582_v43 = vld [vmem:[%s1804_s12 + $0x54] ss:$20 sps:$4 sm:$0xff]   ;;  %v1584_v45 = vld [vmem:[%s1804_s12 + $0x5c] ss:$20 sps:$4 sm:$0xff]   ;;  %v1591_v50 = vld [vmem:[%s1804_s12 + $0x84] ss:$20 sps:$4 sm:$0xff]  }
  0x11   : > { %1404 = vmatpush3.bf16.msra.mxu1 %v1552_v17  ;;  %1341 = vmatprep.subr.bf16.mxu0 %v1553_v18  ;;  %v1601_v48 = vld [vmem:[%s2153_s1 + $0x110] sm:$0xff]   ;;  %v1614_v51 = vld [vmem:[%s2153_s1 + $0x118] sm:$0xff]   ;;  %v1597_v55 = vld [vmem:[%s1804_s12 + $0xac] ss:$20 sps:$4 sm:$0xff]  }
  0x12   : > { %1405 = vmatprep.subr.bf16.mxu1 %v1554_v19  ;;  %v1589_v49 = vld [vmem:[%s1804_s12 + $0x7c] ss:$20 sps:$4 sm:$0xff]   ;;  %v1594_v53 = vld [vmem:[%s1804_s12 + $0x80] ss:$20 sps:$4 sm:$0xff]   ;;  %v1595_v54 = vld [vmem:[%s1804_s12 + $0xa4] ss:$20 sps:$4 sm:$0xff]  }
  0x13   : > { %v1599_v56 = vld [vmem:[%s1804_s12 + $0xa0] ss:$20 sps:$4 sm:$0xff]   ;;  %v1600_v57 = vld [vmem:[%s1804_s12 + $0xa8] ss:$20 sps:$4 sm:$0xff]   ;;  %v1607_v61 = vld [vmem:[%s1804_s12 + $0xd0] ss:$20 sps:$4 sm:$0xff]  }
  0x14   : > { %1342 = vmatpush3.bf16.msra.mxu0 %v1555_v20  ;;  %v1602_v58 = vld [vmem:[%s1804_s12 + $0xcc] ss:$20 sps:$4 sm:$0xff]   ;;  %v1604_v59 = vld [vmem:[%s1804_s12 + $0xd4] ss:$20 sps:$4 sm:$0xff]   ;;  %v1610_v63 = vld [vmem:[%s1804_s12 + $0xfc] ss:$20 sps:$4 sm:$0xff]  }
  0x15   : > { %1406 = vmatpush3.bf16.msra.mxu1 %v1556_v21  ;;  %1343 = vmatprep.subr.bf16.mxu0 %v1557_v22  ;;  %v1606_v60 = vld [vmem:[%s1804_s12 + $0xc8] ss:$20 sps:$4 sm:$0xff]   ;;  %v1612_v2 = vld [vmem:[%s1804_s12 + $0xf0] ss:$20 sps:$4 sm:$0xff]   ;;  %v1613_v3 = vld [vmem:[%s1804_s12 + $0xf8] ss:$20 sps:$4 sm:$0xff]  }
  0x16   : > { %1407 = vmatprep.subr.bf16.mxu1 %v1558_v23  ;;  %v1608_v62 = vld [vmem:[%s1804_s12 + $0xf4] ss:$20 sps:$4 sm:$0xff]   ;;  %v1615_v4 = vld [vmem:[%s1804_s12 + $0x11c] ss:$20 sps:$4 sm:$0xff]   ;;  %v1617_v5 = vld [vmem:[%s1804_s12 + $0x124] ss:$20 sps:$4 sm:$0xff]  }
  0x17   : > { %v1619_v6 = vld [vmem:[%s1804_s12 + $0x118] ss:$20 sps:$4 sm:$0xff]   ;;  %v1620_v7 = vld [vmem:[%s1804_s12 + $0x120] ss:$20 sps:$4 sm:$0xff]   ;;  %v1621_v8 = vld [vmem:[%s1804_s12 + $0x10] ss:$20 sps:$4 sm:$0xff]  }
  0x18   : > { %1344 = vmatpush3.bf16.msra.mxu0 %v1559_v24  ;;  %v1622_v9 = vld [vmem:[%s1804_s12 + $0xb0] ss:$20 sps:$4 sm:$0xff]   ;;  %v1623_v10 = vld [vmem:[%s1804_s12 + $0x38] ss:$20 sps:$4 sm:$0xff]   ;;  %v1625_v12 = vld [vmem:[%s1804_s12 + $0x60] ss:$20 sps:$4 sm:$0xff]  }
  0x19   : > { %1408 = vmatpush3.bf16.msra.mxu1 %v1560_v25  ;;  %1345 = vmatprep.subr.bf16.mxu0 %v1561_v26  ;;  %v1624_v11 = vld [vmem:[%s1804_s12 + $0xd8] ss:$20 sps:$4 sm:$0xff]   ;;  %v1626_v13 = vld [vmem:[%s1804_s12 + $0x100] ss:$20 sps:$4 sm:$0xff]   ;;  %v1627_v14 = vld [vmem:[%s1804_s12 + $0x88] ss:$20 sps:$4 sm:$0xff]  }
  0x1a   : > { %1409 = vmatprep.subr.bf16.mxu1 %v1562_v27  ;;  %v1628_v15 = vld [vmem:[%s1804_s12 + $0x128] ss:$20 sps:$4 sm:$0xff]   ;;  %v1875_v17 = vld [vmem:[%s2154_s2] ss:$0 sm:$0xff] }
  0x1c   : > { %1346 = vmatpush3.bf16.msra.mxu0 %v1563_v28 }
  0x1d   : > { %1410 = vmatpush3.bf16.msra.mxu1 %v1564_v29  ;;  %1347 = vmatprep.subr.bf16.mxu0 %v1565_v30 }
  0x1e   : > { %1411 = vmatprep.subr.bf16.mxu1 %v1566_v31 }
  0x20   : > { %1348 = vmatpush3.bf16.msra.mxu0 %v1567_v32 }
  0x21   : > { %1412 = vmatpush3.bf16.msra.mxu1 %v1568_v33  ;;  %1473 = vmatprep.subr.bf16.mxu0 %v1575_v38 }
  0x22   : > { %1497 = vmatprep.subr.bf16.mxu1 %v1575_v38 }
  0x23   : > { %636 = vmatmul.mubr.bf16.vlgmr.msra.gmra.mrb[0].mxu0 %v1569_v34 }
  0x24   : > { %733 = vmatmul.mubr.bf16.vlgmr.msra.gmra.mrb[0].mxu1 %v1572_v36  ;;  %1474 = vmatpush3.bf16.msra.mxu0 %v1575_v38 }
  0x25   : > { %643 = vmatprep.mubr.bf16.mxu0 %v1576_v39  ;;  %740 = vmatprep.mubr.bf16.mxu1 %v1578_v40 }
  0x26   : > { %1501 = vmatpush3.bf16.msra.mxu1 %v1575_v38  ;;  %1475 = vmatprep.subr.bf16.mxu0 %v1588_v44 }
  0x27   : > { %1498 = vmatprep.subr.bf16.mxu1 %v1588_v44 }
  0x28   : > { %1476 = vmatpush3.bf16.msra.mxu0 %v1588_v44 }
  0x29   : > { %1477 = vmatprep.subr.bf16.mxu0 %v1601_v48 }
  0x2a   : > { %1502 = vmatpush3.bf16.msra.mxu1 %v1588_v44 }
  0x2b   : > { %644 = vmatmul.mubr.bf16.gmra.mrb[4].mxu0 %v1580_v41  ;;  %1499 = vmatprep.subr.bf16.mxu1 %v1601_v48 }
  0x2c   : > { %741 = vmatmul.mubr.bf16.gmra.mrb[4].mxu1 %v1581_v42  ;;  %651 = vmatprep.mubr.bf16.mxu0 %v1582_v43 }
  0x2d   : > { %748 = vmatprep.mubr.bf16.mxu1 %v1584_v45  ;;  %1478 = vmatpush3.bf16.msra.mxu0 %v1601_v48 }
  0x2e   : > { %1503 = vmatpush3.bf16.msra.mxu1 %v1601_v48  ;;  %1479 = vmatprep.subr.bf16.mxu0 %v1614_v51 }
  0x2f   : > { %1500 = vmatprep.subr.bf16.mxu1 %v1614_v51 }
  0x31   : > { %1480 = vmatpush3.bf16.msra.mxu0 %v1614_v51 }
  0x32   : > { %1504 = vmatpush3.bf16.msra.mxu1 %v1614_v51 }
  0x33   : > { %652 = vmatmul.mubr.bf16.gmra.mrb[8].mxu0 %v1586_v46 }
  0x34   : > { %749 = vmatmul.mubr.bf16.gmra.mrb[8].mxu1 %v1587_v47  ;;  %659 = vmatprep.mubr.bf16.mxu0 %v1589_v49 }
  0x35   : > { %756 = vmatprep.mubr.bf16.mxu1 %v1591_v50 }
  0x3b   : > { %660 = vmatmul.mubr.bf16.gmra.mrb[12].mxu0 %v1593_v52 }
  0x3c   : > { %757 = vmatmul.mubr.bf16.gmra.mrb[12].mxu1 %v1594_v53  ;;  %667 = vmatprep.mubr.bf16.mxu0 %v1595_v54 }
  0x3d   : > { %764 = vmatprep.mubr.bf16.mxu1 %v1597_v55 }
  0x43   : > { %668 = vmatmul.mubr.bf16.gmra.mrb[16].mxu0 %v1599_v56 }
  0x44   : > { %765 = vmatmul.mubr.bf16.gmra.mrb[16].mxu1 %v1600_v57  ;;  %675 = vmatprep.mubr.bf16.mxu0 %v1602_v58 }
  0x45   : > { %772 = vmatprep.mubr.bf16.mxu1 %v1604_v59 }
  0x4b   : > { %676 = vmatmul.mubr.bf16.gmra.mrb[20].mxu0 %v1606_v60 }
  0x4c   : > { %773 = vmatmul.mubr.bf16.gmra.mrb[20].mxu1 %v1607_v61  ;;  %683 = vmatprep.mubr.bf16.mxu0 %v1608_v62 }
  0x4d   : > { %780 = vmatprep.mubr.bf16.mxu1 %v1610_v63 }
  0x53   : > { %684 = vmatmul.mubr.bf16.gmra.mrb[24].mxu0 %v1612_v2 }
  0x54   : > { %781 = vmatmul.mubr.bf16.gmra.mrb[24].mxu1 %v1613_v3  ;;  %691 = vmatprep.mubr.bf16.mxu0 %v1615_v4 }
  0x55   : > { %788 = vmatprep.mubr.bf16.mxu1 %v1617_v5 }
  0x5b   : > { %692 = vmatmul.mubr.bf16.gmra.mrb[28].mxu0 %v1619_v6 }
  0x5c   : > { %789 = vmatmul.mubr.bf16.gmra.mrb[28].mxu1 %v1620_v7  ;;  %1481 = vmatprep.mubr.msk.bf16.mxu0 %vm578_vm0, %v1621_v8 }
  0x5d   : > { %1489 = vmatprep.mubr.msk.bf16.mxu1 %vm578_vm0, %v1622_v9 }
  0x63   : > { %1482 = vmatmul.mubr.msk.bf16.vlgmr.msra.gmra.mrb[32].mxu0 %vm578_vm0, %v1623_v10 }
  0x64   : > { %1490 = vmatmul.mubr.msk.bf16.vlgmr.msra.gmra.mrb[32].mxu1 %vm578_vm0, %v1624_v11  ;;  %1485 = vmatprep.mubr.msk.bf16.mxu0 %vm578_vm0, %v1625_v12 }
  0x65   : > { %1493 = vmatprep.mubr.msk.bf16.mxu1 %vm578_vm0, %v1626_v13 }
  0x6b   : > { %1486 = vmatmul.mubr.msk.bf16.gmra.mrb[36].mxu0 %vm578_vm0, %v1627_v14 }
  0x6c   : > { %1494 = vmatmul.mubr.msk.bf16.gmra.mrb[36].mxu1 %vm578_vm0, %v1628_v15 }
  0xf6   : > { %v1349_v16 = vpop.f32.mrb[0].mxu0 }
  0xf7   : > { %v1350_v18 = vpop.f32.mrb[1].mxu0  ;;  %v1413_v19 = vpop.f32.mrb[0].mxu1 }
  0xf8   : > { %v1351_v20 = vadd.f32 %v1350_v18, %v1349_v16  ;;  %v1352_v21 = vpop.f32.mrb[2].mxu0  ;;  %v1414_v22 = vpop.f32.mrb[1].mxu1 }
  0xf9   : > { %v1353_v23 = vpop.f32.mrb[3].mxu0  ;;  %v1415_v24 = vadd.f32 %v1414_v22, %v1413_v19  ;;  %v1416_v25 = vpop.f32.mrb[2].mxu1 }
  0xfa   : > { %v638_v26 = vadd.f32 %v1351_v20, %v1875_v17  ;;  %v1354_v27 = vadd.f32 %v1353_v23, %v1352_v21  ;;  %v1417_v28 = vpop.f32.mrb[3].mxu1 }
  0xfb   : > { %v1418_v29 = vadd.f32 %v1417_v28, %v1416_v25 }
  0xfc   : > { %v641_v30 = vadd.f32 %v1354_v27, %v1875_v17  ;;  %v1879_v31 = vadd.f32 %v1415_v24, %v638_v26 }
  0xfe   : > { %v1355_v32 = vpop.f32.mrb[4].mxu0  ;;  %v1881_v33 = vadd.f32 %v1418_v29, %v641_v30 }
  0xff   : > { %v1356_v34 = vpop.f32.mrb[5].mxu0  ;;  %v1419_v35 = vpop.f32.mrb[4].mxu1 }
 0x100   : > { %v1357_v36 = vadd.f32 %v1356_v34, %v1355_v32  ;;  %v1358_v37 = vpop.f32.mrb[6].mxu0  ;;  %v1420_v38 = vpop.f32.mrb[5].mxu1 }
 0x101   : > { %v1359_v39 = vpop.f32.mrb[7].mxu0  ;;  %v1421_v40 = vadd.f32 %v1420_v38, %v1419_v35  ;;  %v1422_v41 = vpop.f32.mrb[6].mxu1 }
 0x102   : > { %v646_v42 = vadd.f32 %v1357_v36, %v1875_v17  ;;  %v1360_v43 = vadd.f32 %v1359_v39, %v1358_v37  ;;  %v1423_v44 = vpop.f32.mrb[7].mxu1 }
 0x103   : > { %v1424_v45 = vadd.f32 %v1423_v44, %v1422_v41 }
 0x104   : > { %v649_v46 = vadd.f32 %v1360_v43, %v1875_v17  ;;  %v1885_v47 = vadd.f32 %v1421_v40, %v646_v42 }
 0x106   : > { %v1361_v48 = vpop.f32.mrb[8].mxu0  ;;  %v1887_v49 = vadd.f32 %v1424_v45, %v649_v46 }
 0x107   : > { %v1362_v50 = vpop.f32.mrb[9].mxu0  ;;  %v1425_v51 = vpop.f32.mrb[8].mxu1 }
 0x108   : > { %v1363_v52 = vadd.f32 %v1362_v50, %v1361_v48  ;;  %v1364_v53 = vpop.f32.mrb[10].mxu0  ;;  %v1426_v54 = vpop.f32.mrb[9].mxu1 }
 0x109   : > { %v1365_v55 = vpop.f32.mrb[11].mxu0  ;;  %v1427_v56 = vadd.f32 %v1426_v54, %v1425_v51  ;;  %v1428_v57 = vpop.f32.mrb[10].mxu1 }
 0x10a   : > { %v654_v58 = vadd.f32 %v1363_v52, %v1875_v17  ;;  %v1366_v59 = vadd.f32 %v1365_v55, %v1364_v53  ;;  %v1429_v60 = vpop.f32.mrb[11].mxu1 }
 0x10b   : > { %v1430_v61 = vadd.f32 %v1429_v60, %v1428_v57 }
 0x10c   : > { %v657_v62 = vadd.f32 %v1366_v59, %v1875_v17  ;;  %v1891_v63 = vadd.f32 %v1427_v56, %v654_v58 }
 0x10e   : > { %v1367_v2 = vpop.f32.mrb[12].mxu0  ;;  %v1893_v3 = vadd.f32 %v1430_v61, %v657_v62 }
 0x10f   : > { %v1368_v4 = vpop.f32.mrb[13].mxu0  ;;  %v1431_v5 = vpop.f32.mrb[12].mxu1 }
 0x110   : > { %v1369_v6 = vadd.f32 %v1368_v4, %v1367_v2  ;;  %v1370_v7 = vpop.f32.mrb[14].mxu0  ;;  %v1432_v8 = vpop.f32.mrb[13].mxu1 }
 0x111   : > { %v1371_v9 = vpop.f32.mrb[15].mxu0  ;;  %v1433_v10 = vadd.f32 %v1432_v8, %v1431_v5  ;;  %v1434_v11 = vpop.f32.mrb[14].mxu1 }
 0x112   : > { %v662_v12 = vadd.f32 %v1369_v6, %v1875_v17  ;;  %v1372_v13 = vadd.f32 %v1371_v9, %v1370_v7  ;;  %v1435_v14 = vpop.f32.mrb[15].mxu1 }
 0x113   : > { %v1436_v15 = vadd.f32 %v1435_v14, %v1434_v11 }
 0x114   : > { %v665_v16 = vadd.f32 %v1372_v13, %v1875_v17  ;;  %v1897_v18 = vadd.f32 %v1433_v10, %v662_v12 }
 0x116   : > { %v1373_v19 = vpop.f32.mrb[16].mxu0  ;;  %v1899_v20 = vadd.f32 %v1436_v15, %v665_v16 }
 0x117   : > { %v1374_v21 = vpop.f32.mrb[17].mxu0  ;;  %v1437_v22 = vpop.f32.mrb[16].mxu1 }
 0x118   : > { %v1375_v23 = vadd.f32 %v1374_v21, %v1373_v19  ;;  %v1376_v24 = vpop.f32.mrb[18].mxu0  ;;  %v1438_v25 = vpop.f32.mrb[17].mxu1 }
 0x119   : > { %v1377_v26 = vpop.f32.mrb[19].mxu0  ;;  %v1439_v27 = vadd.f32 %v1438_v25, %v1437_v22  ;;  %v1440_v28 = vpop.f32.mrb[18].mxu1 }
 0x11a   : > { %v670_v29 = vadd.f32 %v1375_v23, %v1875_v17  ;;  %v1378_v30 = vadd.f32 %v1377_v26, %v1376_v24  ;;  %v1441_v32 = vpop.f32.mrb[19].mxu1 }
 0x11b   : > { %v1442_v34 = vadd.f32 %v1441_v32, %v1440_v28 }
 0x11c   : > { %v673_v35 = vadd.f32 %v1378_v30, %v1875_v17  ;;  %v767_v36 = vadd.f32 %v1439_v27, %v670_v29 }
 0x11e   : > { %v1379_v37 = vpop.f32.mrb[20].mxu0  ;;  %v1903_v38 = vadd.f32 %v1442_v34, %v673_v35 }
 0x11f   : > { %v1380_v39 = vpop.f32.mrb[21].mxu0  ;;  %v1443_v40 = vpop.f32.mrb[20].mxu1 }
 0x120   : > { %v1381_v41 = vadd.f32 %v1380_v39, %v1379_v37  ;;  %v1382_v42 = vpop.f32.mrb[22].mxu0  ;;  %v1444_v43 = vpop.f32.mrb[21].mxu1 }
 0x121   : > { %v1383_v44 = vpop.f32.mrb[23].mxu0  ;;  %v1445_v45 = vadd.f32 %v1444_v43, %v1443_v40  ;;  %v1446_v46 = vpop.f32.mrb[22].mxu1 }
 0x122   : > { %v678_v48 = vadd.f32 %v1381_v41, %v1875_v17  ;;  %v1384_v50 = vadd.f32 %v1383_v44, %v1382_v42  ;;  %v1447_v51 = vpop.f32.mrb[23].mxu1 }
 0x123   : > { %v1448_v52 = vadd.f32 %v1447_v51, %v1446_v46 }
 0x124   : > { %v681_v53 = vadd.f32 %v1384_v50, %v1875_v17  ;;  %v775_v54 = vadd.f32 %v1445_v45, %v678_v48 }
 0x126   : > { %v1385_v55 = vpop.f32.mrb[24].mxu0  ;;  %v778_v56 = vadd.f32 %v1448_v52, %v681_v53 }
 0x127   : > { %v1386_v57 = vpop.f32.mrb[25].mxu0  ;;  %v1449_v58 = vpop.f32.mrb[24].mxu1 }
 0x128   : > { %v1387_v59 = vadd.f32 %v1386_v57, %v1385_v55  ;;  %v1388_v60 = vpop.f32.mrb[26].mxu0  ;;  %v1450_v61 = vpop.f32.mrb[25].mxu1 }
 0x129   : > { %v1389_v62 = vpop.f32.mrb[27].mxu0  ;;  %v1451_v2 = vadd.f32 %v1450_v61, %v1449_v58  ;;  %v1452_v4 = vpop.f32.mrb[26].mxu1 }
 0x12a   : > { %v686_v5 = vadd.f32 %v1387_v59, %v1875_v17  ;;  %v1390_v6 = vadd.f32 %v1389_v62, %v1388_v60  ;;  %v1453_v7 = vpop.f32.mrb[27].mxu1 }
 0x12b   : > { %v1454_v8 = vadd.f32 %v1453_v7, %v1452_v4 }
 0x12c   : > { %v689_v9 = vadd.f32 %v1390_v6, %v1875_v17  ;;  %v783_v10 = vadd.f32 %v1451_v2, %v686_v5 }
 0x12e   : > { %v1391_v11 = vpop.f32.mrb[28].mxu0  ;;  %v1909_v12 = vadd.f32 %v1454_v8, %v689_v9 }
 0x12f   : > { %v1392_v13 = vpop.f32.mrb[29].mxu0  ;;  %v1455_v14 = vpop.f32.mrb[28].mxu1 }
 0x130   : > { %v1393_v15 = vadd.f32 %v1392_v13, %v1391_v11  ;;  %v1394_v16 = vpop.f32.mrb[30].mxu0  ;;  %v1456_v19 = vpop.f32.mrb[29].mxu1 }
 0x131   : > { %v1395_v21 = vpop.f32.mrb[31].mxu0  ;;  %v1457_v22 = vadd.f32 %v1456_v19, %v1455_v14  ;;  %v1458_v23 = vpop.f32.mrb[30].mxu1 }
 0x132   : > { %v694_v24 = vadd.f32 %v1393_v15, %v1875_v17  ;;  %v1396_v25 = vadd.f32 %v1395_v21, %v1394_v16  ;;  %v1459_v26 = vpop.f32.mrb[31].mxu1 }
 0x133   : > { %v1460_v27 = vadd.f32 %v1459_v26, %v1458_v23 }
 0x134   : > { %v697_v28 = vadd.f32 %v1396_v25, %v1875_v17  ;;  %v791_v29 = vadd.f32 %v1457_v22, %v694_v24 }
 0x136   : > { %v1483_v30 = vpop.f32.mrb[32].mxu0  ;;  %v1913_v32 = vadd.f32 %v1460_v27, %v697_v28 }
 0x137   : > { %v840_v34 = vadd.f32 %v1483_v30, %v1885_v47  ;;  %v1491_v35 = vpop.f32.mrb[32].mxu1  ;;  %v831_v37 = vpop.f32.mrb[33].mxu0 }
 0x138   : > { %v1916_v39 = vadd.f32 %v1491_v35, %v775_v54  ;;  %v832_v40 = vadd.f32 %v831_v37, %v1879_v31  ;;  %v863_v41 = vpop.f32.mrb[33].mxu1  ;;  %v1484_v42 = vpop.f32.mrb[34].mxu0 }
 0x139   : > { %897 = vst.msk [vmem:[%s1921_s28 + $0x10] sm:$0xff] %vm578_vm0, %v840_v34  ;;  %v1925_v17 = vadd.f32 %v863_v41, %v767_v36  ;;  %v843_v47 = vadd.f32 %v1484_v42, %v1887_v49  ;;  %v1492_v43 = vpop.f32.mrb[34].mxu1  ;;  %v834_v31 = vpop.f32.mrb[35].mxu0  ;;  %v914_v48 = vsel %vm578_vm0, %v840_v34, 0.0  ;;  %v951_v51 = vmul.f32 %v840_v34, %v840_v34 }
 0x13a   : > { %905 = vst.msk [vmem:[%s1921_s28 + $0x50] sm:$0xff] %vm578_vm0, %v1916_v39  ;;  %895 = vst.msk [vmem:[%s1921_s28] sm:$0xff] %vm578_vm0, %v832_v40  ;;  %v866_v44 = vpop.f32.mrb[35].mxu1  ;;  %v949_v45 = vmul.f32 %v832_v40, %v832_v40  ;;  %v1938_v36 = vadd.f32 %v1492_v43, %v778_v56  ;;  %v835_v49 = vadd.f32 %v834_v31, %v1881_v33  ;;  %v911_v52 = vsel %vm578_vm0, %v832_v40, 0.0 }
 0x13b   : > { %903 = vst.msk [vmem:[%s1921_s28 + $0x40] sm:$0xff] %vm578_vm0, %v1925_v17  ;;  %898 = vst.msk [vmem:[%s1921_s28 + $0x18] sm:$0xff] %vm578_vm0, %v843_v47  ;;  %v1942_v46 = vadd.f32 %v866_v44, %v1903_v38  ;;  %v952_v61 = vmul.f32 %v843_v47, %v843_v47  ;;  %v968_v9 = vsel %vm578_vm0, %v951_v51, 0.0  ;;  %v916_v11 = vsel %vm578_vm0, %v843_v47, 0.0 }
 0x13c   : > { %906 = vst.msk [vmem:[%s1921_s28 + $0x58] sm:$0xff] %vm578_vm0, %v1938_v36  ;;  %896 = vst.msk [vmem:[%s1921_s28 + $0x8] sm:$0xff] %vm578_vm0, %v835_v49  ;;  %v912_v53 = vsel %vm578_vm0, %v835_v49, 0.0  ;;  %v950_v54 = vmul.f32 %v835_v49, %v835_v49  ;;  %v965_v55 = vsel %vm578_vm0, %v949_v45, 0.0  ;;  %v957_v37 = vmul.f32 %v1925_v17, %v1925_v17 }
 0x13d   : > { %904 = vst.msk [vmem:[%s1921_s28 + $0x48] sm:$0xff] %vm578_vm0, %v1942_v46  ;;  %v913_v56 = vadd.f32 %v912_v53, %v911_v52  ;;  %v970_v15 = vsel %vm578_vm0, %v952_v61, 0.0  ;;  %v926_v42 = vsel %vm578_vm0, %v1925_v17, 0.0  ;;  %v958_v43 = vmul.f32 %v1942_v46, %v1942_v46 }
 0x13e   : > { %v1487_v50 = vpop.f32.mrb[36].mxu0  ;;  %v966_v62 = vsel %vm578_vm0, %v950_v54, 0.0  ;;  %v928_v45 = vsel %vm578_vm0, %v1942_v46, 0.0  ;;  %v930_v17 = vsel %vm578_vm0, %v1916_v39, 0.0  ;;  %v960_v53 = vmul.f32 %v1938_v36, %v1938_v36 }
 0x13f   : > { %v1495_v33 = vpop.f32.mrb[36].mxu1  ;;  %v847_v38 = vpop.f32.mrb[37].mxu0  ;;  %v856_v57 = vadd.f32 %v1487_v50, %v1897_v18  ;;  %v915_v7 = vadd.f32 %v914_v48, %v913_v56  ;;  %v967_v8 = vadd.f32 %v966_v62, %v965_v55  ;;  %v959_v48 = vmul.f32 %v1916_v39, %v1916_v39 }
 0x140   : > { %v1957_v58 = vadd.f32 %v1495_v33, %v791_v29  ;;  %v879_v59 = vpop.f32.mrb[37].mxu1  ;;  %v1488_v60 = vpop.f32.mrb[38].mxu0  ;;  %v848_v2 = vadd.f32 %v847_v38, %v1891_v63  ;;  %v980_v50 = vsel %vm578_vm0, %v957_v37, 0.0  ;;  %v982_v54 = vsel %vm578_vm0, %v958_v43, 0.0 }
 0x141   : > { %v880_v4 = vadd.f32 %v879_v59, %v783_v10  ;;  %v1496_v5 = vpop.f32.mrb[38].mxu1  ;;  %v850_v6 = vpop.f32.mrb[39].mxu0  ;;  %901 = vst.msk [vmem:[%s1921_s28 + $0x30] sm:$0xff] %vm578_vm0, %v856_v57  ;;  %v969_v13 = vadd.f32 %v968_v9, %v967_v8  ;;  %v917_v14 = vadd.f32 %v916_v11, %v915_v7  ;;  %v859_v19 = vadd.f32 %v1488_v60, %v1899_v20 }
 0x142   : > { %909 = vst.msk [vmem:[%s1921_s28 + $0x70] sm:$0xff] %vm578_vm0, %v1957_v58  ;;  %v882_v18 = vpop.f32.mrb[39].mxu1  ;;  %899 = vst.msk [vmem:[%s1921_s28 + $0x20] sm:$0xff] %vm578_vm0, %v848_v2  ;;  %v918_v63 = vsel %vm578_vm0, %v848_v2, 0.0  ;;  %v953_v10 = vmul.f32 %v848_v2, %v848_v2  ;;  %v891_v23 = vadd.f32 %v1496_v5, %v1913_v32  ;;  %v851_v24 = vadd.f32 %v850_v6, %v1893_v3 }
 0x143   : > { %907 = vst.msk [vmem:[%s1921_s28 + $0x60] sm:$0xff] %vm578_vm0, %v880_v4  ;;  %v919_v21 = vadd.f32 %v918_v63, %v917_v14  ;;  %v971_v22 = vadd.f32 %v970_v15, %v969_v13  ;;  %902 = vst.msk [vmem:[%s1921_s28 + $0x38] sm:$0xff] %vm578_vm0, %v859_v19  ;;  %v883_v25 = vadd.f32 %v882_v18, %v1909_v12  ;;  %v922_v30 = vsel %vm578_vm0, %v856_v57, 0.0 }
 0x144   : > { %v972_v16 = vsel %vm578_vm0, %v953_v10, 0.0  ;;  %910 = vst.msk [vmem:[%s1921_s28 + $0x78] sm:$0xff] %vm578_vm0, %v891_v23  ;;  %900 = vst.msk [vmem:[%s1921_s28 + $0x28] sm:$0xff] %vm578_vm0, %v851_v24  ;;  %v920_v27 = vsel %vm578_vm0, %v851_v24, 0.0  ;;  %v955_v28 = vmul.f32 %v856_v57, %v856_v57  ;;  %v954_v20 = vmul.f32 %v851_v24, %v851_v24 }
 0x145   : > { %v973_v26 = vadd.f32 %v972_v16, %v971_v22  ;;  %v921_v29 = vadd.f32 %v920_v27, %v919_v21  ;;  %908 = vst.msk [vmem:[%s1921_s28 + $0x68] sm:$0xff] %vm578_vm0, %v883_v25  ;;  %v956_v32 = vmul.f32 %v859_v19, %v859_v19  ;;  %v924_v12 = vsel %vm578_vm0, %v859_v19, 0.0 }
 0x146   : > { %v974_v34 = vsel %vm578_vm0, %v954_v20, 0.0  ;;  %v976_v40 = vsel %vm578_vm0, %v955_v28, 0.0  ;;  %v932_v46 = vsel %vm578_vm0, %v1938_v36, 0.0  ;;  %v984_v55 = vsel %vm578_vm0, %v959_v48, 0.0 }
 0x147   : > { %v923_v3 = vadd.f32 %v922_v30, %v921_v29  ;;  %v975_v35 = vadd.f32 %v974_v34, %v973_v26  ;;  %v978_v31 = vsel %vm578_vm0, %v956_v32, 0.0  ;;  %v961_v56 = vmul.f32 %v880_v4, %v880_v4 }
 0x148   : > { %v934_v59 = vsel %vm578_vm0, %v880_v4, 0.0  ;;  %v986_v39 = vsel %vm578_vm0, %v960_v53, 0.0  ;;  %v962_v62 = vmul.f32 %v883_v25, %v883_v25  ;;  %v936_v2 = vsel %vm578_vm0, %v883_v25, 0.0 }
 0x149   : > { %v925_v41 = vadd.f32 %v924_v12, %v923_v3  ;;  %v977_v47 = vadd.f32 %v976_v40, %v975_v35  ;;  %v963_v6 = vmul.f32 %v1957_v58, %v1957_v58  ;;  %v988_v36 = vsel %vm578_vm0, %v961_v56, 0.0 }
 0x14a   : > { %v938_v8 = vsel %vm578_vm0, %v1957_v58, 0.0  ;;  %v964_v9 = vmul.f32 %v891_v23, %v891_v23  ;;  %v990_v11 = vsel %vm578_vm0, %v962_v62, 0.0  ;;  %v940_v63 = vsel %vm578_vm0, %v891_v23, 0.0 }
 0x14b   : > { %v927_v44 = vadd.f32 %v926_v42, %v925_v41  ;;  %v979_v49 = vadd.f32 %v978_v31, %v977_v47  ;;  %v992_v13 = vsel %vm578_vm0, %v963_v6, 0.0  ;;  %v2041_v47 = vld [vmem:[%s2156_s4] sm:$0x1] (%p23_p0) }
 0x14c   : > { %v994_v16 = vsel %vm578_vm0, %v964_v9, 0.0 }
 0x14d   : > { %v929_v51 = vadd.f32 %v928_v45, %v927_v44  ;;  %v981_v52 = vadd.f32 %v980_v50, %v979_v49 }
 0x14f   : > { %v931_v33 = vadd.f32 %v930_v17, %v929_v51  ;;  %v983_v38 = vadd.f32 %v982_v54, %v981_v52 }
 0x151   : > { %v933_v57 = vadd.f32 %v932_v46, %v931_v33  ;;  %v985_v60 = vadd.f32 %v984_v55, %v983_v38 }
 0x153   : > { %v935_v61 = vadd.f32 %v934_v59, %v933_v57  ;;  %v987_v5 = vadd.f32 %v986_v39, %v985_v60 }
 0x155   : > { %v937_v7 = vadd.f32 %v936_v2, %v935_v61  ;;  %v989_v18 = vadd.f32 %v988_v36, %v987_v5 }
 0x157   : > { %v939_v4 = vadd.f32 %v938_v8, %v937_v7  ;;  %v991_v10 = vadd.f32 %v990_v11, %v989_v18 }
 0x159   : > { %v941_v14 = vadd.f32 %v940_v63, %v939_v4  ;;  %v993_v15 = vadd.f32 %v992_v13, %v991_v10 }
 0x15b   : > { %v942_v19 = vrot.slane %v941_v14, 4  ;;  %v995_v21 = vadd.f32 %v994_v16, %v993_v15 }
 0x15d   : > { %v943_v22 = vadd.f32 %v942_v19, %v941_v14  ;;  %v996_v24 = vrot.slane %v995_v21, 4 }
 0x15f   : > { %v944_v25 = vrot.slane %v943_v22, 2  ;;  %v997_v58 = vadd.f32 %v996_v24, %v995_v21 }
 0x161   : > { %v945_v26 = vadd.f32 %v944_v25, %v943_v22  ;;  %v998_v27 = vrot.slane %v997_v58, 2 }
 0x163   : > { %v946_v28 = vrot.slane %v945_v26, 1  ;;  %v999_v29 = vadd.f32 %v998_v27, %v997_v58 }
 0x165   : > { %v947_v20 = vadd.f32 %v946_v28, %v945_v26  ;;  %v1000_v30 = vrot.slane %v999_v29, 1  ;;  %25 = sbr.rel (!%p23_p0) target bundleno = 1 (0x1), region = 58 }
 0x167   : > { %v948_v23 = vadd.f32 %v1653_v1, %v947_v20   ;;  %v1001_v32 = vadd.f32 %v1000_v30, %v999_v29 }
 0x169   : > { %v1002_v3 = vadd.f32 %v1649_v0, %v1001_v32   ;;  %v2159_v1 = vmov %v948_v23  ;;  %v1003_v34 = vmul.f32 (%p23_p0), 0.0009765625, %v948_v23 }
 0x16a   :  { %v1007_v1 = vld [vmem:[%s2155_s3] sm:$0x1] (%p23_p0) }
 0x16b   : > { %v2158_v0 = vmov %v1002_v3  ;;  %v1004_v12 = vmul.f32 (%p23_p0), 0.0009765625, %v1002_v3  ;;  %v1005_v35 = vmul.f32 (%p23_p0), %v1003_v34, %v1003_v34 }
 0x16d   :  { %v1006_v37 = vsub.f32 %v1004_v12, %v1005_v35 }
 0x16f   :  { %v1008_v40 = vadd.f32 1e-05, %v1006_v37 }
 0x171   :  { %1629 = vrsqrt.f32 %v1008_v40 }
 0x17b   :  { %v1630_v41 = vpop.eup %1629 }
 0x17c   :  { %v2036_v42 = vmul.f32 %v1630_v41, %v1007_v1 }
 0x17e   :  { %v2044_v43 = vmul.f32 %v2036_v42, %v1003_v34 }
 0x180   :  { %v1013_v0 = vsub.f32 %v2041_v47, %v2044_v43 }
 0x181 LB: > { %v1039_v31 = vlaneseq  ;;  %s1298_s1 = sshll.u32 %s1661_s0, 7  ;;  %vm1166_vm1 = vcmask 519168   ;;  %s1019_s0 = sadd.s32 1, %s1661_s0   ;;  %s1661_s0 = sphi %s2048_s0, %s1019_s0  }
 0x182   : > { %s2054_s2 = scalar_lea.vmem [#allocation2], %s1298_s1  ;;  %s1162_s3 = sshra.s32 %s1298_s1, 3 }
 0x183   : > { %v1040_v44 = vshrl.u32 %v1039_v31, 7  ;;  %v1022_v45 = vld [vmem:[%s2054_s2] sm:$0xff]  ;;  %v1023_v48 = vld [vmem:[%s2054_s2 + $0x8] sm:$0xff]  ;;  %v1024_v50 = vld [vmem:[%s2054_s2 + $0x10] sm:$0xff]  ;;  %s1315_s4 = sshll.u32 %s1162_s3, 2  ;;  %p1016_p1 = scmp.ge.s32.totalorder %s1019_s0, 8  }
 0x184   : > { %v1025_v51 = vld [vmem:[%s2054_s2 + $0x18] sm:$0xff]  ;;  %v1026_v17 = vld [vmem:[%s2054_s2 + $0x20] sm:$0xff]  ;;  %v1027_v54 = vld [vmem:[%s2054_s2 + $0x28] sm:$0xff]  ;;  %s2094_s8 = scalar_lea.vmem %s2157_s5, %s1315_s4 }
 0x185   : > { %v1041_v49 = vsub.s32 0, %v1040_v44  ;;  %v1028_v33 = vld [vmem:[%s2054_s2 + $0x30] sm:$0xff]  ;;  %v1029_v46 = vld [vmem:[%s2054_s2 + $0x38] sm:$0xff]  ;;  %v1030_v9 = vld [vmem:[%s2054_s2 + $0x40] sm:$0xff] }
 0x186   : > { %v1031_v13 = vld [vmem:[%s2054_s2 + $0x48] sm:$0xff]  ;;  %v1032_v14 = vld [vmem:[%s2054_s2 + $0x50] sm:$0xff]  ;;  %v1033_v22 = vld [vmem:[%s2054_s2 + $0x58] sm:$0xff] }
 0x187   : > { %v2062_v52 = vrot.slane %v2036_v42, %v1041_v49  ;;  %v2067_v53 = vrot.slane %v1013_v0, %v1041_v49  ;;  %v1034_v24 = vld [vmem:[%s2054_s2 + $0x60] sm:$0xff]  ;;  %v1035_v28 = vld [vmem:[%s2054_s2 + $0x68] sm:$0xff]  ;;  %v1036_v29 = vld [vmem:[%s2054_s2 + $0x70] sm:$0xff] }
 0x188   : > { %v1037_v20 = vld [vmem:[%s2054_s2 + $0x78] sm:$0xff] }
 0x189   : > { %v1044_v38 = vmul.f32 %v2062_v52, %v1022_v45  ;;  %v1045_v55 = vmul.f32 %v2062_v52, %v1023_v48  ;;  %v1046_v56 = vmul.f32 %v2062_v52, %v1024_v50  ;;  %v1047_v57 = vmul.f32 %v2062_v52, %v1025_v51 }
 0x18a   : > { %v1048_v59 = vmul.f32 %v2062_v52, %v1026_v17  ;;  %v1049_v60 = vmul.f32 %v2062_v52, %v1027_v54  ;;  %v1050_v39 = vmul.f32 %v2062_v52, %v1028_v33  ;;  %v1051_v61 = vmul.f32 %v2062_v52, %v1029_v46 }
 0x18b   : > { %v1066_v62 = vadd.f32 %v2067_v53, %v1044_v38  ;;  %v1067_v2 = vadd.f32 %v2067_v53, %v1045_v55  ;;  %v1068_v5 = vadd.f32 %v2067_v53, %v1046_v56  ;;  %v1069_v6 = vadd.f32 %v2067_v53, %v1047_v57 }
 0x18c   : > { %v1070_v36 = vadd.f32 %v2067_v53, %v1048_v59  ;;  %v1071_v7 = vadd.f32 %v2067_v53, %v1049_v60  ;;  %v1072_v8 = vadd.f32 %v2067_v53, %v1050_v39  ;;  %v1073_v18 = vadd.f32 %v2067_v53, %v1051_v61 }
 0x18d   : > { %v1082_v4 = vmax.f32 %v1066_v62, 0.0  ;;  %v1083_v11 = vmax.f32 %v1067_v2, 0.0  ;;  %v1084_v63 = vmax.f32 %v1068_v5, 0.0  ;;  %v1085_v10 = vmax.f32 %v1069_v6, 0.0 }
 0x18e   : > { %v1086_v15 = vmax.f32 %v1070_v36, 0.0  ;;  %v1087_v16 = vmax.f32 %v1071_v7, 0.0  ;;  %v1088_v19 = vmax.f32 %v1072_v8, 0.0  ;;  %v1089_v21 = vmax.f32 %v1073_v18, 0.0 }
 0x18f   : > { %v1317_v25 = vpack.c.bf16 %v1082_v4, %v1082_v4  ;;  %v1318_v58 = vpack.c.bf16 %v1083_v11, %v1083_v11  ;;  %v1319_v26 = vpack.c.bf16 %v1084_v63, %v1084_v63  ;;  %v1320_v27 = vpack.c.bf16 %v1085_v10, %v1085_v10 }
 0x190   : > { %v1321_v30 = vpack.c.bf16 %v1086_v15, %v1086_v15  ;;  %v1322_v23 = vpack.c.bf16 %v1087_v16, %v1087_v16  ;;  %v1323_v32 = vpack.c.bf16 %v1088_v19, %v1088_v19  ;;  %v1324_v3 = vpack.c.bf16 %v1089_v21, %v1089_v21 }
 0x191   : > { %1167 = vst.msk [vmem:[%s2094_s8] sm:$0xf] %vm1166_vm1, %v1317_v25  ;;  %1168 = vst.msk [vmem:[%s2094_s8 + $0x4] sm:$0xf] %vm1166_vm1, %v1318_v58  ;;  %v1052_v34 = vmul.f32 %v2062_v52, %v1030_v9  ;;  %v1053_v12 = vmul.f32 %v2062_v52, %v1031_v13  ;;  %v1054_v35 = vmul.f32 %v2062_v52, %v1032_v14 }
 0x192   : > { %1169 = vst.msk [vmem:[%s2094_s8 + $0x8] sm:$0xf] %vm1166_vm1, %v1319_v26  ;;  %1170 = vst.msk [vmem:[%s2094_s8 + $0xc] sm:$0xf] %vm1166_vm1, %v1320_v27  ;;  %v1055_v37 = vmul.f32 %v2062_v52, %v1033_v22  ;;  %v1056_v40 = vmul.f32 %v2062_v52, %v1034_v24  ;;  %v1057_v1 = vmul.f32 %v2062_v52, %v1035_v28 }
 0x193   : > { %1171 = vst.msk [vmem:[%s2094_s8 + $0x10] sm:$0xf] %vm1166_vm1, %v1321_v30  ;;  %1172 = vst.msk [vmem:[%s2094_s8 + $0x14] sm:$0xf] %vm1166_vm1, %v1322_v23  ;;  %v1058_v41 = vmul.f32 %v2062_v52, %v1036_v29  ;;  %v1059_v31 = vmul.f32 %v2062_v52, %v1037_v20  ;;  %v1074_v44 = vadd.f32 %v2067_v53, %v1052_v34 }
 0x194   : > { %1173 = vst.msk [vmem:[%s2094_s8 + $0x18] sm:$0xf] %vm1166_vm1, %v1323_v32  ;;  %1174 = vst.msk [vmem:[%s2094_s8 + $0x1c] sm:$0xf] %vm1166_vm1, %v1324_v3  ;;  %v1075_v45 = vadd.f32 %v2067_v53, %v1053_v12  ;;  %v1076_v49 = vadd.f32 %v2067_v53, %v1054_v35  ;;  %v1077_v48 = vadd.f32 %v2067_v53, %v1055_v37 }
 0x195   : > { %v1078_v50 = vadd.f32 %v2067_v53, %v1056_v40  ;;  %v1079_v51 = vadd.f32 %v2067_v53, %v1057_v1  ;;  %v1080_v17 = vadd.f32 %v2067_v53, %v1058_v41  ;;  %v1081_v54 = vadd.f32 %v2067_v53, %v1059_v31 }
 0x196   : > { %v1090_v33 = vmax.f32 %v1074_v44, 0.0  ;;  %v1091_v46 = vmax.f32 %v1075_v45, 0.0  ;;  %v1092_v52 = vmax.f32 %v1076_v49, 0.0  ;;  %v1093_v38 = vmax.f32 %v1077_v48, 0.0 }
 0x197   : > { %v1094_v55 = vmax.f32 %v1078_v50, 0.0  ;;  %v1095_v56 = vmax.f32 %v1079_v51, 0.0  ;;  %v1096_v57 = vmax.f32 %v1080_v17, 0.0  ;;  %v1097_v59 = vmax.f32 %v1081_v54, 0.0  ;;  %1018 = sbr.rel (!%p1016_p1) target bundleno = 385 (0x181), region = 69 }
 0x198   : > { %v1325_v60 = vpack.c.bf16 %v1090_v33, %v1090_v33  ;;  %v1326_v39 = vpack.c.bf16 %v1091_v46, %v1091_v46  ;;  %v1327_v61 = vpack.c.bf16 %v1092_v52, %v1092_v52  ;;  %v1328_v53 = vpack.c.bf16 %v1093_v38, %v1093_v38 }
 0x199   : > { %v1329_v62 = vpack.c.bf16 %v1094_v55, %v1094_v55  ;;  %v1330_v2 = vpack.c.bf16 %v1095_v56, %v1095_v56  ;;  %v1331_v5 = vpack.c.bf16 %v1096_v57, %v1096_v57  ;;  %v1332_v6 = vpack.c.bf16 %v1097_v59, %v1097_v59 }
 0x19a   : > { %1175 = vst.msk [vmem:[%s2094_s8 + $0x20] sm:$0xf] %vm1166_vm1, %v1325_v60  ;;  %1176 = vst.msk [vmem:[%s2094_s8 + $0x24] sm:$0xf] %vm1166_vm1, %v1326_v39 }
 0x19b   : > { %1177 = vst.msk [vmem:[%s2094_s8 + $0x28] sm:$0xf] %vm1166_vm1, %v1327_v61  ;;  %1178 = vst.msk [vmem:[%s2094_s8 + $0x2c] sm:$0xf] %vm1166_vm1, %v1328_v53 }
 0x19c   : > { %1179 = vst.msk [vmem:[%s2094_s8 + $0x30] sm:$0xf] %vm1166_vm1, %v1329_v62  ;;  %1180 = vst.msk [vmem:[%s2094_s8 + $0x34] sm:$0xf] %vm1166_vm1, %v1330_v2 }
 0x19d   : > { %1181 = vst.msk [vmem:[%s2094_s8 + $0x38] sm:$0xf] %vm1166_vm1, %v1331_v5  ;;  %1182 = vst.msk [vmem:[%s2094_s8 + $0x3c] sm:$0xf] %vm1166_vm1, %v1332_v6 }

// kernel: proto_model_forward.6
= control target key start
LH: loop header
LB: loop body
LE: loop exit
PB: predicated region body
PF: predicated region fallthrough
CT: control target
= control target key end

     0   :  { %v1693_v0 = vmov 0.0   ;;  %v1695_v1 = vmov 0.0   ;;  %s1697_s18 = smov 0   ;;  %s2152_s0 = inlined_call_operand.vmem [shape: bf16[256,576], index: 0, kind: input, shape index: {}]   ;;  %s2153_s1 = inlined_call_operand.vmem [shape: bf16[576,64], index: 1, kind: input, shape index: {}]   ;;  %s2154_s2 = inlined_call_operand.vmem [shape: f32[1,64], index: 2, kind: input, shape index: {}]   ;;  %s2155_s3 = inlined_call_operand.vmem [shape: f32[1,64], index: 3, kind: input, shape index: {}]   ;;  %s2156_s4 = inlined_call_operand.vmem [shape: f32[1,64], index: 4, kind: input, shape index: {}]   ;;  %s2157_s5 = inlined_call_operand.vmem [shape: bf16[256,64], index: 5, kind: output, shape index: {}]  }
   0x1 LB: > { %v1537_v2 = vld [vmem:[%s2153_s1 + $0x40] sm:$0xff]   ;;  %v1541_v6 = vld [vmem:[%s2153_s1 + $0x48] sm:$0xff]   ;;  %v1545_v10 = vld [vmem:[%s2153_s1 + $0x50] sm:$0xff]   ;;  %s1211_s10 = sshll.u32 %s1657_s18, 7  ;;  %vm578_vm0 = vcmask 523264   ;;  %s26_s18 = sadd.s32 1, %s1657_s18   ;;  %s1657_s18 = sphi %s1697_s18, %s26_s18   ;;  %v1653_v1 = vphi %v1695_v1, %v2159_v1   ;;  %v1649_v0 = vphi %v1693_v0, %v2158_v0  }
   0x2   : > { %v1538_v3 = vld [vmem:[%s2153_s1 + $0xc0] sm:$0xff]   ;;  %1333 = vmatprep.subr.bf16.mxu0 %v1537_v2  ;;  %v1542_v7 = vld [vmem:[%s2153_s1 + $0xc8] sm:$0xff]   ;;  %v1546_v11 = vld [vmem:[%s2153_s1 + $0xd0] sm:$0xff]   ;;  %s30_s17 = sshra.s32 %s1211_s10, 3  ;;  %s1921_s28 = scalar_lea.vmem [#allocation2], %s1211_s10 }
   0x3   : > { %v1539_v4 = vld [vmem:[%s2153_s1] sm:$0xff]   ;;  %1397 = vmatprep.subr.bf16.mxu1 %v1538_v3  ;;  %v1543_v8 = vld [vmem:[%s2153_s1 + $0x8] sm:$0xff]   ;;  %v1547_v12 = vld [vmem:[%s2153_s1 + $0x10] sm:$0xff]   ;;  %s1316_s25 = smul.u32 20, %s30_s17  ;;  %p23_p0 = scmp.ge.s32.totalorder %s26_s18, 2  }
   0x4   : > { %v1540_v5 = vld [vmem:[%s2153_s1 + $0x80] sm:$0xff]   ;;  %1334 = vmatpush3.bf16.msra.mxu0 %v1539_v4  ;;  %v1544_v9 = vld [vmem:[%s2153_s1 + $0x88] sm:$0xff]   ;;  %v1548_v13 = vld [vmem:[%s2153_s1 + $0x90] sm:$0xff]  }
   0x5   : > { %1398 = vmatpush3.bf16.msra.mxu1 %v1540_v5  ;;  %1335 = vmatprep.subr.bf16.mxu0 %v1541_v6  ;;  %v1549_v14 = vld [vmem:[%s2153_s1 + $0x58] sm:$0xff]   ;;  %v1553_v18 = vld [vmem:[%s2153_s1 + $0x60] sm:$0xff]   ;;  %v1557_v22 = vld [vmem:[%s2153_s1 + $0x68] sm:$0xff]   ;;  %s1804_s12 = scalar_lea.vmem %s2152_s0, %s1316_s25  ;;  %s2048_s0 = smov (%p23_p0), 0  }
   0x6   : > { %1399 = vmatprep.subr.bf16.mxu1 %v1542_v7  ;;  %v1550_v15 = vld [vmem:[%s2153_s1 + $0xd8] sm:$0xff]   ;;  %v1554_v19 = vld [vmem:[%s2153_s1 + $0xe0] sm:$0xff]   ;;  %v1558_v23 = vld [vmem:[%s2153_s1 + $0xe8] sm:$0xff]  }
   0x7   : > { %v1551_v16 = vld [vmem:[%s2153_s1 + $0x18] sm:$0xff]   ;;  %v1555_v20 = vld [vmem:[%s2153_s1 + $0x20] sm:$0xff]   ;;  %v1559_v24 = vld [vmem:[%s2153_s1 + $0x28] sm:$0xff]  }
   0x8   : > { %1336 = vmatpush3.bf16.msra.mxu0 %v1543_v8  ;;  %v1552_v17 = vld [vmem:[%s2153_s1 + $0x98] sm:$0xff]   ;;  %v1556_v21 = vld [vmem:[%s2153_s1 + $0xa0] sm:$0xff]   ;;  %v1560_v25 = vld [vmem:[%s2153_s1 + $0xa8] sm:$0xff]  }
   0x9   : > { %1400 = vmatpush3.bf16.msra.mxu1 %v1544_v9  ;;  %1337 = vmatprep.subr.bf16.mxu0 %v1545_v10  ;;  %v1561_v26 = vld [vmem:[%s2153_s1 + $0x70] sm:$0xff]   ;;  %v1565_v30 = vld [vmem:[%s2153_s1 + $0x78] sm:$0xff]   ;;  %v1574_v37 = vld [vmem:[%s1804_s12 + $0xc] ss:$20 sps:$4 sm:$0xff]  }
   0xa   : > { %1401 = vmatprep.subr.bf16.mxu1 %v1546_v11  ;;  %v1562_v27 = vld [vmem:[%s2153_s1 + $0xf0] sm:$0xff]   ;;  %v1566_v31 = vld [vmem:[%s2153_s1 + $0xf8] sm:$0xff]   ;;  %v1575_v38 = vld [vmem:[%s2153_s1 + $0x100] sm:$0xff]   ;;  %732 = vmatprep.mubr.bf16.mxu1 %v1574_v37 }
   0xb   : > { %v1563_v28 = vld [vmem:[%s2153_s1 + $0x30] sm:$0xff]   ;;  %v1567_v32 = vld [vmem:[%s2153_s1 + $0x38] sm:$0xff]   ;;  %v1576_v39 = vld [vmem:[%s1804_s12 + $0x2c] ss:$20 sps:$4 sm:$0xff]  }
   0xc   : > { %1338 = vmatpush3.bf16.msra.mxu0 %v1547_v12  ;;  %v1564_v29 = vld [vmem:[%s2153_s1 + $0xb0] sm:$0xff]   ;;  %v1568_v33 = vld [vmem:[%s2153_s1 + $0xb8] sm:$0xff]   ;;  %v1588_v44 = vld [vmem:[%s2153_s1 + $0x108] sm:$0xff]  }
   0xd   : > { %1402 = vmatpush3.bf16.msra.mxu1 %v1548_v13  ;;  %1339 = vmatprep.subr.bf16.mxu0 %v1549_v14  ;;  %v1569_v34 = vld [vmem:[%s1804_s12] ss:$20 sps:$4 sm:$0xff]   ;;  %v1571_v35 = vld [vmem:[%s1804_s12 + $0x4] ss:$20 sps:$4 sm:$0xff]   ;;  %v1572_v36 = vld [vmem:[%s1804_s12 + $0x8] ss:$20 sps:$4 sm:$0xff]  }
   0xe   : > { %1403 = vmatprep.subr.bf16.mxu1 %v1550_v15  ;;  %635 = vmatprep.mubr.bf16.mxu0 %v1571_v35  ;;  %v1578_v40 = vld [vmem:[%s1804_s12 + $0x34] ss:$20 sps:$4 sm:$0xff]   ;;  %v1581_v42 = vld [vmem:[%s1804_s12 + $0x30] ss:$20 sps:$4 sm:$0xff]   ;;  %v1587_v47 = vld [vmem:[%s1804_s12 + $0x58] ss:$20 sps:$4 sm:$0xff]  }
   0xf   : > { %v1580_v41 = vld [vmem:[%s1804_s12 + $0x28] ss:$20 sps:$4 sm:$0xff]   ;;  %v1586_v46 = vld [vmem:[%s1804_s12 + $0x50] ss:$20 sps:$4 sm:$0xff]   ;;  %v1593_v52 = vld [vmem:[%s1804_s12 + $0x78] ss:$20 sps:$4 sm:$0xff]  }
  0x10   : > { %1340 = vmatpush3.bf16.msra.mxu0 %v1551_v16  ;;  %v1582_v43 = vld [vmem:[%s1804_s12 + $0x54] ss:$20 sps:$4 sm:$0xff]   ;;  %v1584_v45 = vld [vmem:[%s1804_s12 + $0x5c] ss:$20 sps:$4 sm:$0xff]   ;;  %v1591_v50 = vld [vmem:[%s1804_s12 + $0x84] ss:$20 sps:$4 sm:$0xff]  }
  0x11   : > { %1404 = vmatpush3.bf16.msra.mxu1 %v1552_v17  ;;  %1341 = vmatprep.subr.bf16.mxu0 %v1553_v18  ;;  %v1601_v48 = vld [vmem:[%s2153_s1 + $0x110] sm:$0xff]   ;;  %v1614_v51 = vld [vmem:[%s2153_s1 + $0x118] sm:$0xff]   ;;  %v1597_v55 = vld [vmem:[%s1804_s12 + $0xac] ss:$20 sps:$4 sm:$0xff]  }
  0x12   : > { %1405 = vmatprep.subr.bf16.mxu1 %v1554_v19  ;;  %v1589_v49 = vld [vmem:[%s1804_s12 + $0x7c] ss:$20 sps:$4 sm:$0xff]   ;;  %v1594_v53 = vld [vmem:[%s1804_s12 + $0x80] ss:$20 sps:$4 sm:$0xff]   ;;  %v1595_v54 = vld [vmem:[%s1804_s12 + $0xa4] ss:$20 sps:$4 sm:$0xff]  }
  0x13   : > { %v1599_v56 = vld [vmem:[%s1804_s12 + $0xa0] ss:$20 sps:$4 sm:$0xff]   ;;  %v1600_v57 = vld [vmem:[%s1804_s12 + $0xa8] ss:$20 sps:$4 sm:$0xff]   ;;  %v1607_v61 = vld [vmem:[%s1804_s12 + $0xd0] ss:$20 sps:$4 sm:$0xff]  }
  0x14   : > { %1342 = vmatpush3.bf16.msra.mxu0 %v1555_v20  ;;  %v1602_v58 = vld [vmem:[%s1804_s12 + $0xcc] ss:$20 sps:$4 sm:$0xff]   ;;  %v1604_v59 = vld [vmem:[%s1804_s12 + $0xd4] ss:$20 sps:$4 sm:$0xff]   ;;  %v1610_v63 = vld [vmem:[%s1804_s12 + $0xfc] ss:$20 sps:$4 sm:$0xff]  }
  0x15   : > { %1406 = vmatpush3.bf16.msra.mxu1 %v1556_v21  ;;  %1343 = vmatprep.subr.bf16.mxu0 %v1557_v22  ;;  %v1606_v60 = vld [vmem:[%s1804_s12 + $0xc8] ss:$20 sps:$4 sm:$0xff]   ;;  %v1612_v2 = vld [vmem:[%s1804_s12 + $0xf0] ss:$20 sps:$4 sm:$0xff]   ;;  %v1613_v3 = vld [vmem:[%s1804_s12 + $0xf8] ss:$20 sps:$4 sm:$0xff]  }
  0x16   : > { %1407 = vmatprep.subr.bf16.mxu1 %v1558_v23  ;;  %v1608_v62 = vld [vmem:[%s1804_s12 + $0xf4] ss:$20 sps:$4 sm:$0xff]   ;;  %v1615_v4 = vld [vmem:[%s1804_s12 + $0x11c] ss:$20 sps:$4 sm:$0xff]   ;;  %v1617_v5 = vld [vmem:[%s1804_s12 + $0x124] ss:$20 sps:$4 sm:$0xff]  }
  0x17   : > { %v1619_v6 = vld [vmem:[%s1804_s12 + $0x118] ss:$20 sps:$4 sm:$0xff]   ;;  %v1620_v7 = vld [vmem:[%s1804_s12 + $0x120] ss:$20 sps:$4 sm:$0xff]   ;;  %v1621_v8 = vld [vmem:[%s1804_s12 + $0x10] ss:$20 sps:$4 sm:$0xff]  }
  0x18   : > { %1344 = vmatpush3.bf16.msra.mxu0 %v1559_v24  ;;  %v1622_v9 = vld [vmem:[%s1804_s12 + $0xb0] ss:$20 sps:$4 sm:$0xff]   ;;  %v1623_v10 = vld [vmem:[%s1804_s12 + $0x38] ss:$20 sps:$4 sm:$0xff]   ;;  %v1625_v12 = vld [vmem:[%s1804_s12 + $0x60] ss:$20 sps:$4 sm:$0xff]  }
  0x19   : > { %1408 = vmatpush3.bf16.msra.mxu1 %v1560_v25  ;;  %1345 = vmatprep.subr.bf16.mxu0 %v1561_v26  ;;  %v1624_v11 = vld [vmem:[%s1804_s12 + $0xd8] ss:$20 sps:$4 sm:$0xff]   ;;  %v1626_v13 = vld [vmem:[%s1804_s12 + $0x100] ss:$20 sps:$4 sm:$0xff]   ;;  %v1627_v14 = vld [vmem:[%s1804_s12 + $0x88] ss:$20 sps:$4 sm:$0xff]  }
  0x1a   : > { %1409 = vmatprep.subr.bf16.mxu1 %v1562_v27  ;;  %v1628_v15 = vld [vmem:[%s1804_s12 + $0x128] ss:$20 sps:$4 sm:$0xff]   ;;  %v1875_v17 = vld [vmem:[%s2154_s2] ss:$0 sm:$0xff] }
  0x1c   : > { %1346 = vmatpush3.bf16.msra.mxu0 %v1563_v28 }
  0x1d   : > { %1410 = vmatpush3.bf16.msra.mxu1 %v1564_v29  ;;  %1347 = vmatprep.subr.bf16.mxu0 %v1565_v30 }
  0x1e   : > { %1411 = vmatprep.subr.bf16.mxu1 %v1566_v31 }
  0x20   : > { %1348 = vmatpush3.bf16.msra.mxu0 %v1567_v32 }
  0x21   : > { %1412 = vmatpush3.bf16.msra.mxu1 %v1568_v33  ;;  %1473 = vmatprep.subr.bf16.mxu0 %v1575_v38 }
  0x22   : > { %1497 = vmatprep.subr.bf16.mxu1 %v1575_v38 }
  0x23   : > { %636 = vmatmul.mubr.bf16.vlgmr.msra.gmra.mrb[0].mxu0 %v1569_v34 }
  0x24   : > { %733 = vmatmul.mubr.bf16.vlgmr.msra.gmra.mrb[0].mxu1 %v1572_v36  ;;  %1474 = vmatpush3.bf16.msra.mxu0 %v1575_v38 }
  0x25   : > { %643 = vmatprep.mubr.bf16.mxu0 %v1576_v39  ;;  %740 = vmatprep.mubr.bf16.mxu1 %v1578_v40 }
  0x26   : > { %1501 = vmatpush3.bf16.msra.mxu1 %v1575_v38  ;;  %1475 = vmatprep.subr.bf16.mxu0 %v1588_v44 }
  0x27   : > { %1498 = vmatprep.subr.bf16.mxu1 %v1588_v44 }
  0x28   : > { %1476 = vmatpush3.bf16.msra.mxu0 %v1588_v44 }
  0x29   : > { %1477 = vmatprep.subr.bf16.mxu0 %v1601_v48 }
  0x2a   : > { %1502 = vmatpush3.bf16.msra.mxu1 %v1588_v44 }
  0x2b   : > { %644 = vmatmul.mubr.bf16.gmra.mrb[4].mxu0 %v1580_v41  ;;  %1499 = vmatprep.subr.bf16.mxu1 %v1601_v48 }
  0x2c   : > { %741 = vmatmul.mubr.bf16.gmra.mrb[4].mxu1 %v1581_v42  ;;  %651 = vmatprep.mubr.bf16.mxu0 %v1582_v43 }
  0x2d   : > { %748 = vmatprep.mubr.bf16.mxu1 %v1584_v45  ;;  %1478 = vmatpush3.bf16.msra.mxu0 %v1601_v48 }
  0x2e   : > { %1503 = vmatpush3.bf16.msra.mxu1 %v1601_v48  ;;  %1479 = vmatprep.subr.bf16.mxu0 %v1614_v51 }
  0x2f   : > { %1500 = vmatprep.subr.bf16.mxu1 %v1614_v51 }
  0x31   : > { %1480 = vmatpush3.bf16.msra.mxu0 %v1614_v51 }
  0x32   : > { %1504 = vmatpush3.bf16.msra.mxu1 %v1614_v51 }
  0x33   : > { %652 = vmatmul.mubr.bf16.gmra.mrb[8].mxu0 %v1586_v46 }
  0x34   : > { %749 = vmatmul.mubr.bf16.gmra.mrb[8].mxu1 %v1587_v47  ;;  %659 = vmatprep.mubr.bf16.mxu0 %v1589_v49 }
  0x35   : > { %756 = vmatprep.mubr.bf16.mxu1 %v1591_v50 }
  0x3b   : > { %660 = vmatmul.mubr.bf16.gmra.mrb[12].mxu0 %v1593_v52 }
  0x3c   : > { %757 = vmatmul.mubr.bf16.gmra.mrb[12].mxu1 %v1594_v53  ;;  %667 = vmatprep.mubr.bf16.mxu0 %v1595_v54 }
  0x3d   : > { %764 = vmatprep.mubr.bf16.mxu1 %v1597_v55 }
  0x43   : > { %668 = vmatmul.mubr.bf16.gmra.mrb[16].mxu0 %v1599_v56 }
  0x44   : > { %765 = vmatmul.mubr.bf16.gmra.mrb[16].mxu1 %v1600_v57  ;;  %675 = vmatprep.mubr.bf16.mxu0 %v1602_v58 }
  0x45   : > { %772 = vmatprep.mubr.bf16.mxu1 %v1604_v59 }
  0x4b   : > { %676 = vmatmul.mubr.bf16.gmra.mrb[20].mxu0 %v1606_v60 }
  0x4c   : > { %773 = vmatmul.mubr.bf16.gmra.mrb[20].mxu1 %v1607_v61  ;;  %683 = vmatprep.mubr.bf16.mxu0 %v1608_v62 }
  0x4d   : > { %780 = vmatprep.mubr.bf16.mxu1 %v1610_v63 }
  0x53   : > { %684 = vmatmul.mubr.bf16.gmra.mrb[24].mxu0 %v1612_v2 }
  0x54   : > { %781 = vmatmul.mubr.bf16.gmra.mrb[24].mxu1 %v1613_v3  ;;  %691 = vmatprep.mubr.bf16.mxu0 %v1615_v4 }
  0x55   : > { %788 = vmatprep.mubr.bf16.mxu1 %v1617_v5 }
  0x5b   : > { %692 = vmatmul.mubr.bf16.gmra.mrb[28].mxu0 %v1619_v6 }
  0x5c   : > { %789 = vmatmul.mubr.bf16.gmra.mrb[28].mxu1 %v1620_v7  ;;  %1481 = vmatprep.mubr.msk.bf16.mxu0 %vm578_vm0, %v1621_v8 }
  0x5d   : > { %1489 = vmatprep.mubr.msk.bf16.mxu1 %vm578_vm0, %v1622_v9 }
  0x63   : > { %1482 = vmatmul.mubr.msk.bf16.vlgmr.msra.gmra.mrb[32].mxu0 %vm578_vm0, %v1623_v10 }
  0x64   : > { %1490 = vmatmul.mubr.msk.bf16.vlgmr.msra.gmra.mrb[32].mxu1 %vm578_vm0, %v1624_v11  ;;  %1485 = vmatprep.mubr.msk.bf16.mxu0 %vm578_vm0, %v1625_v12 }
  0x65   : > { %1493 = vmatprep.mubr.msk.bf16.mxu1 %vm578_vm0, %v1626_v13 }
  0x6b   : > { %1486 = vmatmul.mubr.msk.bf16.gmra.mrb[36].mxu0 %vm578_vm0, %v1627_v14 }
  0x6c   : > { %1494 = vmatmul.mubr.msk.bf16.gmra.mrb[36].mxu1 %vm578_vm0, %v1628_v15 }
  0xf6   : > { %v1349_v16 = vpop.f32.mrb[0].mxu0 }
  0xf7   : > { %v1350_v18 = vpop.f32.mrb[1].mxu0  ;;  %v1413_v19 = vpop.f32.mrb[0].mxu1 }
  0xf8   : > { %v1351_v20 = vadd.f32 %v1350_v18, %v1349_v16  ;;  %v1352_v21 = vpop.f32.mrb[2].mxu0  ;;  %v1414_v22 = vpop.f32.mrb[1].mxu1 }
  0xf9   : > { %v1353_v23 = vpop.f32.mrb[3].mxu0  ;;  %v1415_v24 = vadd.f32 %v1414_v22, %v1413_v19  ;;  %v1416_v25 = vpop.f32.mrb[2].mxu1 }
  0xfa   : > { %v638_v26 = vadd.f32 %v1351_v20, %v1875_v17  ;;  %v1354_v27 = vadd.f32 %v1353_v23, %v1352_v21  ;;  %v1417_v28 = vpop.f32.mrb[3].mxu1 }
  0xfb   : > { %v1418_v29 = vadd.f32 %v1417_v28, %v1416_v25 }
  0xfc   : > { %v641_v30 = vadd.f32 %v1354_v27, %v1875_v17  ;;  %v1879_v31 = vadd.f32 %v1415_v24, %v638_v26 }
  0xfe   : > { %v1355_v32 = vpop.f32.mrb[4].mxu0  ;;  %v1881_v33 = vadd.f32 %v1418_v29, %v641_v30 }
  0xff   : > { %v1356_v34 = vpop.f32.mrb[5].mxu0  ;;  %v1419_v35 = vpop.f32.mrb[4].mxu1 }
 0x100   : > { %v1357_v36 = vadd.f32 %v1356_v34, %v1355_v32  ;;  %v1358_v37 = vpop.f32.mrb[6].mxu0  ;;  %v1420_v38 = vpop.f32.mrb[5].mxu1 }
 0x101   : > { %v1359_v39 = vpop.f32.mrb[7].mxu0  ;;  %v1421_v40 = vadd.f32 %v1420_v38, %v1419_v35  ;;  %v1422_v41 = vpop.f32.mrb[6].mxu1 }
 0x102   : > { %v646_v42 = vadd.f32 %v1357_v36, %v1875_v17  ;;  %v1360_v43 = vadd.f32 %v1359_v39, %v1358_v37  ;;  %v1423_v44 = vpop.f32.mrb[7].mxu1 }
 0x103   : > { %v1424_v45 = vadd.f32 %v1423_v44, %v1422_v41 }
 0x104   : > { %v649_v46 = vadd.f32 %v1360_v43, %v1875_v17  ;;  %v1885_v47 = vadd.f32 %v1421_v40, %v646_v42 }
 0x106   : > { %v1361_v48 = vpop.f32.mrb[8].mxu0  ;;  %v1887_v49 = vadd.f32 %v1424_v45, %v649_v46 }
 0x107   : > { %v1362_v50 = vpop.f32.mrb[9].mxu0  ;;  %v1425_v51 = vpop.f32.mrb[8].mxu1 }
 0x108   : > { %v1363_v52 = vadd.f32 %v1362_v50, %v1361_v48  ;;  %v1364_v53 = vpop.f32.mrb[10].mxu0  ;;  %v1426_v54 = vpop.f32.mrb[9].mxu1 }
 0x109   : > { %v1365_v55 = vpop.f32.mrb[11].mxu0  ;;  %v1427_v56 = vadd.f32 %v1426_v54, %v1425_v51  ;;  %v1428_v57 = vpop.f32.mrb[10].mxu1 }
 0x10a   : > { %v654_v58 = vadd.f32 %v1363_v52, %v1875_v17  ;;  %v1366_v59 = vadd.f32 %v1365_v55, %v1364_v53  ;;  %v1429_v60 = vpop.f32.mrb[11].mxu1 }
 0x10b   : > { %v1430_v61 = vadd.f32 %v1429_v60, %v1428_v57 }
 0x10c   : > { %v657_v62 = vadd.f32 %v1366_v59, %v1875_v17  ;;  %v1891_v63 = vadd.f32 %v1427_v56, %v654_v58 }
 0x10e   : > { %v1367_v2 = vpop.f32.mrb[12].mxu0  ;;  %v1893_v3 = vadd.f32 %v1430_v61, %v657_v62 }
 0x10f   : > { %v1368_v4 = vpop.f32.mrb[13].mxu0  ;;  %v1431_v5 = vpop.f32.mrb[12].mxu1 }
 0x110   : > { %v1369_v6 = vadd.f32 %v1368_v4, %v1367_v2  ;;  %v1370_v7 = vpop.f32.mrb[14].mxu0  ;;  %v1432_v8 = vpop.f32.mrb[13].mxu1 }
 0x111   : > { %v1371_v9 = vpop.f32.mrb[15].mxu0  ;;  %v1433_v10 = vadd.f32 %v1432_v8, %v1431_v5  ;;  %v1434_v11 = vpop.f32.mrb[14].mxu1 }
 0x112   : > { %v662_v12 = vadd.f32 %v1369_v6, %v1875_v17  ;;  %v1372_v13 = vadd.f32 %v1371_v9, %v1370_v7  ;;  %v1435_v14 = vpop.f32.mrb[15].mxu1 }
 0x113   : > { %v1436_v15 = vadd.f32 %v1435_v14, %v1434_v11 }
 0x114   : > { %v665_v16 = vadd.f32 %v1372_v13, %v1875_v17  ;;  %v1897_v18 = vadd.f32 %v1433_v10, %v662_v12 }
 0x116   : > { %v1373_v19 = vpop.f32.mrb[16].mxu0  ;;  %v1899_v20 = vadd.f32 %v1436_v15, %v665_v16 }
 0x117   : > { %v1374_v21 = vpop.f32.mrb[17].mxu0  ;;  %v1437_v22 = vpop.f32.mrb[16].mxu1 }
 0x118   : > { %v1375_v23 = vadd.f32 %v1374_v21, %v1373_v19  ;;  %v1376_v24 = vpop.f32.mrb[18].mxu0  ;;  %v1438_v25 = vpop.f32.mrb[17].mxu1 }
 0x119   : > { %v1377_v26 = vpop.f32.mrb[19].mxu0  ;;  %v1439_v27 = vadd.f32 %v1438_v25, %v1437_v22  ;;  %v1440_v28 = vpop.f32.mrb[18].mxu1 }
 0x11a   : > { %v670_v29 = vadd.f32 %v1375_v23, %v1875_v17  ;;  %v1378_v30 = vadd.f32 %v1377_v26, %v1376_v24  ;;  %v1441_v32 = vpop.f32.mrb[19].mxu1 }
 0x11b   : > { %v1442_v34 = vadd.f32 %v1441_v32, %v1440_v28 }
 0x11c   : > { %v673_v35 = vadd.f32 %v1378_v30, %v1875_v17  ;;  %v767_v36 = vadd.f32 %v1439_v27, %v670_v29 }
 0x11e   : > { %v1379_v37 = vpop.f32.mrb[20].mxu0  ;;  %v1903_v38 = vadd.f32 %v1442_v34, %v673_v35 }
 0x11f   : > { %v1380_v39 = vpop.f32.mrb[21].mxu0  ;;  %v1443_v40 = vpop.f32.mrb[20].mxu1 }
 0x120   : > { %v1381_v41 = vadd.f32 %v1380_v39, %v1379_v37  ;;  %v1382_v42 = vpop.f32.mrb[22].mxu0  ;;  %v1444_v43 = vpop.f32.mrb[21].mxu1 }
 0x121   : > { %v1383_v44 = vpop.f32.mrb[23].mxu0  ;;  %v1445_v45 = vadd.f32 %v1444_v43, %v1443_v40  ;;  %v1446_v46 = vpop.f32.mrb[22].mxu1 }
 0x122   : > { %v678_v48 = vadd.f32 %v1381_v41, %v1875_v17  ;;  %v1384_v50 = vadd.f32 %v1383_v44, %v1382_v42  ;;  %v1447_v51 = vpop.f32.mrb[23].mxu1 }
 0x123   : > { %v1448_v52 = vadd.f32 %v1447_v51, %v1446_v46 }
 0x124   : > { %v681_v53 = vadd.f32 %v1384_v50, %v1875_v17  ;;  %v775_v54 = vadd.f32 %v1445_v45, %v678_v48 }
 0x126   : > { %v1385_v55 = vpop.f32.mrb[24].mxu0  ;;  %v778_v56 = vadd.f32 %v1448_v52, %v681_v53 }
 0x127   : > { %v1386_v57 = vpop.f32.mrb[25].mxu0  ;;  %v1449_v58 = vpop.f32.mrb[24].mxu1 }
 0x128   : > { %v1387_v59 = vadd.f32 %v1386_v57, %v1385_v55  ;;  %v1388_v60 = vpop.f32.mrb[26].mxu0  ;;  %v1450_v61 = vpop.f32.mrb[25].mxu1 }
 0x129   : > { %v1389_v62 = vpop.f32.mrb[27].mxu0  ;;  %v1451_v2 = vadd.f32 %v1450_v61, %v1449_v58  ;;  %v1452_v4 = vpop.f32.mrb[26].mxu1 }
 0x12a   : > { %v686_v5 = vadd.f32 %v1387_v59, %v1875_v17  ;;  %v1390_v6 = vadd.f32 %v1389_v62, %v1388_v60  ;;  %v1453_v7 = vpop.f32.mrb[27].mxu1 }
 0x12b   : > { %v1454_v8 = vadd.f32 %v1453_v7, %v1452_v4 }
 0x12c   : > { %v689_v9 = vadd.f32 %v1390_v6, %v1875_v17  ;;  %v783_v10 = vadd.f32 %v1451_v2, %v686_v5 }
 0x12e   : > { %v1391_v11 = vpop.f32.mrb[28].mxu0  ;;  %v1909_v12 = vadd.f32 %v1454_v8, %v689_v9 }
 0x12f   : > { %v1392_v13 = vpop.f32.mrb[29].mxu0  ;;  %v1455_v14 = vpop.f32.mrb[28].mxu1 }
 0x130   : > { %v1393_v15 = vadd.f32 %v1392_v13, %v1391_v11  ;;  %v1394_v16 = vpop.f32.mrb[30].mxu0  ;;  %v1456_v19 = vpop.f32.mrb[29].mxu1 }
 0x131   : > { %v1395_v21 = vpop.f32.mrb[31].mxu0  ;;  %v1457_v22 = vadd.f32 %v1456_v19, %v1455_v14  ;;  %v1458_v23 = vpop.f32.mrb[30].mxu1 }
 0x132   : > { %v694_v24 = vadd.f32 %v1393_v15, %v1875_v17  ;;  %v1396_v25 = vadd.f32 %v1395_v21, %v1394_v16  ;;  %v1459_v26 = vpop.f32.mrb[31].mxu1 }
 0x133   : > { %v1460_v27 = vadd.f32 %v1459_v26, %v1458_v23 }
 0x134   : > { %v697_v28 = vadd.f32 %v1396_v25, %v1875_v17  ;;  %v791_v29 = vadd.f32 %v1457_v22, %v694_v24 }
 0x136   : > { %v1483_v30 = vpop.f32.mrb[32].mxu0  ;;  %v1913_v32 = vadd.f32 %v1460_v27, %v697_v28 }
 0x137   : > { %v840_v34 = vadd.f32 %v1483_v30, %v1885_v47  ;;  %v1491_v35 = vpop.f32.mrb[32].mxu1  ;;  %v831_v37 = vpop.f32.mrb[33].mxu0 }
 0x138   : > { %v1916_v39 = vadd.f32 %v1491_v35, %v775_v54  ;;  %v832_v40 = vadd.f32 %v831_v37, %v1879_v31  ;;  %v863_v41 = vpop.f32.mrb[33].mxu1  ;;  %v1484_v42 = vpop.f32.mrb[34].mxu0 }
 0x139   : > { %897 = vst.msk [vmem:[%s1921_s28 + $0x10] sm:$0xff] %vm578_vm0, %v840_v34  ;;  %v1925_v17 = vadd.f32 %v863_v41, %v767_v36  ;;  %v843_v47 = vadd.f32 %v1484_v42, %v1887_v49  ;;  %v1492_v43 = vpop.f32.mrb[34].mxu1  ;;  %v834_v31 = vpop.f32.mrb[35].mxu0  ;;  %v914_v48 = vsel %vm578_vm0, %v840_v34, 0.0  ;;  %v951_v51 = vmul.f32 %v840_v34, %v840_v34 }
 0x13a   : > { %905 = vst.msk [vmem:[%s1921_s28 + $0x50] sm:$0xff] %vm578_vm0, %v1916_v39  ;;  %895 = vst.msk [vmem:[%s1921_s28] sm:$0xff] %vm578_vm0, %v832_v40  ;;  %v866_v44 = vpop.f32.mrb[35].mxu1  ;;  %v949_v45 = vmul.f32 %v832_v40, %v832_v40  ;;  %v1938_v36 = vadd.f32 %v1492_v43, %v778_v56  ;;  %v835_v49 = vadd.f32 %v834_v31, %v1881_v33  ;;  %v911_v52 = vsel %vm578_vm0, %v832_v40, 0.0 }
 0x13b   : > { %903 = vst.msk [vmem:[%s1921_s28 + $0x40] sm:$0xff] %vm578_vm0, %v1925_v17  ;;  %898 = vst.msk [vmem:[%s1921_s28 + $0x18] sm:$0xff] %vm578_vm0, %v843_v47  ;;  %v1942_v46 = vadd.f32 %v866_v44, %v1903_v38  ;;  %v952_v61 = vmul.f32 %v843_v47, %v843_v47  ;;  %v968_v9 = vsel %vm578_vm0, %v951_v51, 0.0  ;;  %v916_v11 = vsel %vm578_vm0, %v843_v47, 0.0 }
 0x13c   : > { %906 = vst.msk [vmem:[%s1921_s28 + $0x58] sm:$0xff] %vm578_vm0, %v1938_v36  ;;  %896 = vst.msk [vmem:[%s1921_s28 + $0x8] sm:$0xff] %vm578_vm0, %v835_v49  ;;  %v912_v53 = vsel %vm578_vm0, %v835_v49, 0.0  ;;  %v950_v54 = vmul.f32 %v835_v49, %v835_v49  ;;  %v965_v55 = vsel %vm578_vm0, %v949_v45, 0.0  ;;  %v957_v37 = vmul.f32 %v1925_v17, %v1925_v17 }
 0x13d   : > { %904 = vst.msk [vmem:[%s1921_s28 + $0x48] sm:$0xff] %vm578_vm0, %v1942_v46  ;;  %v913_v56 = vadd.f32 %v912_v53, %v911_v52  ;;  %v970_v15 = vsel %vm578_vm0, %v952_v61, 0.0  ;;  %v926_v42 = vsel %vm578_vm0, %v1925_v17, 0.0  ;;  %v958_v43 = vmul.f32 %v1942_v46, %v1942_v46 }
 0x13e   : > { %v1487_v50 = vpop.f32.mrb[36].mxu0  ;;  %v966_v62 = vsel %vm578_vm0, %v950_v54, 0.0  ;;  %v928_v45 = vsel %vm578_vm0, %v1942_v46, 0.0  ;;  %v930_v17 = vsel %vm578_vm0, %v1916_v39, 0.0  ;;  %v960_v53 = vmul.f32 %v1938_v36, %v1938_v36 }
 0x13f   : > { %v1495_v33 = vpop.f32.mrb[36].mxu1  ;;  %v847_v38 = vpop.f32.mrb[37].mxu0  ;;  %v856_v57 = vadd.f32 %v1487_v50, %v1897_v18  ;;  %v915_v7 = vadd.f32 %v914_v48, %v913_v56  ;;  %v967_v8 = vadd.f32 %v966_v62, %v965_v55  ;;  %v959_v48 = vmul.f32 %v1916_v39, %v1916_v39 }
 0x140   : > { %v1957_v58 = vadd.f32 %v1495_v33, %v791_v29  ;;  %v879_v59 = vpop.f32.mrb[37].mxu1  ;;  %v1488_v60 = vpop.f32.mrb[38].mxu0  ;;  %v848_v2 = vadd.f32 %v847_v38, %v1891_v63  ;;  %v980_v50 = vsel %vm578_vm0, %v957_v37, 0.0  ;;  %v982_v54 = vsel %vm578_vm0, %v958_v43, 0.0 }
 0x141   : > { %v880_v4 = vadd.f32 %v879_v59, %v783_v10  ;;  %v1496_v5 = vpop.f32.mrb[38].mxu1  ;;  %v850_v6 = vpop.f32.mrb[39].mxu0  ;;  %901 = vst.msk [vmem:[%s1921_s28 + $0x30] sm:$0xff] %vm578_vm0, %v856_v57  ;;  %v969_v13 = vadd.f32 %v968_v9, %v967_v8  ;;  %v917_v14 = vadd.f32 %v916_v11, %v915_v7  ;;  %v859_v19 = vadd.f32 %v1488_v60, %v1899_v20 }
 0x142   : > { %909 = vst.msk [vmem:[%s1921_s28 + $0x70] sm:$0xff] %vm578_vm0, %v1957_v58  ;;  %v882_v18 = vpop.f32.mrb[39].mxu1  ;;  %899 = vst.msk [vmem:[%s1921_s28 + $0x20] sm:$0xff] %vm578_vm0, %v848_v2  ;;  %v918_v63 = vsel %vm578_vm0, %v848_v2, 0.0  ;;  %v953_v10 = vmul.f32 %v848_v2, %v848_v2  ;;  %v891_v23 = vadd.f32 %v1496_v5, %v1913_v32  ;;  %v851_v24 = vadd.f32 %v850_v6, %v1893_v3 }
 0x143   : > { %907 = vst.msk [vmem:[%s1921_s28 + $0x60] sm:$0xff] %vm578_vm0, %v880_v4  ;;  %v919_v21 = vadd.f32 %v918_v63, %v917_v14  ;;  %v971_v22 = vadd.f32 %v970_v15, %v969_v13  ;;  %902 = vst.msk [vmem:[%s1921_s28 + $0x38] sm:$0xff] %vm578_vm0, %v859_v19  ;;  %v883_v25 = vadd.f32 %v882_v18, %v1909_v12  ;;  %v922_v30 = vsel %vm578_vm0, %v856_v57, 0.0 }
 0x144   : > { %v972_v16 = vsel %vm578_vm0, %v953_v10, 0.0  ;;  %910 = vst.msk [vmem:[%s1921_s28 + $0x78] sm:$0xff] %vm578_vm0, %v891_v23  ;;  %900 = vst.msk [vmem:[%s1921_s28 + $0x28] sm:$0xff] %vm578_vm0, %v851_v24  ;;  %v920_v27 = vsel %vm578_vm0, %v851_v24, 0.0  ;;  %v955_v28 = vmul.f32 %v856_v57, %v856_v57  ;;  %v954_v20 = vmul.f32 %v851_v24, %v851_v24 }
 0x145   : > { %v973_v26 = vadd.f32 %v972_v16, %v971_v22  ;;  %v921_v29 = vadd.f32 %v920_v27, %v919_v21  ;;  %908 = vst.msk [vmem:[%s1921_s28 + $0x68] sm:$0xff] %vm578_vm0, %v883_v25  ;;  %v956_v32 = vmul.f32 %v859_v19, %v859_v19  ;;  %v924_v12 = vsel %vm578_vm0, %v859_v19, 0.0 }
 0x146   : > { %v974_v34 = vsel %vm578_vm0, %v954_v20, 0.0  ;;  %v976_v40 = vsel %vm578_vm0, %v955_v28, 0.0  ;;  %v932_v46 = vsel %vm578_vm0, %v1938_v36, 0.0  ;;  %v984_v55 = vsel %vm578_vm0, %v959_v48, 0.0 }
 0x147   : > { %v923_v3 = vadd.f32 %v922_v30, %v921_v29  ;;  %v975_v35 = vadd.f32 %v974_v34, %v973_v26  ;;  %v978_v31 = vsel %vm578_vm0, %v956_v32, 0.0  ;;  %v961_v56 = vmul.f32 %v880_v4, %v880_v4 }
 0x148   : > { %v934_v59 = vsel %vm578_vm0, %v880_v4, 0.0  ;;  %v986_v39 = vsel %vm578_vm0, %v960_v53, 0.0  ;;  %v962_v62 = vmul.f32 %v883_v25, %v883_v25  ;;  %v936_v2 = vsel %vm578_vm0, %v883_v25, 0.0 }
 0x149   : > { %v925_v41 = vadd.f32 %v924_v12, %v923_v3  ;;  %v977_v47 = vadd.f32 %v976_v40, %v975_v35  ;;  %v963_v6 = vmul.f32 %v1957_v58, %v1957_v58  ;;  %v988_v36 = vsel %vm578_vm0, %v961_v56, 0.0 }
 0x14a   : > { %v938_v8 = vsel %vm578_vm0, %v1957_v58, 0.0  ;;  %v964_v9 = vmul.f32 %v891_v23, %v891_v23  ;;  %v990_v11 = vsel %vm578_vm0, %v962_v62, 0.0  ;;  %v940_v63 = vsel %vm578_vm0, %v891_v23, 0.0 }
 0x14b   : > { %v927_v44 = vadd.f32 %v926_v42, %v925_v41  ;;  %v979_v49 = vadd.f32 %v978_v31, %v977_v47  ;;  %v992_v13 = vsel %vm578_vm0, %v963_v6, 0.0  ;;  %v2041_v47 = vld [vmem:[%s2156_s4] sm:$0x1] (%p23_p0) }
 0x14c   : > { %v994_v16 = vsel %vm578_vm0, %v964_v9, 0.0 }
 0x14d   : > { %v929_v51 = vadd.f32 %v928_v45, %v927_v44  ;;  %v981_v52 = vadd.f32 %v980_v50, %v979_v49 }
 0x14f   : > { %v931_v33 = vadd.f32 %v930_v17, %v929_v51  ;;  %v983_v38 = vadd.f32 %v982_v54, %v981_v52 }
 0x151   : > { %v933_v57 = vadd.f32 %v932_v46, %v931_v33  ;;  %v985_v60 = vadd.f32 %v984_v55, %v983_v38 }
 0x153   : > { %v935_v61 = vadd.f32 %v934_v59, %v933_v57  ;;  %v987_v5 = vadd.f32 %v986_v39, %v985_v60 }
 0x155   : > { %v937_v7 = vadd.f32 %v936_v2, %v935_v61  ;;  %v989_v18 = vadd.f32 %v988_v36, %v987_v5 }
 0x157   : > { %v939_v4 = vadd.f32 %v938_v8, %v937_v7  ;;  %v991_v10 = vadd.f32 %v990_v11, %v989_v18 }
 0x159   : > { %v941_v14 = vadd.f32 %v940_v63, %v939_v4  ;;  %v993_v15 = vadd.f32 %v992_v13, %v991_v10 }
 0x15b   : > { %v942_v19 = vrot.slane %v941_v14, 4  ;;  %v995_v21 = vadd.f32 %v994_v16, %v993_v15 }
 0x15d   : > { %v943_v22 = vadd.f32 %v942_v19, %v941_v14  ;;  %v996_v24 = vrot.slane %v995_v21, 4 }
 0x15f   : > { %v944_v25 = vrot.slane %v943_v22, 2  ;;  %v997_v58 = vadd.f32 %v996_v24, %v995_v21 }
 0x161   : > { %v945_v26 = vadd.f32 %v944_v25, %v943_v22  ;;  %v998_v27 = vrot.slane %v997_v58, 2 }
 0x163   : > { %v946_v28 = vrot.slane %v945_v26, 1  ;;  %v999_v29 = vadd.f32 %v998_v27, %v997_v58 }
 0x165   : > { %v947_v20 = vadd.f32 %v946_v28, %v945_v26  ;;  %v1000_v30 = vrot.slane %v999_v29, 1  ;;  %25 = sbr.rel (!%p23_p0) target bundleno = 1 (0x1), region = 58 }
 0x167   : > { %v948_v23 = vadd.f32 %v1653_v1, %v947_v20   ;;  %v1001_v32 = vadd.f32 %v1000_v30, %v999_v29 }
 0x169   : > { %v1002_v3 = vadd.f32 %v1649_v0, %v1001_v32   ;;  %v2159_v1 = vmov %v948_v23  ;;  %v1003_v34 = vmul.f32 (%p23_p0), 0.00390625, %v948_v23 }
 0x16a   :  { %v1007_v1 = vld [vmem:[%s2155_s3] sm:$0x1] (%p23_p0) }
 0x16b   : > { %v2158_v0 = vmov %v1002_v3  ;;  %v1004_v12 = vmul.f32 (%p23_p0), 0.00390625, %v1002_v3  ;;  %v1005_v35 = vmul.f32 (%p23_p0), %v1003_v34, %v1003_v34 }
 0x16d   :  { %v1006_v37 = vsub.f32 %v1004_v12, %v1005_v35 }
 0x16f   :  { %v1008_v40 = vadd.f32 1e-05, %v1006_v37 }
 0x171   :  { %1629 = vrsqrt.f32 %v1008_v40 }
 0x17b   :  { %v1630_v41 = vpop.eup %1629 }
 0x17c   :  { %v2036_v42 = vmul.f32 %v1630_v41, %v1007_v1 }
 0x17e   :  { %v2044_v43 = vmul.f32 %v2036_v42, %v1003_v34 }
 0x180   :  { %v1013_v0 = vsub.f32 %v2041_v47, %v2044_v43 }
 0x181 LB: > { %v1039_v31 = vlaneseq  ;;  %s1298_s1 = sshll.u32 %s1661_s0, 7  ;;  %vm1166_vm1 = vcmask 519168   ;;  %s1019_s0 = sadd.s32 1, %s1661_s0   ;;  %s1661_s0 = sphi %s2048_s0, %s1019_s0  }
 0x182   : > { %s2054_s2 = scalar_lea.vmem [#allocation2], %s1298_s1  ;;  %s1162_s3 = sshra.s32 %s1298_s1, 3 }
 0x183   : > { %v1040_v44 = vshrl.u32 %v1039_v31, 7  ;;  %v1022_v45 = vld [vmem:[%s2054_s2] sm:$0xff]  ;;  %v1023_v48 = vld [vmem:[%s2054_s2 + $0x8] sm:$0xff]  ;;  %v1024_v50 = vld [vmem:[%s2054_s2 + $0x10] sm:$0xff]  ;;  %s1315_s4 = sshll.u32 %s1162_s3, 2  ;;  %p1016_p1 = scmp.ge.s32.totalorder %s1019_s0, 2  }
 0x184   : > { %v1025_v51 = vld [vmem:[%s2054_s2 + $0x18] sm:$0xff]  ;;  %v1026_v17 = vld [vmem:[%s2054_s2 + $0x20] sm:$0xff]  ;;  %v1027_v54 = vld [vmem:[%s2054_s2 + $0x28] sm:$0xff]  ;;  %s2094_s8 = scalar_lea.vmem %s2157_s5, %s1315_s4 }
 0x185   : > { %v1041_v49 = vsub.s32 0, %v1040_v44  ;;  %v1028_v33 = vld [vmem:[%s2054_s2 + $0x30] sm:$0xff]  ;;  %v1029_v46 = vld [vmem:[%s2054_s2 + $0x38] sm:$0xff]  ;;  %v1030_v9 = vld [vmem:[%s2054_s2 + $0x40] sm:$0xff] }
 0x186   : > { %v1031_v13 = vld [vmem:[%s2054_s2 + $0x48] sm:$0xff]  ;;  %v1032_v14 = vld [vmem:[%s2054_s2 + $0x50] sm:$0xff]  ;;  %v1033_v22 = vld [vmem:[%s2054_s2 + $0x58] sm:$0xff] }
 0x187   : > { %v2062_v52 = vrot.slane %v2036_v42, %v1041_v49  ;;  %v2067_v53 = vrot.slane %v1013_v0, %v1041_v49  ;;  %v1034_v24 = vld [vmem:[%s2054_s2 + $0x60] sm:$0xff]  ;;  %v1035_v28 = vld [vmem:[%s2054_s2 + $0x68] sm:$0xff]  ;;  %v1036_v29 = vld [vmem:[%s2054_s2 + $0x70] sm:$0xff] }
 0x188   : > { %v1037_v20 = vld [vmem:[%s2054_s2 + $0x78] sm:$0xff] }
 0x189   : > { %v1044_v38 = vmul.f32 %v2062_v52, %v1022_v45  ;;  %v1045_v55 = vmul.f32 %v2062_v52, %v1023_v48  ;;  %v1046_v56 = vmul.f32 %v2062_v52, %v1024_v50  ;;  %v1047_v57 = vmul.f32 %v2062_v52, %v1025_v51 }
 0x18a   : > { %v1048_v59 = vmul.f32 %v2062_v52, %v1026_v17  ;;  %v1049_v60 = vmul.f32 %v2062_v52, %v1027_v54  ;;  %v1050_v39 = vmul.f32 %v2062_v52, %v1028_v33  ;;  %v1051_v61 = vmul.f32 %v2062_v52, %v1029_v46 }
 0x18b   : > { %v1066_v62 = vadd.f32 %v2067_v53, %v1044_v38  ;;  %v1067_v2 = vadd.f32 %v2067_v53, %v1045_v55  ;;  %v1068_v5 = vadd.f32 %v2067_v53, %v1046_v56  ;;  %v1069_v6 = vadd.f32 %v2067_v53, %v1047_v57 }
 0x18c   : > { %v1070_v36 = vadd.f32 %v2067_v53, %v1048_v59  ;;  %v1071_v7 = vadd.f32 %v2067_v53, %v1049_v60  ;;  %v1072_v8 = vadd.f32 %v2067_v53, %v1050_v39  ;;  %v1073_v18 = vadd.f32 %v2067_v53, %v1051_v61 }
 0x18d   : > { %v1082_v4 = vmax.f32 %v1066_v62, 0.0  ;;  %v1083_v11 = vmax.f32 %v1067_v2, 0.0  ;;  %v1084_v63 = vmax.f32 %v1068_v5, 0.0  ;;  %v1085_v10 = vmax.f32 %v1069_v6, 0.0 }
 0x18e   : > { %v1086_v15 = vmax.f32 %v1070_v36, 0.0  ;;  %v1087_v16 = vmax.f32 %v1071_v7, 0.0  ;;  %v1088_v19 = vmax.f32 %v1072_v8, 0.0  ;;  %v1089_v21 = vmax.f32 %v1073_v18, 0.0 }
 0x18f   : > { %v1317_v25 = vpack.c.bf16 %v1082_v4, %v1082_v4  ;;  %v1318_v58 = vpack.c.bf16 %v1083_v11, %v1083_v11  ;;  %v1319_v26 = vpack.c.bf16 %v1084_v63, %v1084_v63  ;;  %v1320_v27 = vpack.c.bf16 %v1085_v10, %v1085_v10 }
 0x190   : > { %v1321_v30 = vpack.c.bf16 %v1086_v15, %v1086_v15  ;;  %v1322_v23 = vpack.c.bf16 %v1087_v16, %v1087_v16  ;;  %v1323_v32 = vpack.c.bf16 %v1088_v19, %v1088_v19  ;;  %v1324_v3 = vpack.c.bf16 %v1089_v21, %v1089_v21 }
 0x191   : > { %1167 = vst.msk [vmem:[%s2094_s8] sm:$0xf] %vm1166_vm1, %v1317_v25  ;;  %1168 = vst.msk [vmem:[%s2094_s8 + $0x4] sm:$0xf] %vm1166_vm1, %v1318_v58  ;;  %v1052_v34 = vmul.f32 %v2062_v52, %v1030_v9  ;;  %v1053_v12 = vmul.f32 %v2062_v52, %v1031_v13  ;;  %v1054_v35 = vmul.f32 %v2062_v52, %v1032_v14 }
 0x192   : > { %1169 = vst.msk [vmem:[%s2094_s8 + $0x8] sm:$0xf] %vm1166_vm1, %v1319_v26  ;;  %1170 = vst.msk [vmem:[%s2094_s8 + $0xc] sm:$0xf] %vm1166_vm1, %v1320_v27  ;;  %v1055_v37 = vmul.f32 %v2062_v52, %v1033_v22  ;;  %v1056_v40 = vmul.f32 %v2062_v52, %v1034_v24  ;;  %v1057_v1 = vmul.f32 %v2062_v52, %v1035_v28 }
 0x193   : > { %1171 = vst.msk [vmem:[%s2094_s8 + $0x10] sm:$0xf] %vm1166_vm1, %v1321_v30  ;;  %1172 = vst.msk [vmem:[%s2094_s8 + $0x14] sm:$0xf] %vm1166_vm1, %v1322_v23  ;;  %v1058_v41 = vmul.f32 %v2062_v52, %v1036_v29  ;;  %v1059_v31 = vmul.f32 %v2062_v52, %v1037_v20  ;;  %v1074_v44 = vadd.f32 %v2067_v53, %v1052_v34 }
 0x194   : > { %1173 = vst.msk [vmem:[%s2094_s8 + $0x18] sm:$0xf] %vm1166_vm1, %v1323_v32  ;;  %1174 = vst.msk [vmem:[%s2094_s8 + $0x1c] sm:$0xf] %vm1166_vm1, %v1324_v3  ;;  %v1075_v45 = vadd.f32 %v2067_v53, %v1053_v12  ;;  %v1076_v49 = vadd.f32 %v2067_v53, %v1054_v35  ;;  %v1077_v48 = vadd.f32 %v2067_v53, %v1055_v37 }
 0x195   : > { %v1078_v50 = vadd.f32 %v2067_v53, %v1056_v40  ;;  %v1079_v51 = vadd.f32 %v2067_v53, %v1057_v1  ;;  %v1080_v17 = vadd.f32 %v2067_v53, %v1058_v41  ;;  %v1081_v54 = vadd.f32 %v2067_v53, %v1059_v31 }
 0x196   : > { %v1090_v33 = vmax.f32 %v1074_v44, 0.0  ;;  %v1091_v46 = vmax.f32 %v1075_v45, 0.0  ;;  %v1092_v52 = vmax.f32 %v1076_v49, 0.0  ;;  %v1093_v38 = vmax.f32 %v1077_v48, 0.0 }
 0x197   : > { %v1094_v55 = vmax.f32 %v1078_v50, 0.0  ;;  %v1095_v56 = vmax.f32 %v1079_v51, 0.0  ;;  %v1096_v57 = vmax.f32 %v1080_v17, 0.0  ;;  %v1097_v59 = vmax.f32 %v1081_v54, 0.0  ;;  %1018 = sbr.rel (!%p1016_p1) target bundleno = 385 (0x181), region = 69 }
 0x198   : > { %v1325_v60 = vpack.c.bf16 %v1090_v33, %v1090_v33  ;;  %v1326_v39 = vpack.c.bf16 %v1091_v46, %v1091_v46  ;;  %v1327_v61 = vpack.c.bf16 %v1092_v52, %v1092_v52  ;;  %v1328_v53 = vpack.c.bf16 %v1093_v38, %v1093_v38 }
 0x199   : > { %v1329_v62 = vpack.c.bf16 %v1094_v55, %v1094_v55  ;;  %v1330_v2 = vpack.c.bf16 %v1095_v56, %v1095_v56  ;;  %v1331_v5 = vpack.c.bf16 %v1096_v57, %v1096_v57  ;;  %v1332_v6 = vpack.c.bf16 %v1097_v59, %v1097_v59 }
 0x19a   : > { %1175 = vst.msk [vmem:[%s2094_s8 + $0x20] sm:$0xf] %vm1166_vm1, %v1325_v60  ;;  %1176 = vst.msk [vmem:[%s2094_s8 + $0x24] sm:$0xf] %vm1166_vm1, %v1326_v39 }
 0x19b   : > { %1177 = vst.msk [vmem:[%s2094_s8 + $0x28] sm:$0xf] %vm1166_vm1, %v1327_v61  ;;  %1178 = vst.msk [vmem:[%s2094_s8 + $0x2c] sm:$0xf] %vm1166_vm1, %v1328_v53 }
 0x19c   : > { %1179 = vst.msk [vmem:[%s2094_s8 + $0x30] sm:$0xf] %vm1166_vm1, %v1329_v62  ;;  %1180 = vst.msk [vmem:[%s2094_s8 + $0x34] sm:$0xf] %vm1166_vm1, %v1330_v2 }
 0x19d   : > { %1181 = vst.msk [vmem:[%s2094_s8 + $0x38] sm:$0xf] %vm1166_vm1, %v1331_v5  ;;  %1182 = vst.msk [vmem:[%s2094_s8 + $0x3c] sm:$0xf] %vm1166_vm1, %v1332_v6 }

// kernel: proto_model_forward.7
= control target key start
LH: loop header
LB: loop body
LE: loop exit
PB: predicated region body
PF: predicated region fallthrough
CT: control target
= control target key end

     0   :  { %vm446_vm0 = vcmask 523264   ;;  %vm1401_vm1 = vmmov 0   ;;  %vm832_vm2 = vcmask 64512   ;;  %vm1070_vm3 = vcmask 15360   ;;  %s1672_s1 = inlined_call_operand.vmem [shape: bf16[576,64], index: 1, kind: input, shape index: {}]   ;;  %s1673_s0 = inlined_call_operand.vmem [shape: bf16[64,576], index: 0, kind: input, shape index: {}]   ;;  %s1674_s2 = inlined_call_operand.vmem [shape: f32[1,64], index: 2, kind: input, shape index: {}]   ;;  %s1675_s5 = inlined_call_operand.vmem [shape: f32[16,64], index: 5, kind: input, shape index: {}]   ;;  %s1676_s3 = inlined_call_operand.vmem [shape: f32[1,64], index: 3, kind: input, shape index: {}]   ;;  %s1677_s4 = inlined_call_operand.vmem [shape: f32[1,64], index: 4, kind: input, shape index: {}]   ;;  %s1678_s6 = inlined_call_operand.vmem [shape: f32[2,8], index: 6, kind: input, shape index: {}]   ;;  %s1679_s7 = inlined_call_operand.vmem [shape: f32[8,2], index: 7, kind: output, shape index: {}]  }
   0x1   :  { %v1330_v0 = vld [vmem:[%s1672_s1 + $0x40] sm:$0xff]   ;;  %v1334_v4 = vld [vmem:[%s1672_s1 + $0x48] sm:$0xff]   ;;  %v1338_v8 = vld [vmem:[%s1672_s1 + $0x50] sm:$0xff]  }
   0x2   :  { %v1331_v1 = vld [vmem:[%s1672_s1] sm:$0xff]   ;;  %1157 = vmatprep.subr.bf16.mxu0 %v1330_v0  ;;  %v1335_v5 = vld [vmem:[%s1672_s1 + $0x8] sm:$0xff]   ;;  %v1339_v9 = vld [vmem:[%s1672_s1 + $0x10] sm:$0xff]  }
   0x3   :  { %v1332_v2 = vld [vmem:[%s1672_s1 + $0xc0] sm:$0xff]   ;;  %1158 = vmatpush3.bf16.msra.mxu0 %v1331_v1  ;;  %v1336_v6 = vld [vmem:[%s1672_s1 + $0xc8] sm:$0xff]   ;;  %v1340_v10 = vld [vmem:[%s1672_s1 + $0xd0] sm:$0xff]  }
   0x4   :  { %v1333_v3 = vld [vmem:[%s1672_s1 + $0x80] sm:$0xff]   ;;  %1197 = vmatprep.subr.bf16.mxu1 %v1332_v2  ;;  %1159 = vmatprep.subr.bf16.mxu0 %v1334_v4  ;;  %v1337_v7 = vld [vmem:[%s1672_s1 + $0x88] sm:$0xff]   ;;  %v1341_v11 = vld [vmem:[%s1672_s1 + $0x90] sm:$0xff]  }
   0x5   :  { %1198 = vmatpush3.bf16.msra.mxu1 %v1333_v3  ;;  %v1342_v12 = vld [vmem:[%s1672_s1 + $0x58] sm:$0xff]   ;;  %v1346_v16 = vld [vmem:[%s1672_s1 + $0x60] sm:$0xff]   ;;  %v1350_v20 = vld [vmem:[%s1672_s1 + $0x68] sm:$0xff]  }
   0x6   :  { %1199 = vmatprep.subr.bf16.mxu1 %v1336_v6  ;;  %v1343_v13 = vld [vmem:[%s1672_s1 + $0x18] sm:$0xff]   ;;  %v1347_v17 = vld [vmem:[%s1672_s1 + $0x20] sm:$0xff]   ;;  %v1351_v21 = vld [vmem:[%s1672_s1 + $0x28] sm:$0xff]  }
   0x7   :  { %1160 = vmatpush3.bf16.msra.mxu0 %v1335_v5  ;;  %v1344_v14 = vld [vmem:[%s1672_s1 + $0xd8] sm:$0xff]   ;;  %v1348_v18 = vld [vmem:[%s1672_s1 + $0xe0] sm:$0xff]   ;;  %v1352_v22 = vld [vmem:[%s1672_s1 + $0xe8] sm:$0xff]  }
   0x8   :  { %1161 = vmatprep.subr.bf16.mxu0 %v1338_v8  ;;  %v1345_v15 = vld [vmem:[%s1672_s1 + $0x98] sm:$0xff]   ;;  %v1349_v19 = vld [vmem:[%s1672_s1 + $0xa0] sm:$0xff]   ;;  %v1353_v23 = vld [vmem:[%s1672_s1 + $0xa8] sm:$0xff]  }
   0x9   :  { %1200 = vmatpush3.bf16.msra.mxu1 %v1337_v7  ;;  %v1354_v24 = vld [vmem:[%s1672_s1 + $0x70] sm:$0xff]   ;;  %v1358_v28 = vld [vmem:[%s1672_s1 + $0x78] sm:$0xff]   ;;  %v1367_v35 = vld [vmem:[%s1673_s0 + $0xc] ss:$20 sps:$4 sm:$0xff]  }
   0xa   :  { %1201 = vmatprep.subr.bf16.mxu1 %v1340_v10  ;;  %v1355_v25 = vld [vmem:[%s1672_s1 + $0x30] sm:$0xff]   ;;  %v1359_v29 = vld [vmem:[%s1672_s1 + $0x38] sm:$0xff]   ;;  %v1368_v36 = vld [vmem:[%s1673_s0 + $0x2c] ss:$20 sps:$4 sm:$0xff]   ;;  %556 = vmatprep.mubr.bf16.mxu1 %v1367_v35 }
   0xb   :  { %1162 = vmatpush3.bf16.msra.mxu0 %v1339_v9  ;;  %v1356_v26 = vld [vmem:[%s1672_s1 + $0xf0] sm:$0xff]   ;;  %v1360_v30 = vld [vmem:[%s1672_s1 + $0xf8] sm:$0xff]   ;;  %v1377_v39 = vld [vmem:[%s1672_s1 + $0x100] sm:$0xff]  }
   0xc   :  { %1163 = vmatprep.subr.bf16.mxu0 %v1342_v12  ;;  %v1357_v27 = vld [vmem:[%s1672_s1 + $0xb0] sm:$0xff]   ;;  %v1363_v32 = vld [vmem:[%s1673_s0 + $0x4] ss:$20 sps:$4 sm:$0xff]   ;;  %v1365_v34 = vld [vmem:[%s1673_s0 + $0x8] ss:$20 sps:$4 sm:$0xff]  }
   0xd   :  { %1202 = vmatpush3.bf16.msra.mxu1 %v1341_v11  ;;  %v1361_v31 = vld [vmem:[%s1673_s0] ss:$20 sps:$4 sm:$0xff]   ;;  %v1364_v33 = vld [vmem:[%s1672_s1 + $0xb8] sm:$0xff]   ;;  %491 = vmatprep.mubr.bf16.mxu0 %v1363_v32  ;;  %v1381_v41 = vld [vmem:[%s1672_s1 + $0x108] sm:$0xff]  }
   0xe   :  { %1203 = vmatprep.subr.bf16.mxu1 %v1344_v14  ;;  %v1371_v37 = vld [vmem:[%s1673_s0 + $0x34] ss:$20 sps:$4 sm:$0xff]   ;;  %v1373_v42 = vld [vmem:[%s1673_s0 + $0x30] ss:$20 sps:$4 sm:$0xff]   ;;  %v1389_v46 = vld [vmem:[%s1672_s1 + $0x118] sm:$0xff]  }
   0xf   :  { %1164 = vmatpush3.bf16.msra.mxu0 %v1343_v13  ;;  %v1370_v38 = vld [vmem:[%s1673_s0 + $0x28] ss:$20 sps:$4 sm:$0xff]   ;;  %v1385_v44 = vld [vmem:[%s1672_s1 + $0x110] sm:$0xff]   ;;  %v1380_v48 = vld [vmem:[%s1673_s0 + $0x58] ss:$20 sps:$4 sm:$0xff]  }
  0x10   :  { %1165 = vmatprep.subr.bf16.mxu0 %v1346_v16  ;;  %v1374_v40 = vld [vmem:[%s1673_s0 + $0x54] ss:$20 sps:$4 sm:$0xff]   ;;  %v1378_v43 = vld [vmem:[%s1673_s0 + $0x5c] ss:$20 sps:$4 sm:$0xff]   ;;  %v1386_v49 = vld [vmem:[%s1673_s0 + $0x84] ss:$20 sps:$4 sm:$0xff]  }
  0x11   :  { %1204 = vmatpush3.bf16.msra.mxu1 %v1345_v15  ;;  %v1376_v45 = vld [vmem:[%s1673_s0 + $0x50] ss:$20 sps:$4 sm:$0xff]   ;;  %v1384_v50 = vld [vmem:[%s1673_s0 + $0x78] ss:$20 sps:$4 sm:$0xff]   ;;  %v1388_v52 = vld [vmem:[%s1673_s0 + $0x80] ss:$20 sps:$4 sm:$0xff]  }
  0x12   :  { %1205 = vmatprep.subr.bf16.mxu1 %v1348_v18  ;;  %v1382_v47 = vld [vmem:[%s1673_s0 + $0x7c] ss:$20 sps:$4 sm:$0xff]   ;;  %v1391_v53 = vld [vmem:[%s1673_s0 + $0x38] ss:$20 sps:$4 sm:$0xff]   ;;  %v1392_v54 = vld [vmem:[%s1673_s0 + $0x60] ss:$20 sps:$4 sm:$0xff]  }
  0x13   :  { %1166 = vmatpush3.bf16.msra.mxu0 %v1347_v17  ;;  %v1390_v51 = vld [vmem:[%s1673_s0 + $0x10] ss:$20 sps:$4 sm:$0xff]   ;;  %v1393_v55 = vld [vmem:[%s1673_s0 + $0x88] ss:$20 sps:$4 sm:$0xff]   ;;  %v1088_v57 = vld [vmem:[%s1674_s2] ss:$0 sm:$0xff] }
  0x14   :  { %1167 = vmatprep.subr.bf16.mxu0 %v1350_v20  ;;  %v748_v11 = vld [vmem:[%s1675_s5] sm:$0xff] }
  0x15   :  { %1206 = vmatpush3.bf16.msra.mxu1 %v1349_v19 }
  0x16   :  { %1207 = vmatprep.subr.bf16.mxu1 %v1352_v22 }
  0x17   :  { %1168 = vmatpush3.bf16.msra.mxu0 %v1351_v21 }
  0x18   :  { %1169 = vmatprep.subr.bf16.mxu0 %v1354_v24 }
  0x19   :  { %1208 = vmatpush3.bf16.msra.mxu1 %v1353_v23 }
  0x1a   :  { %1209 = vmatprep.subr.bf16.mxu1 %v1356_v26 }
  0x1b   :  { %1170 = vmatpush3.bf16.msra.mxu0 %v1355_v25 }
  0x1c   :  { %1171 = vmatprep.subr.bf16.mxu0 %v1358_v28 }
  0x1d   :  { %1210 = vmatpush3.bf16.msra.mxu1 %v1357_v27 }
  0x1e   :  { %1211 = vmatprep.subr.bf16.mxu1 %v1360_v30 }
  0x1f   :  { %1172 = vmatpush3.bf16.msra.mxu0 %v1359_v29 }
  0x20   :  { %1261 = vmatprep.subr.bf16.mxu0 %v1377_v39 }
  0x21   :  { %1212 = vmatpush3.bf16.msra.mxu1 %v1364_v33 }
  0x22   :  { %492 = vmatmul.mubr.bf16.vlgmr.msra.gmra.mrb[0].mxu0 %v1361_v31 }
  0x23   :  { %499 = vmatprep.mubr.bf16.mxu0 %v1368_v36  ;;  %1262 = vmatpush3.bf16.msra.mxu0 %v1377_v39 }
  0x24   :  { %557 = vmatmul.mubr.bf16.vlgmr.msra.gmra.mrb[0].mxu1 %v1365_v34  ;;  %1263 = vmatprep.subr.bf16.mxu0 %v1381_v41 }
  0x25   :  { %564 = vmatprep.mubr.bf16.mxu1 %v1371_v37 }
  0x27   :  { %1264 = vmatpush3.bf16.msra.mxu0 %v1381_v41 }
  0x28   :  { %1265 = vmatprep.subr.bf16.mxu0 %v1385_v44 }
  0x2a   :  { %500 = vmatmul.mubr.bf16.gmra.mrb[4].mxu0 %v1370_v38 }
  0x2b   :  { %507 = vmatprep.mubr.bf16.mxu0 %v1374_v40  ;;  %1266 = vmatpush3.bf16.msra.mxu0 %v1385_v44 }
  0x2c   :  { %565 = vmatmul.mubr.bf16.gmra.mrb[4].mxu1 %v1373_v42  ;;  %1267 = vmatprep.subr.bf16.mxu0 %v1389_v46 }
  0x2d   :  { %572 = vmatprep.mubr.bf16.mxu1 %v1378_v43 }
  0x2f   :  { %1268 = vmatpush3.bf16.msra.mxu0 %v1389_v46 }
  0x32   :  { %508 = vmatmul.mubr.bf16.gmra.mrb[8].mxu0 %v1376_v45 }
  0x33   :  { %515 = vmatprep.mubr.bf16.mxu0 %v1382_v47 }
  0x34   :  { %573 = vmatmul.mubr.bf16.gmra.mrb[8].mxu1 %v1380_v48 }
  0x35   :  { %580 = vmatprep.mubr.bf16.mxu1 %v1386_v49 }
  0x3a   :  { %516 = vmatmul.mubr.bf16.gmra.mrb[12].mxu0 %v1384_v50 }
  0x3b   :  { %1269 = vmatprep.mubr.msk.bf16.mxu0 %vm446_vm0, %v1390_v51 }
  0x3c   :  { %581 = vmatmul.mubr.bf16.gmra.mrb[12].mxu1 %v1388_v52 }
  0x3d   :  { %1293 = vmatprep.mubr.msk.f32.mxu1 %vm446_vm0, %v748_v11 }
  0x42   :  { %1270 = vmatmul.mubr.msk.bf16.vlgmr.msra.gmra.mrb[16].mxu0 %vm446_vm0, %v1391_v53 }
  0x43   :  { %1273 = vmatprep.mubr.msk.bf16.mxu0 %vm446_vm0, %v1392_v54 }
  0x4a   :  { %1274 = vmatmul.mubr.msk.bf16.gmra.mrb[20].mxu0 %vm446_vm0, %v1393_v55 }
  0xf5   :  { %v1173_v56 = vpop.f32.mrb[0].mxu0 }
  0xf6   :  { %v1174_v58 = vpop.f32.mrb[1].mxu0 }
  0xf7   :  { %v1175_v59 = vadd.f32 %v1174_v58, %v1173_v56  ;;  %v1176_v60 = vpop.f32.mrb[2].mxu0  ;;  %v1213_v61 = vpop.f32.mrb[0].mxu1 }
  0xf8   :  { %v1177_v62 = vpop.f32.mrb[3].mxu0  ;;  %v1214_v1 = vpop.f32.mrb[1].mxu1 }
  0xf9   :  { %v494_v63 = vadd.f32 %v1175_v59, %v1088_v57  ;;  %v1178_v0 = vadd.f32 %v1177_v62, %v1176_v60  ;;  %v1215_v2 = vadd.f32 %v1214_v1, %v1213_v61  ;;  %v1216_v3 = vpop.f32.mrb[2].mxu1 }
  0xfa   :  { %v1217_v5 = vpop.f32.mrb[3].mxu1 }
  0xfb   :  { %v497_v4 = vadd.f32 %v1178_v0, %v1088_v57  ;;  %v1218_v6 = vadd.f32 %v1217_v5, %v1216_v3  ;;  %v559_v7 = vadd.f32 %v1215_v2, %v494_v63 }
  0xfd   :  { %v1179_v8 = vpop.f32.mrb[4].mxu0  ;;  %v562_v10 = vadd.f32 %v1218_v6, %v497_v4 }
  0xfe   :  { %v1180_v9 = vpop.f32.mrb[5].mxu0 }
  0xff   :  { %v1181_v12 = vadd.f32 %v1180_v9, %v1179_v8  ;;  %v1182_v13 = vpop.f32.mrb[6].mxu0  ;;  %v1219_v14 = vpop.f32.mrb[4].mxu1 }
 0x100   :  { %v1183_v15 = vpop.f32.mrb[7].mxu0  ;;  %v1220_v18 = vpop.f32.mrb[5].mxu1 }
 0x101   :  { %v502_v16 = vadd.f32 %v1181_v12, %v1088_v57  ;;  %v1184_v17 = vadd.f32 %v1183_v15, %v1182_v13  ;;  %v1221_v19 = vadd.f32 %v1220_v18, %v1219_v14  ;;  %v1222_v20 = vpop.f32.mrb[6].mxu1 }
 0x102   :  { %v1223_v22 = vpop.f32.mrb[7].mxu1 }
 0x103   :  { %v505_v21 = vadd.f32 %v1184_v17, %v1088_v57  ;;  %v1224_v23 = vadd.f32 %v1223_v22, %v1222_v20  ;;  %v567_v24 = vadd.f32 %v1221_v19, %v502_v16 }
 0x105   :  { %v1185_v25 = vpop.f32.mrb[8].mxu0  ;;  %v570_v27 = vadd.f32 %v1224_v23, %v505_v21 }
 0x106   :  { %v1186_v26 = vpop.f32.mrb[9].mxu0 }
 0x107   :  { %v1187_v28 = vadd.f32 %v1186_v26, %v1185_v25  ;;  %v1188_v29 = vpop.f32.mrb[10].mxu0  ;;  %v1225_v30 = vpop.f32.mrb[8].mxu1 }
 0x108   :  { %v1189_v31 = vpop.f32.mrb[11].mxu0  ;;  %v1226_v34 = vpop.f32.mrb[9].mxu1 }
 0x109   :  { %v510_v32 = vadd.f32 %v1187_v28, %v1088_v57  ;;  %v1190_v33 = vadd.f32 %v1189_v31, %v1188_v29  ;;  %v1227_v35 = vadd.f32 %v1226_v34, %v1225_v30  ;;  %v1228_v36 = vpop.f32.mrb[10].mxu1 }
 0x10a   :  { %v1229_v38 = vpop.f32.mrb[11].mxu1 }
 0x10b   :  { %v513_v37 = vadd.f32 %v1190_v33, %v1088_v57  ;;  %v1230_v39 = vadd.f32 %v1229_v38, %v1228_v36  ;;  %v575_v40 = vadd.f32 %v1227_v35, %v510_v32 }
 0x10d   :  { %v1191_v41 = vpop.f32.mrb[12].mxu0  ;;  %v578_v43 = vadd.f32 %v1230_v39, %v513_v37 }
 0x10e   :  { %v1192_v42 = vpop.f32.mrb[13].mxu0 }
 0x10f   :  { %v1193_v44 = vadd.f32 %v1192_v42, %v1191_v41  ;;  %v1194_v45 = vpop.f32.mrb[14].mxu0  ;;  %v1231_v46 = vpop.f32.mrb[12].mxu1 }
 0x110   :  { %v1195_v47 = vpop.f32.mrb[15].mxu0  ;;  %v1232_v50 = vpop.f32.mrb[13].mxu1 }
 0x111   :  { %v518_v48 = vadd.f32 %v1193_v44, %v1088_v57  ;;  %v1196_v49 = vadd.f32 %v1195_v47, %v1194_v45  ;;  %v1233_v51 = vadd.f32 %v1232_v50, %v1231_v46  ;;  %v1234_v52 = vpop.f32.mrb[14].mxu1 }
 0x112   :  { %v1235_v54 = vpop.f32.mrb[15].mxu1 }
 0x113   :  { %v521_v53 = vadd.f32 %v1196_v49, %v1088_v57  ;;  %v1236_v55 = vadd.f32 %v1235_v54, %v1234_v52  ;;  %v583_v56 = vadd.f32 %v1233_v51, %v518_v48 }
 0x115   :  { %v1271_v58 = vpop.f32.mrb[16].mxu0  ;;  %v586_v61 = vadd.f32 %v1236_v55, %v521_v53 }
 0x116   :  { %v632_v59 = vadd.f32 %v1271_v58, %v567_v24  ;;  %v623_v60 = vpop.f32.mrb[17].mxu0 }
 0x117   :  { %v624_v62 = vadd.f32 %v623_v60, %v559_v7  ;;  %v1272_v63 = vpop.f32.mrb[18].mxu0 }
 0x118   :  { %v635_v0 = vadd.f32 %v1272_v63, %v570_v27  ;;  %v626_v1 = vpop.f32.mrb[19].mxu0  ;;  %v657_v6 = vsel %vm446_vm0, %v632_v59, 0.0 }
 0x119   :  { %v627_v2 = vadd.f32 %v626_v1, %v562_v10  ;;  %v654_v3 = vsel %vm446_vm0, %v624_v62, 0.0 }
 0x11a   :  { %v659_v12 = vsel %vm446_vm0, %v635_v0, 0.0 }
 0x11b   :  { %v655_v4 = vsel %vm446_vm0, %v627_v2, 0.0 }
 0x11c   :  { %v656_v5 = vadd.f32 %v655_v4, %v654_v3 }
 0x11d   :  { %v1275_v57 = vpop.f32.mrb[20].mxu0 }
 0x11e   :  { %v658_v8 = vadd.f32 %v657_v6, %v656_v5  ;;  %v648_v9 = vadd.f32 %v1275_v57, %v583_v56  ;;  %v639_v11 = vpop.f32.mrb[21].mxu0 }
 0x11f   :  { %v640_v13 = vadd.f32 %v639_v11, %v575_v40  ;;  %v1276_v14 = vpop.f32.mrb[22].mxu0  ;;  %v715_v11 = vld [vmem:[%s1676_s3] sm:$0x1] }
 0x120   :  { %v660_v7 = vadd.f32 %v659_v12, %v658_v8  ;;  %v651_v15 = vadd.f32 %v1276_v14, %v586_v61  ;;  %v642_v16 = vpop.f32.mrb[23].mxu0  ;;  %v665_v21 = vsel %vm446_vm0, %v648_v9, 0.0  ;;  %v720_v8 = vlaneseq }
 0x121   :  { %v661_v10 = vsel %vm446_vm0, %v640_v13, 0.0  ;;  %v643_v17 = vadd.f32 %v642_v16, %v578_v43 }
 0x122   :  { %v662_v18 = vadd.f32 %v661_v10, %v660_v7  ;;  %v667_v23 = vsel %vm446_vm0, %v651_v15, 0.0 }
 0x123   :  { %v663_v19 = vsel %vm446_vm0, %v643_v17, 0.0 }
 0x124   :  { %v664_v20 = vadd.f32 %v663_v19, %v662_v18 }
 0x126   :  { %v666_v22 = vadd.f32 %v665_v21, %v664_v20 }
 0x128   :  { %v668_v24 = vadd.f32 %v667_v23, %v666_v22 }
 0x12a   :  { %v669_v25 = vrot.slane %v668_v24, 4 }
 0x12c   :  { %v670_v26 = vadd.f32 %v669_v25, %v668_v24 }
 0x12e   :  { %v671_v27 = vrot.slane %v670_v26, 2 }
 0x130   :  { %v672_v28 = vadd.f32 %v671_v27, %v670_v26 }
 0x132   :  { %v673_v29 = vrot.slane %v672_v28, 1 }
 0x134   :  { %v674_v30 = vadd.f32 %v673_v29, %v672_v28 }
 0x136   :  { %v676_v31 = vmul.f32 0.015625, %v674_v30 }
 0x138   :  { %v677_v32 = vsub.f32 %v624_v62, %v676_v31  ;;  %v678_v33 = vsub.f32 %v627_v2, %v676_v31  ;;  %v679_v34 = vsub.f32 %v632_v59, %v676_v31  ;;  %v680_v35 = vsub.f32 %v635_v0, %v676_v31 }
 0x139   :  { %v681_v36 = vsub.f32 %v640_v13, %v676_v31  ;;  %v682_v37 = vsub.f32 %v643_v17, %v676_v31  ;;  %v683_v38 = vsub.f32 %v648_v9, %v676_v31  ;;  %v684_v39 = vsub.f32 %v651_v15, %v676_v31  ;;  %v1149_v15 = vld [vmem:[%s1677_s4] ss:$0 sm:$0xff] }
 0x13a   :  { %v685_v40 = vmul.f32 %v677_v32, %v677_v32  ;;  %v686_v41 = vmul.f32 %v678_v33, %v678_v33  ;;  %v687_v42 = vmul.f32 %v679_v34, %v679_v34  ;;  %v688_v43 = vmul.f32 %v680_v35, %v680_v35 }
 0x13b   :  { %v689_v47 = vmul.f32 %v681_v36, %v681_v36  ;;  %v690_v50 = vmul.f32 %v682_v37, %v682_v37  ;;  %v691_v53 = vmul.f32 %v683_v38, %v683_v38  ;;  %v692_v56 = vmul.f32 %v684_v39, %v684_v39 }
 0x13c   :  { %v693_v44 = vsel %vm446_vm0, %v685_v40, 0.0  ;;  %v694_v45 = vsel %vm446_vm0, %v686_v41, 0.0  ;;  %v696_v48 = vsel %vm446_vm0, %v687_v42, 0.0  ;;  %v698_v51 = vsel %vm446_vm0, %v688_v43, 0.0 }
 0x13d   :  { %v695_v46 = vadd.f32 %v694_v45, %v693_v44  ;;  %v700_v54 = vsel %vm446_vm0, %v689_v47, 0.0  ;;  %v702_v58 = vsel %vm446_vm0, %v690_v50, 0.0  ;;  %v704_v60 = vsel %vm446_vm0, %v691_v53, 0.0 }
 0x13e   :  { %v706_v62 = vsel %vm446_vm0, %v692_v56, 0.0  ;;  %v1638_v9 = vshrl.u32 %v720_v8, 7  ;;  %v1402_v45 = vmov 1.0  }
 0x13f   :  { %v697_v49 = vadd.f32 %v696_v48, %v695_v46 }
 0x140   :  { %v722_v12 = vsub.s32 0, %v1638_v9 }
 0x141   :  { %v699_v52 = vadd.f32 %v698_v51, %v697_v49 }
 0x143   :  { %v701_v55 = vadd.f32 %v700_v54, %v699_v52 }
 0x145   :  { %v703_v59 = vadd.f32 %v702_v58, %v701_v55 }
 0x147   :  { %v705_v61 = vadd.f32 %v704_v60, %v703_v59 }
 0x149   :  { %v707_v63 = vadd.f32 %v706_v62, %v705_v61 }
 0x14b   :  { %v708_v0 = vrot.slane %v707_v63, 4 }
 0x14d   :  { %v709_v1 = vadd.f32 %v708_v0, %v707_v63 }
 0x14f   :  { %v710_v2 = vrot.slane %v709_v1, 2 }
 0x151   :  { %v711_v3 = vadd.f32 %v710_v2, %v709_v1 }
 0x153   :  { %v712_v4 = vrot.slane %v711_v3, 1 }
 0x155   :  { %v713_v5 = vadd.f32 %v712_v4, %v711_v3 }
 0x157   :  { %v714_v6 = vmul.f32 0.015625, %v713_v5 }
 0x159   :  { %v716_v57 = vadd.f32 1e-05, %v714_v6 }
 0x15b   :  { %1394 = vrsqrt.f32 %v716_v57 }
 0x165   :  { %v1395_v13 = vpop.eup %1394 }
 0x166   :  { %v718_v14 = vmul.f32 %v1395_v13, %v715_v11 }
 0x168   :  { %v723_v7 = vrot.slane %v718_v14, %v722_v12 }
 0x16a   :  { %v730_v16 = vmul.f32 %v723_v7, %v682_v37  ;;  %v725_v10 = vmul.f32 %v723_v7, %v677_v32  ;;  %v726_v17 = vmul.f32 %v723_v7, %v678_v33  ;;  %v727_v18 = vmul.f32 %v723_v7, %v679_v34  ;;  %v749_v32 = vld [vmem:[%s1675_s5 + $0x8] sm:$0xff] }
 0x16b   :  { %v728_v19 = vmul.f32 %v723_v7, %v680_v35  ;;  %v729_v20 = vmul.f32 %v723_v7, %v681_v36  ;;  %v731_v21 = vmul.f32 %v723_v7, %v683_v38  ;;  %v732_v22 = vmul.f32 %v723_v7, %v684_v39  ;;  %v831_v35 = vld [vmem:[%s1678_s6] sm:$0x3] }
 0x16c   :  { %v740_v23 = vadd.f32 %v1149_v15, %v725_v10  ;;  %v741_v24 = vadd.f32 %v1149_v15, %v726_v17  ;;  %v742_v25 = vadd.f32 %v1149_v15, %v727_v18  ;;  %v745_v26 = vadd.f32 %v1149_v15, %v730_v16 }
 0x16d   :  { %v743_v27 = vadd.f32 %v1149_v15, %v728_v19  ;;  %v744_v28 = vadd.f32 %v1149_v15, %v729_v20  ;;  %v746_v29 = vadd.f32 %v1149_v15, %v731_v21  ;;  %v747_v30 = vadd.f32 %v1149_v15, %v732_v22 }
 0x16e   :  { %v1311_v31 = vpack.c.bf16 %v741_v24, %v740_v23  ;;  %v1400_v33 = vmov 0.0  }
 0x16f   :  { %v1315_v40 = vpack.c.bf16 %v743_v27, %v742_v25  ;;  %v1319_v41 = vpack.c.bf16 %v745_v26, %v744_v28  ;;  %v1323_v42 = vpack.c.bf16 %v747_v30, %v746_v29 }
 0x170   :  { %1312 = vmatprep.subr.bf16.mxu1 %v1311_v31 }
 0x171   :  { %1314 = vmatpush3.bf16.msra.mxu1 %v1311_v31 }
 0x172   :  { %1316 = vmatprep.subr.bf16.mxu1 %v1315_v40 }
 0x175   :  { %1318 = vmatpush3.bf16.msra.mxu1 %v1315_v40 }
 0x176   :  { %1320 = vmatprep.subr.bf16.mxu1 %v1319_v41 }
 0x179   :  { %1322 = vmatpush3.bf16.msra.mxu1 %v1319_v41 }
 0x17a   :  { %1324 = vmatprep.subr.bf16.mxu1 %v1323_v42 }
 0x17d   :  { %1326 = vmatpush3.bf16.msra.mxu1 %v1323_v42 }
 0x17e   :  { %1296 = vmatprep.subr.mxu1 %v1400_v33 }
 0x180   :  { %1294 = vmatmul.mubr.msk.f32.vlgmr.msra.gmra.mrb[16].mxu1 %vm446_vm0, %v749_v32 }
 0x181   :  { %1298 = vmatprep.mubr.msk.f32.mxu1 %vm1401_vm1, %v1400_v33 }
 0x253   :  { %v1295_v34 = vpop.f32.mrb[16].mxu1 }
 0x254   :  { %v822_v36 = vpop.f32.mrb[17].mxu1  ;;  %v906_v37 = vmul.f32 %v1295_v34, %v1295_v34 }
 0x255   :  { %1297 = vmatpush3.msra.mxu1 %v822_v36 }
 0x256   :  { %1299 = vmatmul.mubr.msk.f32.vlgmr.msra.gmra.mrb[18].mxu1 %vm832_vm2, %v831_v35  ;;  %v907_v38 = vsel %vm446_vm0, %v906_v37, 0.0  ;;  %1301 = vmatprep.subr.mxu1 %v1400_v33 }
 0x257   :  { %908 = vadd.xlane.f32.xlu0 %v907_v38  ;;  %1303 = vmatprep.mubr.msk.f32.mxu1 %vm1401_vm1, %v1400_v33 }
 0x2e4   :  { %v909_v49 = vpop.xlane.xlu0 %908 }
 0x329   :  { %v902_v39 = vpop.f32.mrb[18].mxu1 }
 0x32a   :  { %1302 = vmatpush3.xpose.msk.msra.mxu1 %vm446_vm0, %v902_v39  ;;  %v1300_v43 = vpop.f32.mrb[19].mxu1  ;;  %v986_v44 = vmul.f32 %v902_v39, %v902_v39 }
 0x32b   :  { %1306 = vmatprep.subr.mxu1 %v1400_v33 }
 0x32d   :  { %1304 = vmatmul.mubr.msk.f32.vlgmr.msra.gmra.mrb[20].mxu1 %vm446_vm0, %v1295_v34 }
 0x32e   :  { %1307 = vmatpush3.xpose.msk.msra.mxu1 %vm446_vm0, %v986_v44  ;;  %1308 = vmatprep.mubr.msk.f32.mxu1 %vm1401_vm1, %v1400_v33 }
 0x331   :  { %1309 = vmatmul.mubr.msk.f32.vlgmr.msra.gmra.mrb[22].mxu1 %vm446_vm0, %v1402_v45 }
 0x400   :  { %v982_v46 = vpop.f32.mrb[20].mxu1 }
 0x401   :  { %v1063_v47 = vmul.f32 2.0, %v982_v46  ;;  %v1305_v48 = vpop.f32.mrb[21].mxu1 }
 0x403   :  { %v1064_v51 = vsub.f32 %v1063_v47, %v909_v49 }
 0x404   :  { %v1059_v50 = vpop.f32.mrb[22].mxu1 }
 0x405   :  { %v1068_v52 = vrot.slane %v1059_v50, %v722_v12  ;;  %v1310_v53 = vpop.f32.mrb[23].mxu1 }
 0x407   :  { %v1069_v54 = vsub.f32 %v1064_v51, %v1068_v52 }
 0x409   :  { %v1071_v55 = vsel %vm1070_vm3, %v1069_v54, -inf }
 0x40a   :  { %1072 = vmax.xlane.f32.xlu0 %v1071_v55 }
 0x497   :  { %v1073_v56 = vpop.xlane.xlu0 %1072 }
 0x498   :  { %v1074_v58 = vsub.f32 %v1069_v54, %v1073_v56 }
 0x49a   :  { %v1075_v59 = vmul.f32 1.442695, %v1074_v58 }
 0x49c   :  { %1396 = vpow2.f32 %v1075_v59 }
 0x4a6   :  { %v1397_v60 = vpop.eup %1396 }
 0x4a7   :  { %v1077_v61 = vsel %vm1070_vm3, %v1397_v60, 0.0 }
 0x4a8   :  { %1078 = vadd.xlane.f32.xlu1 %v1077_v61 }
 0x535   :  { %v1079_v62 = vpop.xlane.xlu1 %1078 }
 0x536   :  { %1398 = vlog2.f32 %v1079_v62 }
 0x540   :  { %v1399_v63 = vpop.eup %1398 }
 0x541   :  { %v1081_v0 = vmul.f32 0.6931472, %v1399_v63 }
 0x543   :  { %v1082_v1 = vsub.f32 %v1074_v58, %v1081_v0 }
 0x545   :  { %1083 = vst.msk [vmem:[%s1679_s7] sm:$0xff] %vm1070_vm3, %v1082_v1 }

</bundles_post_ra>
